<compile_context>
chip_gen: v7x
topology: tpu7x:2x2x1
jax: 0.10.0
libtpu: 0.0.40
codegen_flags: <defaults>
</compile_context>

<pallas_src>
import math
import functools

import jax
import jax.numpy as jnp
import numpy as np
from jax.experimental import pallas as pl
from jax.experimental.pallas import tpu as pltpu


# ----------------------------- kernel ---------------------------------------
def _layernorm(x, g, b, eps=1e-5):
    # LayerNorm subclass in the reference casts to fp32 for the normalization.
    x32 = x.astype(jnp.float32)
    mu = jnp.mean(x32, axis=-1, keepdims=True)
    var = jnp.mean(jnp.square(x32 - mu), axis=-1, keepdims=True)
    return (x32 - mu) * jax.lax.rsqrt(var + eps) * g + b


def residual_block_kernel(x_ref, ln1g_ref, ln1b_ref,
                          wqkv_ref, bqkv_ref, wo_ref, bo_ref,
                          ln2g_ref, ln2b_ref,
                          wfc_ref, bfc_ref, wpr_ref, bpr_ref,
                          o_ref, *, n_head):
    xb = x_ref[...]                                 # (B, L, D), input dtype
    B, L, D = xb.shape
    H = n_head
    hd = D // H
    M = B * L
    cdt = wqkv_ref.dtype                            # MXU compute dtype (f32/bf16)

    # Fold the batch block into the GEMM M dimension.
    x = xb.reshape(M, D)

    # ---- attention branch: x + out_proj(MHA(ln_1(x))) -----------------------
    xn = _layernorm(x, ln1g_ref[...], ln1b_ref[...]).astype(cdt)     # (M, D)

    # Single fused qkv GEMM; the 1/sqrt(hd) attention scale is already folded
    # into the q columns of wqkv/bqkv at prep time.
    qkv = (jnp.dot(xn, wqkv_ref[...], preferred_element_type=jnp.float32)
           + bqkv_ref[...])                                           # (M, 3D)

    def split_heads(t):                             # (M, D) -> (B*H, L, hd)
        t = t.reshape(B, L, H, hd)
        t = jnp.swapaxes(t, 1, 2)                   # (B, H, L, hd)
        return t.reshape(B * H, L, hd)

    q3 = split_heads(qkv[:, :D]).astype(cdt)
    k3 = split_heads(qkv[:, D:2 * D]).astype(cdt)
    v3 = split_heads(qkv[:, 2 * D:]).astype(cdt)

    # TODO(synk): for long sequences (H*L*L f32 buffers beyond a few MiB, e.g.
    # ViT-L/336 L=577) tile over key blocks with an online-softmax accumulator
    # to bound VMEM on v7x (64 MiB/TC).
    s = jnp.einsum('hqd,hkd->hqk', q3, k3,
                   preferred_element_type=jnp.float32)                # (B*H, L, L)
    s = s - jnp.max(s, axis=-1, keepdims=True)
    e = jnp.exp(s)
    p = e / jnp.sum(e, axis=-1, keepdims=True)      # exact divide (matches ref)
    av = jnp.einsum('hqk,hkd->hqd', p.astype(cdt), v3,
                    preferred_element_type=jnp.float32)               # (B*H, L, hd)

    # Merge heads (one relayout) and apply the full-width output projection.
    attn = jnp.swapaxes(av.reshape(B, H, L, hd), 1, 2).reshape(M, D)
    attn = (jnp.dot(attn.astype(cdt), wo_ref[...],
                    preferred_element_type=jnp.float32) + bo_ref[...])
    x = x + attn.astype(x.dtype)                    # residual in input dtype

    # ---- MLP branch: x + c_proj(QuickGELU(c_fc(ln_2(x)))) -------------------
    xn2 = _layernorm(x, ln2g_ref[...], ln2b_ref[...]).astype(cdt)
    h1 = (jnp.dot(xn2, wfc_ref[...], preferred_element_type=jnp.float32)
          + bfc_ref[...])
    h1 = h1 * jax.nn.sigmoid(1.702 * h1)            # QuickGELU, f32
    mlp = (jnp.dot(h1.astype(cdt), wpr_ref[...],
                   preferred_element_type=jnp.float32) + bpr_ref[...])

    o_ref[...] = (x + mlp.astype(x.dtype)).reshape(B, L, D).astype(o_ref.dtype)


# ----------------------------- weight prep -----------------------------------
def _prep_layer(params, n_head, compute_dtype):
    """Transpose/fuse/scale-fold/cast PyTorch-layout weights once (outside jit loop)."""
    (ln1_g, ln1_b, w_in, b_in, w_out, b_out,
     ln2_g, ln2_b, w_fc, b_fc, w_pr, b_pr) = params
    D = w_out.shape[0]
    hd = D // n_head
    scale = 1.0 / math.sqrt(hd)
    f32, cd = jnp.float32, compute_dtype

    w_in_t = jnp.asarray(w_in, f32).T                       # (D, 3D), x @ W layout
    b_in_f = jnp.asarray(b_in, f32).reshape(1, 3 * D)
    # Fold the attention scale into the q columns: scale*(x@Wq+bq) == x@(scale*Wq)+scale*bq.
    col_scale = jnp.concatenate([jnp.full((1, D), scale, f32),
                                 jnp.ones((1, 2 * D), f32)], axis=-1)
    wqkv = (w_in_t * col_scale).astype(cd)
    bqkv = b_in_f * col_scale

    wo = jnp.asarray(w_out, f32).T.astype(cd)               # (D, D)
    bo = jnp.asarray(b_out, f32).reshape(1, D)
    wfc = jnp.asarray(w_fc, f32).T.astype(cd)               # (D, 4D)
    bfc = jnp.asarray(b_fc, f32).reshape(1, 4 * D)
    wpr = jnp.asarray(w_pr, f32).T.astype(cd)               # (4D, D)
    bpr = jnp.asarray(b_pr, f32).reshape(1, D)

    return (jnp.asarray(ln1_g, f32).reshape(1, D), jnp.asarray(ln1_b, f32).reshape(1, D),
            wqkv, bqkv, wo, bo,
            jnp.asarray(ln2_g, f32).reshape(1, D), jnp.asarray(ln2_b, f32).reshape(1, D),
            wfc, bfc, wpr, bpr)


# ----------------------------- sizing heuristics ------------------------------
def _vmem_cap_bytes():
    try:
        cap = int(getattr(pltpu.get_tpu_info(), "vmem_capacity_bytes", 0))
        if cap > 0:
            return cap
    except Exception:
        pass
    return 64 << 20          # conservative (v7x-sized) default if unknown


def _estimate_step_bytes(B, L, D, H, w_bytes, xdt_size):
    """Weights (single-buffered) + double-buffered io tiles + f32 intermediates."""
    M = B * L
    io = 2 * 2 * B * L * D * xdt_size
    inter = 4 * (18 * M * D + 3 * B * H * L * L)
    return w_bytes + io + inter + (4 << 20)


def _pick_batch_block(N, L, D, H, w_bytes, xdt_size, cap):
    # Fill the MXU M dimension: target >=256 rows on v6e/v7x (>=128 on v5e).
    target_rows = 256
    best = 1
    for d in range(1, N + 1):
        if N % d != 0:
            continue
        if _estimate_step_bytes(d, L, D, H, w_bytes, xdt_size) <= cap:
            best = d
            if d * L >= target_rows:
                break
        else:
            break
    return best


# ----------------------------- pallas_call wrapper ----------------------------
def residual_block(x_nld, kparams, n_head, *, batch_block, vmem_limit):
    """x_nld: (N, L, D); kparams: pre-fused/transposed per-layer weights."""
    N, L, D = x_nld.shape
    H = n_head
    B = batch_block
    xdt_size = np.dtype(x_nld.dtype).itemsize

    # Whole-array VMEM residency: constant across the grid, single-buffered
    # (no pipeline double-buffering of the weights).
    weight_specs = [pl.BlockSpec(memory_space=pltpu.MemorySpace.VMEM)
                    for _ in kparams]

    # Advisory cost model (per layer): 12 D^2 GEMM columns + attention.
    flops = int(N * (24 * L * D * D + 4 * L * L * D))
    transcendentals = int(N * (H * L * L + 4 * L * D))
    w_bytes = sum(int(np.prod(p.shape)) * np.dtype(p.dtype).itemsize
                  for p in kparams)
    bytes_accessed = int(w_bytes + 2 * N * L * D * xdt_size)

    # TODO(synk): on v7x with tiny N, add a parallel L-tile grid axis so both
    # TensorCores stay loaded even when the batch-block grid has length 1.
    return pl.pallas_call(
        functools.partial(residual_block_kernel, n_head=n_head),
        out_shape=jax.ShapeDtypeStruct((N, L, D), x_nld.dtype),
        grid=(N // B,),
        in_specs=[pl.BlockSpec((B, L, D), lambda n: (n, 0, 0))] + weight_specs,
        out_specs=pl.BlockSpec((B, L, D), lambda n: (n, 0, 0)),
        compiler_params=pltpu.CompilerParams(
            dimension_semantics=("parallel",),
            vmem_limit_bytes=int(vmem_limit)),
        cost_estimate=pl.CostEstimate(flops=flops,
                                      transcendentals=transcendentals,
                                      bytes_accessed=bytes_accessed),
    )(x_nld, *kparams)


def make_transformer(layer_params, n_head, compute_dtype=jnp.float32):
    """Prepares weights once and returns a jitted forward fn, (L, N, D) in/out."""
    kparams_all = [_prep_layer(p, n_head, compute_dtype) for p in layer_params]
    w_bytes = sum(int(np.prod(p.shape)) * np.dtype(p.dtype).itemsize
                  for p in kparams_all[0])

    @jax.jit
    def forward(x_lnd):
        L, N, D = x_lnd.shape
        H = n_head
        xdt_size = np.dtype(x_lnd.dtype).itemsize
        cap = _vmem_cap_bytes() - (8 << 20)          # generation-aware headroom
        B = _pick_batch_block(N, L, D, H, w_bytes, xdt_size, cap)
        vmem_limit = min(max(32 << 20,
                             _estimate_step_bytes(B, L, D, H, w_bytes, xdt_size)),
                         cap)
        x = jnp.transpose(x_lnd, (1, 0, 2))          # -> (N, L, D), once
        for kp in kparams_all:
            x = residual_block(x, kp, n_head,
                               batch_block=B, vmem_limit=vmem_limit)
        return jnp.transpose(x, (1, 0, 2))           # -> (L, N, D), once

    return forward


def transformer_forward(x_lnd, layer_params, n_head, compute_dtype=jnp.float32):
    """Convenience wrapper (prefer make_transformer to cache prepped weights)."""
    return make_transformer(layer_params, n_head, compute_dtype)(x_lnd)


# ----------------------------- parameter init --------------------------------
def init_transformer_params(key, width, layers):
    """Deterministic synthetic init matching the PyTorch module's shapes."""
    D = width
    all_params = []
    for l in range(layers):
        ks = jax.random.split(jax.random.fold_in(key, l), 8)
        ln1_g = jnp.ones((1, D), jnp.float32)
        ln1_b = jnp.zeros((1, D), jnp.float32)
        w_in = jax.random.normal(ks[0], (3 * D, D), jnp.float32) * (D ** -0.5)
        b_in = jax.random.normal(ks[1], (1, 3 * D), jnp.float32) * 0.02
        w_out = jax.random.normal(ks[2], (D, D), jnp.float32) * (D ** -0.5)
        b_out = jax.random.normal(ks[3], (1, D), jnp.float32) * 0.02
        ln2_g = jnp.ones((1, D), jnp.float32)
        ln2_b = jnp.zeros((1, D), jnp.float32)
        w_fc = jax.random.normal(ks[4], (4 * D, D), jnp.float32) * (D ** -0.5)
        b_fc = jax.random.normal(ks[5], (1, 4 * D), jnp.float32) * 0.02
        w_pr = jax.random.normal(ks[6], (D, 4 * D), jnp.float32) * ((4 * D) ** -0.5)
        b_pr = jax.random.normal(ks[7], (1, D), jnp.float32) * 0.02
        all_params.append((ln1_g, ln1_b, w_in, b_in, w_out, b_out,
                           ln2_g, ln2_b, w_fc, b_fc, w_pr, b_pr))
    return all_params


# ----------------------------- pure-JAX reference ----------------------------
def _ref_block(x, params, n_head):
    ln1_g, ln1_b, w_in, b_in, w_out, b_out, ln2_g, ln2_b, w_fc, b_fc, w_pr, b_pr = params
    N, L, D = x.shape
    hd = D // n_head
    scale = 1.0 / math.sqrt(hd)

    def ln(v, g, b):
        mu = jnp.mean(v, axis=-1, keepdims=True)
        var = jnp.mean(jnp.square(v - mu), axis=-1, keepdims=True)
        return (v - mu) * jax.lax.rsqrt(var + 1e-5) * g[0] + b[0]

    xn = ln(x, ln1_g, ln1_b)
    qkv = xn @ w_in.T + b_in[0]
    q, k, v = qkv[..., :D], qkv[..., D:2 * D], qkv[..., 2 * D:]
    q = q.reshape(N, L, n_head, hd) * scale
    k = k.reshape(N, L, n_head, hd)
    v = v.reshape(N, L, n_head, hd)
    s = jnp.einsum('nqhd,nkhd->nhqk', q, k)
    p = jax.nn.softmax(s, axis=-1)
    a = jnp.einsum('nhqk,nkhd->nqhd', p, v).reshape(N, L, D)
    x = x + (a @ w_out.T + b_out[0])

    xn2 = ln(x, ln2_g, ln2_b)
    h = xn2 @ w_fc.T + b_fc[0]
    h = h * jax.nn.sigmoid(1.702 * h)
    return x + (h @ w_pr.T + b_pr[0])


def _ref_transformer(x_lnd, layer_params, n_head):
    x = jnp.transpose(x_lnd, (1, 0, 2))
    for params in layer_params:
        x = _ref_block(x, params, n_head)
    return jnp.transpose(x, (1, 0, 2))


# ----------------------------- main -------------------------------------------
if __name__ == "__main__":
    width, layers, heads = 32, 2, 4
    L, N = 8, 2

    key = jax.random.PRNGKey(0)
    kx, kp = jax.random.split(key)
    x = jax.random.normal(kx, (L, N, width), jnp.float32)    # PyTorch (L, N, D)
    params = init_transformer_params(kp, width, layers)

    ref = jax.block_until_ready(_ref_transformer(x, params, heads))

    # f32 compute path — tight check against the pure-JAX reference.
    fwd_f32 = make_transformer(params, heads, compute_dtype=jnp.float32)
    out = jax.block_until_ready(fwd_f32(x))
    np.testing.assert_allclose(np.asarray(out), np.asarray(ref),
                               rtol=2e-3, atol=2e-3)
    assert out.shape == x.shape and out.dtype == x.dtype

    # bf16 MXU path (weights/matmuls bf16, LN/softmax/residual f32) — sanity.
    fwd_bf16 = make_transformer(params, heads, compute_dtype=jnp.bfloat16)
    out_bf16 = jax.block_until_ready(fwd_bf16(x))
    assert out_bf16.shape == x.shape and out_bf16.dtype == x.dtype
    assert bool(jnp.all(jnp.isfinite(out_bf16)))
    np.testing.assert_allclose(np.asarray(out_bf16), np.asarray(ref),
                               rtol=2.5e-1, atol=2.5e-1)

    print("KERNEL_OK")
</pallas_src>

<mosaic_0001>
module attributes {stable_mosaic.version = 11 : i64} {
  func.func @residual_block_kernel(%arg0: i32, %arg1: memref<2x8x32xf32, #tpu.memory_space<vmem>>, %arg2: memref<1x32xf32, #tpu.memory_space<vmem>>, %arg3: memref<1x32xf32, #tpu.memory_space<vmem>>, %arg4: memref<32x96xf32, #tpu.memory_space<vmem>>, %arg5: memref<1x96xf32, #tpu.memory_space<vmem>>, %arg6: memref<32x32xf32, #tpu.memory_space<vmem>>, %arg7: memref<1x32xf32, #tpu.memory_space<vmem>>, %arg8: memref<1x32xf32, #tpu.memory_space<vmem>>, %arg9: memref<1x32xf32, #tpu.memory_space<vmem>>, %arg10: memref<32x128xf32, #tpu.memory_space<vmem>>, %arg11: memref<1x128xf32, #tpu.memory_space<vmem>>, %arg12: memref<128x32xf32, #tpu.memory_space<vmem>>, %arg13: memref<1x32xf32, #tpu.memory_space<vmem>>, %arg14: memref<2x8x32xf32, #tpu.memory_space<vmem>>) attributes {dimension_semantics = [#tpu.dimension_semantics<parallel>], iteration_bounds = array<i64: 1>, scalar_prefetch = 0 : i64, scratch_operands = 0 : i64, tpu.core_type = #tpu.core_type<tc>, window_params = [{transform_indices = @transform_0, window_bounds = array<i64: 2, 8, 32>}, {pipeline_mode = #tpu.pipeline_mode<synchronous>, transform_indices = @transform_1, window_bounds = array<i64: 1, 32>}, {pipeline_mode = #tpu.pipeline_mode<synchronous>, transform_indices = @transform_2, window_bounds = array<i64: 1, 32>}, {pipeline_mode = #tpu.pipeline_mode<synchronous>, transform_indices = @transform_3, window_bounds = array<i64: 32, 96>}, {pipeline_mode = #tpu.pipeline_mode<synchronous>, transform_indices = @transform_4, window_bounds = array<i64: 1, 96>}, {pipeline_mode = #tpu.pipeline_mode<synchronous>, transform_indices = @transform_5, window_bounds = array<i64: 32, 32>}, {pipeline_mode = #tpu.pipeline_mode<synchronous>, transform_indices = @transform_6, window_bounds = array<i64: 1, 32>}, {pipeline_mode = #tpu.pipeline_mode<synchronous>, transform_indices = @transform_7, window_bounds = array<i64: 1, 32>}, {pipeline_mode = #tpu.pipeline_mode<synchronous>, transform_indices = @transform_8, window_bounds = array<i64: 1, 32>}, {pipeline_mode = #tpu.pipeline_mode<synchronous>, transform_indices = @transform_9, window_bounds = array<i64: 32, 128>}, {pipeline_mode = #tpu.pipeline_mode<synchronous>, transform_indices = @transform_10, window_bounds = array<i64: 1, 128>}, {pipeline_mode = #tpu.pipeline_mode<synchronous>, transform_indices = @transform_11, window_bounds = array<i64: 128, 32>}, {pipeline_mode = #tpu.pipeline_mode<synchronous>, transform_indices = @transform_12, window_bounds = array<i64: 1, 32>}, {transform_indices = @transform_13, window_bounds = array<i64: 2, 8, 32>}]} {
    %c0 = arith.constant 0 : index
    %c0_0 = arith.constant 0 : index
    %c0_1 = arith.constant 0 : index
    %0 = vector.load %arg1[%c0, %c0_0, %c0_1] : memref<2x8x32xf32, #tpu.memory_space<vmem>>, vector<2x8x32xf32>
    %1 = vector.shape_cast %0 : vector<2x8x32xf32> to vector<16x32xf32>
    %c0_2 = arith.constant 0 : index
    %c0_3 = arith.constant 0 : index
    %2 = vector.load %arg2[%c0_2, %c0_3] : memref<1x32xf32, #tpu.memory_space<vmem>>, vector<1x32xf32>
    %c0_4 = arith.constant 0 : index
    %c0_5 = arith.constant 0 : index
    %3 = vector.load %arg3[%c0_4, %c0_5] : memref<1x32xf32, #tpu.memory_space<vmem>>, vector<1x32xf32>
    %cst = arith.constant dense<0.000000e+00> : vector<16xf32>
    %4 = vector.multi_reduction <add>, %1, %cst [1] : vector<16x32xf32> to vector<16xf32>
    %5 = vector.shape_cast %4 : vector<16xf32> to vector<16x1xf32>
    %cst_6 = arith.constant 3.200000e+01 : f32
    %6 = vector.broadcast %cst_6 : f32 to vector<16x1xf32>
    %7 = arith.divf %5, %6 : vector<16x1xf32>
    %8 = vector.broadcast %7 : vector<16x1xf32> to vector<16x32xf32>
    %9 = arith.subf %1, %8 : vector<16x32xf32>
    %10 = arith.mulf %9, %9 : vector<16x32xf32>
    %cst_7 = arith.constant dense<0.000000e+00> : vector<16xf32>
    %11 = vector.multi_reduction <add>, %10, %cst_7 [1] : vector<16x32xf32> to vector<16xf32>
    %12 = vector.shape_cast %11 : vector<16xf32> to vector<16x1xf32>
    %cst_8 = arith.constant 3.200000e+01 : f32
    %13 = vector.broadcast %cst_8 : f32 to vector<16x1xf32>
    %14 = arith.divf %12, %13 : vector<16x1xf32>
    %15 = vector.broadcast %7 : vector<16x1xf32> to vector<16x32xf32>
    %16 = arith.subf %1, %15 : vector<16x32xf32>
    %cst_9 = arith.constant 9.99999974E-6 : f32
    %17 = vector.broadcast %cst_9 : f32 to vector<16x1xf32>
    %18 = arith.addf %14, %17 : vector<16x1xf32>
    %19 = math.rsqrt %18 : vector<16x1xf32>
    %20 = vector.broadcast %19 : vector<16x1xf32> to vector<16x32xf32>
    %21 = arith.mulf %16, %20 : vector<16x32xf32>
    %22 = vector.broadcast %2 : vector<1x32xf32> to vector<16x32xf32>
    %23 = arith.mulf %21, %22 : vector<16x32xf32>
    %24 = vector.broadcast %3 : vector<1x32xf32> to vector<16x32xf32>
    %25 = arith.addf %23, %24 : vector<16x32xf32>
    %c0_10 = arith.constant 0 : index
    %c0_11 = arith.constant 0 : index
    %26 = vector.load %arg4[%c0_10, %c0_11] : memref<32x96xf32, #tpu.memory_space<vmem>>, vector<32x96xf32>
    %cst_12 = arith.constant dense<0.000000e+00> : vector<16x96xf32>
    %27 = tpu.matmul %25, %26, %cst_12 {dimension_numbers = #tpu.dot_dimension_numbers<[1], [0], [0], [1], [0, 0, 1, 1], [], []>} : vector<16x32xf32>, vector<32x96xf32>, vector<16x96xf32> -> vector<16x96xf32>
    %c0_13 = arith.constant 0 : index
    %c0_14 = arith.constant 0 : index
    %28 = vector.load %arg5[%c0_13, %c0_14] : memref<1x96xf32, #tpu.memory_space<vmem>>, vector<1x96xf32>
    %29 = vector.broadcast %28 : vector<1x96xf32> to vector<16x96xf32>
    %30 = arith.addf %27, %29 : vector<16x96xf32>
    %31 = vector.extract_strided_slice %30 {offsets = [0, 0], sizes = [16, 32], strides = [1, 1]} : vector<16x96xf32> to vector<16x32xf32>
    %32 = vector.shape_cast %31 : vector<16x32xf32> to vector<2x8x4x8xf32>
    %33 = tpu.transpose %32, [0, 2, 1, 3] : vector<2x8x4x8xf32> -> vector<2x4x8x8xf32>
    %34 = vector.shape_cast %33 : vector<2x4x8x8xf32> to vector<8x8x8xf32>
    %35 = vector.extract_strided_slice %30 {offsets = [0, 32], sizes = [16, 32], strides = [1, 1]} : vector<16x96xf32> to vector<16x32xf32>
    %36 = vector.shape_cast %35 : vector<16x32xf32> to vector<2x8x4x8xf32>
    %37 = tpu.transpose %36, [0, 2, 1, 3] : vector<2x8x4x8xf32> -> vector<2x4x8x8xf32>
    %38 = vector.shape_cast %37 : vector<2x4x8x8xf32> to vector<8x8x8xf32>
    %39 = vector.extract_strided_slice %30 {offsets = [0, 64], sizes = [16, 32], strides = [1, 1]} : vector<16x96xf32> to vector<16x32xf32>
    %40 = vector.shape_cast %39 : vector<16x32xf32> to vector<2x8x4x8xf32>
    %41 = tpu.transpose %40, [0, 2, 1, 3] : vector<2x8x4x8xf32> -> vector<2x4x8x8xf32>
    %42 = vector.shape_cast %41 : vector<2x4x8x8xf32> to vector<8x8x8xf32>
    "tpu.trace_start"() <{level = 10 : i32, message = "hqd,hkd->hqk"}> : () -> ()
    %cst_15 = arith.constant dense<0.000000e+00> : vector<8x8x8xf32>
    %43 = tpu.matmul %34, %38, %cst_15 {dimension_numbers = #tpu.dot_dimension_numbers<[2], [2], [1], [1], [0, 0, 0, 1, 1, 1], [0], [0]>} : vector<8x8x8xf32>, vector<8x8x8xf32>, vector<8x8x8xf32> -> vector<8x8x8xf32>
    "tpu.trace_stop"() : () -> ()
    %cst_16 = arith.constant dense<0xFF800000> : vector<8x8xf32>
    %44 = vector.multi_reduction <maximumf>, %43, %cst_16 [2] : vector<8x8x8xf32> to vector<8x8xf32>
    %45 = vector.shape_cast %44 : vector<8x8xf32> to vector<8x8x1xf32>
    %46 = vector.broadcast %45 : vector<8x8x1xf32> to vector<8x8x8xf32>
    %47 = arith.subf %43, %46 : vector<8x8x8xf32>
    %48 = math.exp %47 : vector<8x8x8xf32>
    %cst_17 = arith.constant dense<0.000000e+00> : vector<8x8xf32>
    %49 = vector.multi_reduction <add>, %48, %cst_17 [2] : vector<8x8x8xf32> to vector<8x8xf32>
    %50 = vector.shape_cast %49 : vector<8x8xf32> to vector<8x8x1xf32>
    %51 = vector.broadcast %50 : vector<8x8x1xf32> to vector<8x8x8xf32>
    %52 = arith.divf %48, %51 : vector<8x8x8xf32>
    "tpu.trace_start"() <{level = 10 : i32, message = "hqk,hkd->hqd"}> : () -> ()
    %cst_18 = arith.constant dense<0.000000e+00> : vector<8x8x8xf32>
    %53 = tpu.matmul %52, %42, %cst_18 {dimension_numbers = #tpu.dot_dimension_numbers<[2], [1], [1], [2], [0, 0, 0, 1, 1, 2], [0], [0]>} : vector<8x8x8xf32>, vector<8x8x8xf32>, vector<8x8x8xf32> -> vector<8x8x8xf32>
    "tpu.trace_stop"() : () -> ()
    %54 = vector.shape_cast %53 : vector<8x8x8xf32> to vector<2x4x8x8xf32>
    %55 = tpu.transpose %54, [0, 2, 1, 3] : vector<2x4x8x8xf32> -> vector<2x8x4x8xf32>
    %56 = vector.shape_cast %55 : vector<2x8x4x8xf32> to vector<16x32xf32>
    %c0_19 = arith.constant 0 : index
    %c0_20 = arith.constant 0 : index
    %57 = vector.load %arg6[%c0_19, %c0_20] : memref<32x32xf32, #tpu.memory_space<vmem>>, vector<32x32xf32>
    %cst_21 = arith.constant dense<0.000000e+00> : vector<16x32xf32>
    %58 = tpu.matmul %56, %57, %cst_21 {dimension_numbers = #tpu.dot_dimension_numbers<[1], [0], [0], [1], [0, 0, 1, 1], [], []>} : vector<16x32xf32>, vector<32x32xf32>, vector<16x32xf32> -> vector<16x32xf32>
    %c0_22 = arith.constant 0 : index
    %c0_23 = arith.constant 0 : index
    %59 = vector.load %arg7[%c0_22, %c0_23] : memref<1x32xf32, #tpu.memory_space<vmem>>, vector<1x32xf32>
    %60 = vector.broadcast %59 : vector<1x32xf32> to vector<16x32xf32>
    %61 = arith.addf %58, %60 : vector<16x32xf32>
    %62 = arith.addf %1, %61 : vector<16x32xf32>
    %c0_24 = arith.constant 0 : index
    %c0_25 = arith.constant 0 : index
    %63 = vector.load %arg8[%c0_24, %c0_25] : memref<1x32xf32, #tpu.memory_space<vmem>>, vector<1x32xf32>
    %c0_26 = arith.constant 0 : index
    %c0_27 = arith.constant 0 : index
    %64 = vector.load %arg9[%c0_26, %c0_27] : memref<1x32xf32, #tpu.memory_space<vmem>>, vector<1x32xf32>
    %cst_28 = arith.constant dense<0.000000e+00> : vector<16xf32>
    %65 = vector.multi_reduction <add>, %62, %cst_28 [1] : vector<16x32xf32> to vector<16xf32>
    %66 = vector.shape_cast %65 : vector<16xf32> to vector<16x1xf32>
    %cst_29 = arith.constant 3.200000e+01 : f32
    %67 = vector.broadcast %cst_29 : f32 to vector<16x1xf32>
    %68 = arith.divf %66, %67 : vector<16x1xf32>
    %69 = vector.broadcast %68 : vector<16x1xf32> to vector<16x32xf32>
    %70 = arith.subf %62, %69 : vector<16x32xf32>
    %71 = arith.mulf %70, %70 : vector<16x32xf32>
    %cst_30 = arith.constant dense<0.000000e+00> : vector<16xf32>
    %72 = vector.multi_reduction <add>, %71, %cst_30 [1] : vector<16x32xf32> to vector<16xf32>
    %73 = vector.shape_cast %72 : vector<16xf32> to vector<16x1xf32>
    %cst_31 = arith.constant 3.200000e+01 : f32
    %74 = vector.broadcast %cst_31 : f32 to vector<16x1xf32>
    %75 = arith.divf %73, %74 : vector<16x1xf32>
    %76 = vector.broadcast %68 : vector<16x1xf32> to vector<16x32xf32>
    %77 = arith.subf %62, %76 : vector<16x32xf32>
    %cst_32 = arith.constant 9.99999974E-6 : f32
    %78 = vector.broadcast %cst_32 : f32 to vector<16x1xf32>
    %79 = arith.addf %75, %78 : vector<16x1xf32>
    %80 = math.rsqrt %79 : vector<16x1xf32>
    %81 = vector.broadcast %80 : vector<16x1xf32> to vector<16x32xf32>
    %82 = arith.mulf %77, %81 : vector<16x32xf32>
    %83 = vector.broadcast %63 : vector<1x32xf32> to vector<16x32xf32>
    %84 = arith.mulf %82, %83 : vector<16x32xf32>
    %85 = vector.broadcast %64 : vector<1x32xf32> to vector<16x32xf32>
    %86 = arith.addf %84, %85 : vector<16x32xf32>
    %c0_33 = arith.constant 0 : index
    %c0_34 = arith.constant 0 : index
    %87 = vector.load %arg10[%c0_33, %c0_34] : memref<32x128xf32, #tpu.memory_space<vmem>>, vector<32x128xf32>
    %cst_35 = arith.constant dense<0.000000e+00> : vector<16x128xf32>
    %88 = tpu.matmul %86, %87, %cst_35 {dimension_numbers = #tpu.dot_dimension_numbers<[1], [0], [0], [1], [0, 0, 1, 1], [], []>} : vector<16x32xf32>, vector<32x128xf32>, vector<16x128xf32> -> vector<16x128xf32>
    %c0_36 = arith.constant 0 : index
    %c0_37 = arith.constant 0 : index
    %89 = vector.load %arg11[%c0_36, %c0_37] : memref<1x128xf32, #tpu.memory_space<vmem>>, vector<1x128xf32>
    %90 = vector.broadcast %89 : vector<1x128xf32> to vector<16x128xf32>
    %91 = arith.addf %88, %90 : vector<16x128xf32>
    %cst_38 = arith.constant 1.702000e+00 : f32
    %92 = vector.broadcast %cst_38 : f32 to vector<16x128xf32>
    %93 = arith.mulf %92, %91 : vector<16x128xf32>
    %94 = arith.negf %93 : vector<16x128xf32>
    %95 = math.exp %94 : vector<16x128xf32>
    %cst_39 = arith.constant 1.000000e+00 : f32
    %96 = vector.broadcast %cst_39 : f32 to vector<16x128xf32>
    %97 = arith.addf %96, %95 : vector<16x128xf32>
    %98 = arith.divf %96, %97 : vector<16x128xf32>
    %99 = arith.mulf %91, %98 : vector<16x128xf32>
    %c0_40 = arith.constant 0 : index
    %c0_41 = arith.constant 0 : index
    %100 = vector.load %arg12[%c0_40, %c0_41] : memref<128x32xf32, #tpu.memory_space<vmem>>, vector<128x32xf32>
    %cst_42 = arith.constant dense<0.000000e+00> : vector<16x32xf32>
    %101 = tpu.matmul %99, %100, %cst_42 {dimension_numbers = #tpu.dot_dimension_numbers<[1], [0], [0], [1], [0, 0, 1, 1], [], []>} : vector<16x128xf32>, vector<128x32xf32>, vector<16x32xf32> -> vector<16x32xf32>
    %c0_43 = arith.constant 0 : index
    %c0_44 = arith.constant 0 : index
    %102 = vector.load %arg13[%c0_43, %c0_44] : memref<1x32xf32, #tpu.memory_space<vmem>>, vector<1x32xf32>
    %103 = vector.broadcast %102 : vector<1x32xf32> to vector<16x32xf32>
    %104 = arith.addf %101, %103 : vector<16x32xf32>
    %105 = arith.addf %62, %104 : vector<16x32xf32>
    %106 = vector.shape_cast %105 : vector<16x32xf32> to vector<2x8x32xf32>
    %c0_45 = arith.constant 0 : index
    %c0_46 = arith.constant 0 : index
    %c0_47 = arith.constant 0 : index
    %107 = vector.load %arg14[%c0_45, %c0_46, %c0_47] : memref<2x8x32xf32, #tpu.memory_space<vmem>>, vector<2x8x32xf32>
    tpu.vector_store %arg14[%c0_45, %c0_46, %c0_47], %106 {strides = array<i32>} : memref<2x8x32xf32, #tpu.memory_space<vmem>>, vector<2x8x32xf32>,
    return
  }
  func.func @transform_0(%arg0: i32) -> (i32, i32, i32) {
    %c0_i32 = arith.constant 0 : i32
    %c0_i32_0 = arith.constant 0 : i32
    %c0_i32_1 = arith.constant 0 : i32
    return %arg0, %c0_i32, %c0_i32_0 : i32, i32, i32
  }
  func.func @transform_1(%arg0: i32) -> (i32, i32) {
    %c0_i32 = arith.constant 0 : i32
    %c0_i32_0 = arith.constant 0 : i32
    %c0_i32_1 = arith.constant 0 : i32
    return %c0_i32, %c0_i32_0 : i32, i32
  }
  func.func @transform_2(%arg0: i32) -> (i32, i32) {
    %c0_i32 = arith.constant 0 : i32
    %c0_i32_0 = arith.constant 0 : i32
    %c0_i32_1 = arith.constant 0 : i32
    return %c0_i32, %c0_i32_0 : i32, i32
  }
  func.func @transform_3(%arg0: i32) -> (i32, i32) {
    %c0_i32 = arith.constant 0 : i32
    %c0_i32_0 = arith.constant 0 : i32
    %c0_i32_1 = arith.constant 0 : i32
    return %c0_i32, %c0_i32_0 : i32, i32
  }
  func.func @transform_4(%arg0: i32) -> (i32, i32) {
    %c0_i32 = arith.constant 0 : i32
    %c0_i32_0 = arith.constant 0 : i32
    %c0_i32_1 = arith.constant 0 : i32
    return %c0_i32, %c0_i32_0 : i32, i32
  }
  func.func @transform_5(%arg0: i32) -> (i32, i32) {
    %c0_i32 = arith.constant 0 : i32
    %c0_i32_0 = arith.constant 0 : i32
    %c0_i32_1 = arith.constant 0 : i32
    return %c0_i32, %c0_i32_0 : i32, i32
  }
  func.func @transform_6(%arg0: i32) -> (i32, i32) {
    %c0_i32 = arith.constant 0 : i32
    %c0_i32_0 = arith.constant 0 : i32
    %c0_i32_1 = arith.constant 0 : i32
    return %c0_i32, %c0_i32_0 : i32, i32
  }
  func.func @transform_7(%arg0: i32) -> (i32, i32) {
    %c0_i32 = arith.constant 0 : i32
    %c0_i32_0 = arith.constant 0 : i32
    %c0_i32_1 = arith.constant 0 : i32
    return %c0_i32, %c0_i32_0 : i32, i32
  }
  func.func @transform_8(%arg0: i32) -> (i32, i32) {
    %c0_i32 = arith.constant 0 : i32
    %c0_i32_0 = arith.constant 0 : i32
    %c0_i32_1 = arith.constant 0 : i32
    return %c0_i32, %c0_i32_0 : i32, i32
  }
  func.func @transform_9(%arg0: i32) -> (i32, i32) {
    %c0_i32 = arith.constant 0 : i32
    %c0_i32_0 = arith.constant 0 : i32
    %c0_i32_1 = arith.constant 0 : i32
    return %c0_i32, %c0_i32_0 : i32, i32
  }
  func.func @transform_10(%arg0: i32) -> (i32, i32) {
    %c0_i32 = arith.constant 0 : i32
    %c0_i32_0 = arith.constant 0 : i32
    %c0_i32_1 = arith.constant 0 : i32
    return %c0_i32, %c0_i32_0 : i32, i32
  }
  func.func @transform_11(%arg0: i32) -> (i32, i32) {
    %c0_i32 = arith.constant 0 : i32
    %c0_i32_0 = arith.constant 0 : i32
    %c0_i32_1 = arith.constant 0 : i32
    return %c0_i32, %c0_i32_0 : i32, i32
  }
  func.func @transform_12(%arg0: i32) -> (i32, i32) {
    %c0_i32 = arith.constant 0 : i32
    %c0_i32_0 = arith.constant 0 : i32
    %c0_i32_1 = arith.constant 0 : i32
    return %c0_i32, %c0_i32_0 : i32, i32
  }
  func.func @transform_13(%arg0: i32) -> (i32, i32, i32) {
    %c0_i32 = arith.constant 0 : i32
    %c0_i32_0 = arith.constant 0 : i32
    %c0_i32_1 = arith.constant 0 : i32
    return %arg0, %c0_i32, %c0_i32_0 : i32, i32, i32
  }
}

module attributes {stable_mosaic.version = 11 : i64} {
  func.func @residual_block_kernel(%arg0: i32, %arg1: memref<2x8x32xf32, #tpu.memory_space<vmem>>, %arg2: memref<1x32xf32, #tpu.memory_space<vmem>>, %arg3: memref<1x32xf32, #tpu.memory_space<vmem>>, %arg4: memref<32x96xf32, #tpu.memory_space<vmem>>, %arg5: memref<1x96xf32, #tpu.memory_space<vmem>>, %arg6: memref<32x32xf32, #tpu.memory_space<vmem>>, %arg7: memref<1x32xf32, #tpu.memory_space<vmem>>, %arg8: memref<1x32xf32, #tpu.memory_space<vmem>>, %arg9: memref<1x32xf32, #tpu.memory_space<vmem>>, %arg10: memref<32x128xf32, #tpu.memory_space<vmem>>, %arg11: memref<1x128xf32, #tpu.memory_space<vmem>>, %arg12: memref<128x32xf32, #tpu.memory_space<vmem>>, %arg13: memref<1x32xf32, #tpu.memory_space<vmem>>, %arg14: memref<2x8x32xf32, #tpu.memory_space<vmem>>) attributes {dimension_semantics = [#tpu.dimension_semantics<parallel>], iteration_bounds = array<i64: 1>, scalar_prefetch = 0 : i64, scratch_operands = 0 : i64, tpu.core_type = #tpu.core_type<tc>, window_params = [{transform_indices = @transform_0, window_bounds = array<i64: 2, 8, 32>}, {pipeline_mode = #tpu.pipeline_mode<synchronous>, transform_indices = @transform_1, window_bounds = array<i64: 1, 32>}, {pipeline_mode = #tpu.pipeline_mode<synchronous>, transform_indices = @transform_2, window_bounds = array<i64: 1, 32>}, {pipeline_mode = #tpu.pipeline_mode<synchronous>, transform_indices = @transform_3, window_bounds = array<i64: 32, 96>}, {pipeline_mode = #tpu.pipeline_mode<synchronous>, transform_indices = @transform_4, window_bounds = array<i64: 1, 96>}, {pipeline_mode = #tpu.pipeline_mode<synchronous>, transform_indices = @transform_5, window_bounds = array<i64: 32, 32>}, {pipeline_mode = #tpu.pipeline_mode<synchronous>, transform_indices = @transform_6, window_bounds = array<i64: 1, 32>}, {pipeline_mode = #tpu.pipeline_mode<synchronous>, transform_indices = @transform_7, window_bounds = array<i64: 1, 32>}, {pipeline_mode = #tpu.pipeline_mode<synchronous>, transform_indices = @transform_8, window_bounds = array<i64: 1, 32>}, {pipeline_mode = #tpu.pipeline_mode<synchronous>, transform_indices = @transform_9, window_bounds = array<i64: 32, 128>}, {pipeline_mode = #tpu.pipeline_mode<synchronous>, transform_indices = @transform_10, window_bounds = array<i64: 1, 128>}, {pipeline_mode = #tpu.pipeline_mode<synchronous>, transform_indices = @transform_11, window_bounds = array<i64: 128, 32>}, {pipeline_mode = #tpu.pipeline_mode<synchronous>, transform_indices = @transform_12, window_bounds = array<i64: 1, 32>}, {transform_indices = @transform_13, window_bounds = array<i64: 2, 8, 32>}]} {
    %c0 = arith.constant 0 : index
    %c0_0 = arith.constant 0 : index
    %c0_1 = arith.constant 0 : index
    %0 = vector.load %arg1[%c0, %c0_0, %c0_1] : memref<2x8x32xf32, #tpu.memory_space<vmem>>, vector<2x8x32xf32>
    %1 = vector.shape_cast %0 : vector<2x8x32xf32> to vector<16x32xf32>
    %c0_2 = arith.constant 0 : index
    %c0_3 = arith.constant 0 : index
    %2 = vector.load %arg2[%c0_2, %c0_3] : memref<1x32xf32, #tpu.memory_space<vmem>>, vector<1x32xf32>
    %c0_4 = arith.constant 0 : index
    %c0_5 = arith.constant 0 : index
    %3 = vector.load %arg3[%c0_4, %c0_5] : memref<1x32xf32, #tpu.memory_space<vmem>>, vector<1x32xf32>
    %cst = arith.constant dense<0.000000e+00> : vector<16xf32>
    %4 = vector.multi_reduction <add>, %1, %cst [1] : vector<16x32xf32> to vector<16xf32>
    %5 = vector.shape_cast %4 : vector<16xf32> to vector<16x1xf32>
    %cst_6 = arith.constant 3.200000e+01 : f32
    %6 = vector.broadcast %cst_6 : f32 to vector<16x1xf32>
    %7 = arith.divf %5, %6 : vector<16x1xf32>
    %8 = vector.broadcast %7 : vector<16x1xf32> to vector<16x32xf32>
    %9 = arith.subf %1, %8 : vector<16x32xf32>
    %10 = arith.mulf %9, %9 : vector<16x32xf32>
    %cst_7 = arith.constant dense<0.000000e+00> : vector<16xf32>
    %11 = vector.multi_reduction <add>, %10, %cst_7 [1] : vector<16x32xf32> to vector<16xf32>
    %12 = vector.shape_cast %11 : vector<16xf32> to vector<16x1xf32>
    %cst_8 = arith.constant 3.200000e+01 : f32
    %13 = vector.broadcast %cst_8 : f32 to vector<16x1xf32>
    %14 = arith.divf %12, %13 : vector<16x1xf32>
    %15 = vector.broadcast %7 : vector<16x1xf32> to vector<16x32xf32>
    %16 = arith.subf %1, %15 : vector<16x32xf32>
    %cst_9 = arith.constant 9.99999974E-6 : f32
    %17 = vector.broadcast %cst_9 : f32 to vector<16x1xf32>
    %18 = arith.addf %14, %17 : vector<16x1xf32>
    %19 = math.rsqrt %18 : vector<16x1xf32>
    %20 = vector.broadcast %19 : vector<16x1xf32> to vector<16x32xf32>
    %21 = arith.mulf %16, %20 : vector<16x32xf32>
    %22 = vector.broadcast %2 : vector<1x32xf32> to vector<16x32xf32>
    %23 = arith.mulf %21, %22 : vector<16x32xf32>
    %24 = vector.broadcast %3 : vector<1x32xf32> to vector<16x32xf32>
    %25 = arith.addf %23, %24 : vector<16x32xf32>
    %c0_10 = arith.constant 0 : index
    %c0_11 = arith.constant 0 : index
    %26 = vector.load %arg4[%c0_10, %c0_11] : memref<32x96xf32, #tpu.memory_space<vmem>>, vector<32x96xf32>
    %cst_12 = arith.constant dense<0.000000e+00> : vector<16x96xf32>
    %27 = tpu.matmul %25, %26, %cst_12 {dimension_numbers = #tpu.dot_dimension_numbers<[1], [0], [0], [1], [0, 0, 1, 1], [], []>} : vector<16x32xf32>, vector<32x96xf32>, vector<16x96xf32> -> vector<16x96xf32>
    %c0_13 = arith.constant 0 : index
    %c0_14 = arith.constant 0 : index
    %28 = vector.load %arg5[%c0_13, %c0_14] : memref<1x96xf32, #tpu.memory_space<vmem>>, vector<1x96xf32>
    %29 = vector.broadcast %28 : vector<1x96xf32> to vector<16x96xf32>
    %30 = arith.addf %27, %29 : vector<16x96xf32>
    %31 = vector.extract_strided_slice %30 {offsets = [0, 0], sizes = [16, 32], strides = [1, 1]} : vector<16x96xf32> to vector<16x32xf32>
    %32 = vector.shape_cast %31 : vector<16x32xf32> to vector<2x8x4x8xf32>
    %33 = tpu.transpose %32, [0, 2, 1, 3] : vector<2x8x4x8xf32> -> vector<2x4x8x8xf32>
    %34 = vector.shape_cast %33 : vector<2x4x8x8xf32> to vector<8x8x8xf32>
    %35 = vector.extract_strided_slice %30 {offsets = [0, 32], sizes = [16, 32], strides = [1, 1]} : vector<16x96xf32> to vector<16x32xf32>
    %36 = vector.shape_cast %35 : vector<16x32xf32> to vector<2x8x4x8xf32>
    %37 = tpu.transpose %36, [0, 2, 1, 3] : vector<2x8x4x8xf32> -> vector<2x4x8x8xf32>
    %38 = vector.shape_cast %37 : vector<2x4x8x8xf32> to vector<8x8x8xf32>
    %39 = vector.extract_strided_slice %30 {offsets = [0, 64], sizes = [16, 32], strides = [1, 1]} : vector<16x96xf32> to vector<16x32xf32>
    %40 = vector.shape_cast %39 : vector<16x32xf32> to vector<2x8x4x8xf32>
    %41 = tpu.transpose %40, [0, 2, 1, 3] : vector<2x8x4x8xf32> -> vector<2x4x8x8xf32>
    %42 = vector.shape_cast %41 : vector<2x4x8x8xf32> to vector<8x8x8xf32>
    "tpu.trace_start"() <{level = 10 : i32, message = "hqd,hkd->hqk"}> : () -> ()
    %cst_15 = arith.constant dense<0.000000e+00> : vector<8x8x8xf32>
    %43 = tpu.matmul %34, %38, %cst_15 {dimension_numbers = #tpu.dot_dimension_numbers<[2], [2], [1], [1], [0, 0, 0, 1, 1, 1], [0], [0]>} : vector<8x8x8xf32>, vector<8x8x8xf32>, vector<8x8x8xf32> -> vector<8x8x8xf32>
    "tpu.trace_stop"() : () -> ()
    %cst_16 = arith.constant dense<0xFF800000> : vector<8x8xf32>
    %44 = vector.multi_reduction <maximumf>, %43, %cst_16 [2] : vector<8x8x8xf32> to vector<8x8xf32>
    %45 = vector.shape_cast %44 : vector<8x8xf32> to vector<8x8x1xf32>
    %46 = vector.broadcast %45 : vector<8x8x1xf32> to vector<8x8x8xf32>
    %47 = arith.subf %43, %46 : vector<8x8x8xf32>
    %48 = math.exp %47 : vector<8x8x8xf32>
    %cst_17 = arith.constant dense<0.000000e+00> : vector<8x8xf32>
    %49 = vector.multi_reduction <add>, %48, %cst_17 [2] : vector<8x8x8xf32> to vector<8x8xf32>
    %50 = vector.shape_cast %49 : vector<8x8xf32> to vector<8x8x1xf32>
    %51 = vector.broadcast %50 : vector<8x8x1xf32> to vector<8x8x8xf32>
    %52 = arith.divf %48, %51 : vector<8x8x8xf32>
    "tpu.trace_start"() <{level = 10 : i32, message = "hqk,hkd->hqd"}> : () -> ()
    %cst_18 = arith.constant dense<0.000000e+00> : vector<8x8x8xf32>
    %53 = tpu.matmul %52, %42, %cst_18 {dimension_numbers = #tpu.dot_dimension_numbers<[2], [1], [1], [2], [0, 0, 0, 1, 1, 2], [0], [0]>} : vector<8x8x8xf32>, vector<8x8x8xf32>, vector<8x8x8xf32> -> vector<8x8x8xf32>
    "tpu.trace_stop"() : () -> ()
    %54 = vector.shape_cast %53 : vector<8x8x8xf32> to vector<2x4x8x8xf32>
    %55 = tpu.transpose %54, [0, 2, 1, 3] : vector<2x4x8x8xf32> -> vector<2x8x4x8xf32>
    %56 = vector.shape_cast %55 : vector<2x8x4x8xf32> to vector<16x32xf32>
    %c0_19 = arith.constant 0 : index
    %c0_20 = arith.constant 0 : index
    %57 = vector.load %arg6[%c0_19, %c0_20] : memref<32x32xf32, #tpu.memory_space<vmem>>, vector<32x32xf32>
    %cst_21 = arith.constant dense<0.000000e+00> : vector<16x32xf32>
    %58 = tpu.matmul %56, %57, %cst_21 {dimension_numbers = #tpu.dot_dimension_numbers<[1], [0], [0], [1], [0, 0, 1, 1], [], []>} : vector<16x32xf32>, vector<32x32xf32>, vector<16x32xf32> -> vector<16x32xf32>
    %c0_22 = arith.constant 0 : index
    %c0_23 = arith.constant 0 : index
    %59 = vector.load %arg7[%c0_22, %c0_23] : memref<1x32xf32, #tpu.memory_space<vmem>>, vector<1x32xf32>
    %60 = vector.broadcast %59 : vector<1x32xf32> to vector<16x32xf32>
    %61 = arith.addf %58, %60 : vector<16x32xf32>
    %62 = arith.addf %1, %61 : vector<16x32xf32>
    %c0_24 = arith.constant 0 : index
    %c0_25 = arith.constant 0 : index
    %63 = vector.load %arg8[%c0_24, %c0_25] : memref<1x32xf32, #tpu.memory_space<vmem>>, vector<1x32xf32>
    %c0_26 = arith.constant 0 : index
    %c0_27 = arith.constant 0 : index
    %64 = vector.load %arg9[%c0_26, %c0_27] : memref<1x32xf32, #tpu.memory_space<vmem>>, vector<1x32xf32>
    %cst_28 = arith.constant dense<0.000000e+00> : vector<16xf32>
    %65 = vector.multi_reduction <add>, %62, %cst_28 [1] : vector<16x32xf32> to vector<16xf32>
    %66 = vector.shape_cast %65 : vector<16xf32> to vector<16x1xf32>
    %cst_29 = arith.constant 3.200000e+01 : f32
    %67 = vector.broadcast %cst_29 : f32 to vector<16x1xf32>
    %68 = arith.divf %66, %67 : vector<16x1xf32>
    %69 = vector.broadcast %68 : vector<16x1xf32> to vector<16x32xf32>
    %70 = arith.subf %62, %69 : vector<16x32xf32>
    %71 = arith.mulf %70, %70 : vector<16x32xf32>
    %cst_30 = arith.constant dense<0.000000e+00> : vector<16xf32>
    %72 = vector.multi_reduction <add>, %71, %cst_30 [1] : vector<16x32xf32> to vector<16xf32>
    %73 = vector.shape_cast %72 : vector<16xf32> to vector<16x1xf32>
    %cst_31 = arith.constant 3.200000e+01 : f32
    %74 = vector.broadcast %cst_31 : f32 to vector<16x1xf32>
    %75 = arith.divf %73, %74 : vector<16x1xf32>
    %76 = vector.broadcast %68 : vector<16x1xf32> to vector<16x32xf32>
    %77 = arith.subf %62, %76 : vector<16x32xf32>
    %cst_32 = arith.constant 9.99999974E-6 : f32
    %78 = vector.broadcast %cst_32 : f32 to vector<16x1xf32>
    %79 = arith.addf %75, %78 : vector<16x1xf32>
    %80 = math.rsqrt %79 : vector<16x1xf32>
    %81 = vector.broadcast %80 : vector<16x1xf32> to vector<16x32xf32>
    %82 = arith.mulf %77, %81 : vector<16x32xf32>
    %83 = vector.broadcast %63 : vector<1x32xf32> to vector<16x32xf32>
    %84 = arith.mulf %82, %83 : vector<16x32xf32>
    %85 = vector.broadcast %64 : vector<1x32xf32> to vector<16x32xf32>
    %86 = arith.addf %84, %85 : vector<16x32xf32>
    %c0_33 = arith.constant 0 : index
    %c0_34 = arith.constant 0 : index
    %87 = vector.load %arg10[%c0_33, %c0_34] : memref<32x128xf32, #tpu.memory_space<vmem>>, vector<32x128xf32>
    %cst_35 = arith.constant dense<0.000000e+00> : vector<16x128xf32>
    %88 = tpu.matmul %86, %87, %cst_35 {dimension_numbers = #tpu.dot_dimension_numbers<[1], [0], [0], [1], [0, 0, 1, 1], [], []>} : vector<16x32xf32>, vector<32x128xf32>, vector<16x128xf32> -> vector<16x128xf32>
    %c0_36 = arith.constant 0 : index
    %c0_37 = arith.constant 0 : index
    %89 = vector.load %arg11[%c0_36, %c0_37] : memref<1x128xf32, #tpu.memory_space<vmem>>, vector<1x128xf32>
    %90 = vector.broadcast %89 : vector<1x128xf32> to vector<16x128xf32>
    %91 = arith.addf %88, %90 : vector<16x128xf32>
    %cst_38 = arith.constant 1.702000e+00 : f32
    %92 = vector.broadcast %cst_38 : f32 to vector<16x128xf32>
    %93 = arith.mulf %92, %91 : vector<16x128xf32>
    %94 = arith.negf %93 : vector<16x128xf32>
    %95 = math.exp %94 : vector<16x128xf32>
    %cst_39 = arith.constant 1.000000e+00 : f32
    %96 = vector.broadcast %cst_39 : f32 to vector<16x128xf32>
    %97 = arith.addf %96, %95 : vector<16x128xf32>
    %98 = arith.divf %96, %97 : vector<16x128xf32>
    %99 = arith.mulf %91, %98 : vector<16x128xf32>
    %c0_40 = arith.constant 0 : index
    %c0_41 = arith.constant 0 : index
    %100 = vector.load %arg12[%c0_40, %c0_41] : memref<128x32xf32, #tpu.memory_space<vmem>>, vector<128x32xf32>
    %cst_42 = arith.constant dense<0.000000e+00> : vector<16x32xf32>
    %101 = tpu.matmul %99, %100, %cst_42 {dimension_numbers = #tpu.dot_dimension_numbers<[1], [0], [0], [1], [0, 0, 1, 1], [], []>} : vector<16x128xf32>, vector<128x32xf32>, vector<16x32xf32> -> vector<16x32xf32>
    %c0_43 = arith.constant 0 : index
    %c0_44 = arith.constant 0 : index
    %102 = vector.load %arg13[%c0_43, %c0_44] : memref<1x32xf32, #tpu.memory_space<vmem>>, vector<1x32xf32>
    %103 = vector.broadcast %102 : vector<1x32xf32> to vector<16x32xf32>
    %104 = arith.addf %101, %103 : vector<16x32xf32>
    %105 = arith.addf %62, %104 : vector<16x32xf32>
    %106 = vector.shape_cast %105 : vector<16x32xf32> to vector<2x8x32xf32>
    %c0_45 = arith.constant 0 : index
    %c0_46 = arith.constant 0 : index
    %c0_47 = arith.constant 0 : index
    %107 = vector.load %arg14[%c0_45, %c0_46, %c0_47] : memref<2x8x32xf32, #tpu.memory_space<vmem>>, vector<2x8x32xf32>
    tpu.vector_store %arg14[%c0_45, %c0_46, %c0_47], %106 {strides = array<i32>} : memref<2x8x32xf32, #tpu.memory_space<vmem>>, vector<2x8x32xf32>,
    return
  }
  func.func @transform_0(%arg0: i32) -> (i32, i32, i32) {
    %c0_i32 = arith.constant 0 : i32
    %c0_i32_0 = arith.constant 0 : i32
    %c0_i32_1 = arith.constant 0 : i32
    return %arg0, %c0_i32, %c0_i32_0 : i32, i32, i32
  }
  func.func @transform_1(%arg0: i32) -> (i32, i32) {
    %c0_i32 = arith.constant 0 : i32
    %c0_i32_0 = arith.constant 0 : i32
    %c0_i32_1 = arith.constant 0 : i32
    return %c0_i32, %c0_i32_0 : i32, i32
  }
  func.func @transform_2(%arg0: i32) -> (i32, i32) {
    %c0_i32 = arith.constant 0 : i32
    %c0_i32_0 = arith.constant 0 : i32
    %c0_i32_1 = arith.constant 0 : i32
    return %c0_i32, %c0_i32_0 : i32, i32
  }
  func.func @transform_3(%arg0: i32) -> (i32, i32) {
    %c0_i32 = arith.constant 0 : i32
    %c0_i32_0 = arith.constant 0 : i32
    %c0_i32_1 = arith.constant 0 : i32
    return %c0_i32, %c0_i32_0 : i32, i32
  }
  func.func @transform_4(%arg0: i32) -> (i32, i32) {
    %c0_i32 = arith.constant 0 : i32
    %c0_i32_0 = arith.constant 0 : i32
    %c0_i32_1 = arith.constant 0 : i32
    return %c0_i32, %c0_i32_0 : i32, i32
  }
  func.func @transform_5(%arg0: i32) -> (i32, i32) {
    %c0_i32 = arith.constant 0 : i32
    %c0_i32_0 = arith.constant 0 : i32
    %c0_i32_1 = arith.constant 0 : i32
    return %c0_i32, %c0_i32_0 : i32, i32
  }
  func.func @transform_6(%arg0: i32) -> (i32, i32) {
    %c0_i32 = arith.constant 0 : i32
    %c0_i32_0 = arith.constant 0 : i32
    %c0_i32_1 = arith.constant 0 : i32
    return %c0_i32, %c0_i32_0 : i32, i32
  }
  func.func @transform_7(%arg0: i32) -> (i32, i32) {
    %c0_i32 = arith.constant 0 : i32
    %c0_i32_0 = arith.constant 0 : i32
    %c0_i32_1 = arith.constant 0 : i32
    return %c0_i32, %c0_i32_0 : i32, i32
  }
  func.func @transform_8(%arg0: i32) -> (i32, i32) {
    %c0_i32 = arith.constant 0 : i32
    %c0_i32_0 = arith.constant 0 : i32
    %c0_i32_1 = arith.constant 0 : i32
    return %c0_i32, %c0_i32_0 : i32, i32
  }
  func.func @transform_9(%arg0: i32) -> (i32, i32) {
    %c0_i32 = arith.constant 0 : i32
    %c0_i32_0 = arith.constant 0 : i32
    %c0_i32_1 = arith.constant 0 : i32
    return %c0_i32, %c0_i32_0 : i32, i32
  }
  func.func @transform_10(%arg0: i32) -> (i32, i32) {
    %c0_i32 = arith.constant 0 : i32
    %c0_i32_0 = arith.constant 0 : i32
    %c0_i32_1 = arith.constant 0 : i32
    return %c0_i32, %c0_i32_0 : i32, i32
  }
  func.func @transform_11(%arg0: i32) -> (i32, i32) {
    %c0_i32 = arith.constant 0 : i32
    %c0_i32_0 = arith.constant 0 : i32
    %c0_i32_1 = arith.constant 0 : i32
    return %c0_i32, %c0_i32_0 : i32, i32
  }
  func.func @transform_12(%arg0: i32) -> (i32, i32) {
    %c0_i32 = arith.constant 0 : i32
    %c0_i32_0 = arith.constant 0 : i32
    %c0_i32_1 = arith.constant 0 : i32
    return %c0_i32, %c0_i32_0 : i32, i32
  }
  func.func @transform_13(%arg0: i32) -> (i32, i32, i32) {
    %c0_i32 = arith.constant 0 : i32
    %c0_i32_0 = arith.constant 0 : i32
    %c0_i32_1 = arith.constant 0 : i32
    return %arg0, %c0_i32, %c0_i32_0 : i32, i32, i32
  }
}

</mosaic_0001>

<bundles_post_ra>
// kernel: forward.3
= control target key start
LH: loop header
LB: loop body
LE: loop exit
PB: predicated region body
PF: predicated region fallthrough
CT: control target
= control target key end

     0   :  { %vm48_vm0 = vcmask 261120   ;;  %s3397_s25 = smov 104   ;;  %v3399_v46 = vmov 0.0   ;;  %vm3400_vm1 = vmmov 0   ;;  %v3401_v48 = vmov 1983009808   ;;  %s3994_s0 = inlined_call_operand.vmem [shape: f32[2,8,32], index: 0, kind: input, shape index: {}]   ;;  %s3995_s3 = inlined_call_operand.vmem [shape: f32[32,96], index: 3, kind: input, shape index: {}]   ;;  %s3996_s1 = inlined_call_operand.vmem [shape: f32[1,32], index: 1, kind: input, shape index: {}, may-alias: {1,7}]   ;;  %s3997_s2 = inlined_call_operand.vmem [shape: f32[1,32], index: 2, kind: input, shape index: {}, may-alias: {2,8}]   ;;  %s3998_s4 = inlined_call_operand.vmem [shape: f32[1,96], index: 4, kind: input, shape index: {}]   ;;  %s3999_s5 = inlined_call_operand.vmem [shape: f32[32,32], index: 5, kind: input, shape index: {}]   ;;  %s4000_s6 = inlined_call_operand.vmem [shape: f32[1,32], index: 6, kind: input, shape index: {}]   ;;  %s4001_s9 = inlined_call_operand.vmem [shape: f32[32,128], index: 9, kind: input, shape index: {}]   ;;  %s4002_s7 = inlined_call_operand.vmem [shape: f32[1,32], index: 7, kind: input, shape index: {}, may-alias: {1,7}]   ;;  %s4003_s8 = inlined_call_operand.vmem [shape: f32[1,32], index: 8, kind: input, shape index: {}, may-alias: {2,8}]   ;;  %s4004_s11 = inlined_call_operand.vmem [shape: f32[128,32], index: 11, kind: input, shape index: {}]   ;;  %s4005_s10 = inlined_call_operand.vmem [shape: f32[1,128], index: 10, kind: input, shape index: {}]   ;;  %s4006_s12 = inlined_call_operand.vmem [shape: f32[1,32], index: 12, kind: input, shape index: {}]   ;;  %s4007_s13 = inlined_call_operand.vmem [shape: f32[2,8,32], index: 13, kind: output, shape index: {}]  }
   0x1   :  { %v44_v0 = vld [vmem:[%s3994_s0] sm:$0xff]  ;;  %v45_v1 = vld [vmem:[%s3994_s0 + $0x8] sm:$0xff]  ;;  %v94_v16 = vld [vmem:[%s3995_s3 + $0x10] sm:$0xff]  ;;  %3150 = vmatprep.subr.mxu0 %v3399_v46  ;;  %3152 = vmatprep.mubr.msk.f32.mxu0 %vm3400_vm1, %v3399_v46  ;;  %v207_v49 = vunpack.c.l.s4 %v3401_v48  ;;  %v209_v50 = vlaneseq  ;;  %v3402_v53 = vmov 1934713408   ;;  %vm1068_vm2 = vcmask 64512  }
   0x2   :  { %v49_v2 = vsel %vm48_vm0, %v44_v0, 0.0  ;;  %v52_v3 = vsel %vm48_vm0, %v45_v1, 0.0  ;;  %v92_v14 = vld [vmem:[%s3995_s3] sm:$0xff]  ;;  %v93_v15 = vld [vmem:[%s3995_s3 + $0x8] sm:$0xff]  ;;  %v95_v18 = vld [vmem:[%s3995_s3 + $0x18] sm:$0xff]  ;;  %v239_v54 = vunpack.c.l.s4 %v3402_v53  ;;  %s3403_s26 = smov 64  }
   0x3   :  { %50 = vadd.xlane.f32.xlu0 %v49_v2  ;;  %v3277_v17 = vpack.c.bf16 %v93_v15, %v92_v14  ;;  %v3281_v19 = vpack.c.bf16 %v95_v18, %v94_v16  ;;  %v3005_v27 = vld [vmem:[%s3996_s1] ss:$0 sm:$0xff]  ;;  %s3395_s1 = smov 112   ;;  %v208_v51 = vunpack.c.0.s8 %v207_v49  ;;  %v210_v52 = vshrl.u32 %v209_v50, 7  ;;  %s3404_s27 = smov 8  }
   0x4   :  { %v3006_v29 = vld [vmem:[%s3997_s2] ss:$0 sm:$0xff]  ;;  %s3396_s2 = smov 120   ;;  %v240_v60 = vunpack.c.0.s8 %v239_v54  ;;  %s3405_s28 = smov 16   ;;  %vm2647_vm3 = vcmask 130048   ;;  %vm2650_vm4 = vcmask 195584  }
   0x5   :  { %3278 = vmatprep.subr.bf16.mxu1 %v3277_v17  ;;  %v3007_v36 = vld [vmem:[%s3998_s4] ss:$0 sm:$0xff]  ;;  %s3398_s4 = smov 96   ;;  %v3550_v57 = vsub.s32 %v208_v51, %v210_v52  ;;  %s3406_s29 = smov 24  }
   0x6   :  { %3280 = vmatpush3.bf16.msra.mxu1 %v3277_v17 }
   0x7   :  { %53 = vadd.xlane.f32.xlu0 %v52_v3  ;;  %3282 = vmatprep.subr.bf16.mxu1 %v3281_v19 }
   0xa   :  { %3284 = vmatpush3.bf16.msra.mxu1 %v3281_v19 }
   0xb   :  { %3140 = vmatprep.subr.mxu1 %v3399_v46 }
  0x90   :  { %v51_v4 = vpop.xlane.xlu0 %50 }
  0x91   :  { %v56_v5 = vmul.f32 0.03125, %v51_v4 }
  0x93   :  { %v58_v6 = vsub.f32 %v44_v0, %v56_v5 }
  0x94   :  { %v54_v7 = vpop.xlane.xlu0 %53 }
  0x95   :  { %v57_v8 = vmul.f32 0.03125, %v54_v7  ;;  %v60_v9 = vmul.f32 %v58_v6, %v58_v6 }
  0x97   :  { %v59_v10 = vsub.f32 %v45_v1, %v57_v8  ;;  %v62_v11 = vsel %vm48_vm0, %v60_v9, 0.0  ;;  %v3560_v1 = vsub.s32 %v240_v60, %v210_v52 }
  0x98   :  { %63 = vadd.xlane.f32.xlu1 %v62_v11 }
  0x99   :  { %v61_v12 = vmul.f32 %v59_v10, %v59_v10 }
  0x9b   :  { %v65_v13 = vsel %vm48_vm0, %v61_v12, 0.0 }
  0x9c   :  { %66 = vadd.xlane.f32.xlu1 %v65_v13 }
 0x125   :  { %v64_v20 = vpop.xlane.xlu1 %63 }
 0x126   :  { %v68_v21 = vmul.f32 0.03125, %v64_v20 }
 0x128   :  { %v70_v22 = vadd.f32 1e-05, %v68_v21 }
 0x129   :  { %v67_v23 = vpop.xlane.xlu1 %66 }
 0x12a   :  { %3345 = vrsqrt.f32 %v70_v22  ;;  %v69_v24 = vmul.f32 0.03125, %v67_v23 }
 0x12c   :  { %v71_v25 = vadd.f32 1e-05, %v69_v24 }
 0x12e   :  { %3347 = vrsqrt.f32 %v71_v25 }
 0x134   :  { %v3346_v26 = vpop.eup %3345 }
 0x135   :  { %v74_v28 = vmul.f32 %v3346_v26, %v58_v6 }
 0x137   :  { %v82_v30 = vmul.f32 %v3005_v27, %v74_v28 }
 0x138   :  { %v3348_v31 = vpop.eup %3347 }
 0x139   :  { %v75_v32 = vmul.f32 %v3348_v31, %v59_v10  ;;  %v90_v33 = vadd.f32 %v3006_v29, %v82_v30 }
 0x13b   :  { %v83_v34 = vmul.f32 %v3005_v27, %v75_v32  ;;  %3137 = vmatprep.mubr.msk.f32.mxu1 %vm48_vm0, %v90_v33 }
 0x13d   :  { %v91_v35 = vadd.f32 %v3006_v29, %v83_v34 }
 0x13f   :  { %3138 = vmatmul.mubr.msk.f32.vlgmr.msra.gmra.mrb[0].mxu1 %vm48_vm0, %v91_v35 }
 0x140   :  { %3142 = vmatprep.mubr.msk.f32.mxu1 %vm3400_vm1, %v3399_v46 }
 0x212   :  { %v3139_v37 = vpop.f32.mrb[0].mxu1 }
 0x213   :  { %v175_v38 = vpop.f32.mrb[1].mxu1  ;;  %v3514_v40 = vadd.f32 %v3139_v37, %v3007_v36 }
 0x214   :  { %v3510_v39 = vadd.f32 %v3007_v36, %v175_v38 }
 0x216   :  { %192 = vrot.lane.b32.xlu1 %v3510_v39, %s3395_s1  ;;  %186 = vrot.lane.b32.xlu0 %v3510_v39, %s3396_s2 }
 0x21a   :  { %198 = vrot.lane.b32.xlu1 %v3510_v39, %s3397_s25  ;;  %194 = vrot.lane.b32.xlu0 %v3514_v40, %s3395_s1 }
 0x21e   :  { %188 = vrot.lane.b32.xlu1 %v3514_v40, %s3396_s2  ;;  %476 = vrot.lane.b32.xlu0 %v3510_v39, %s3398_s4 }
 0x222   :  { %200 = vrot.lane.b32.xlu1 %v3514_v40, %s3397_s25 }
 0x288   :  { %v3521_v41 = vpop.permute.xlu1 %192  ;;  %v3523_v42 = vpop.permute.xlu0 %186 }
 0x289   :  { %484 = vrot.lane.b32.xlu0 %v3521_v41, %s3398_s4  ;;  %480 = vrot.lane.b32.xlu1 %v3523_v42, %s3398_s4  ;;  %v204_v58 = vcombine.low %v3510_v39, %v3521_v41  ;;  %v205_v59 = vcombine.high %v3510_v39, %v3521_v41 }
 0x28b   :  { %v212_v63 = vrot.slane %v204_v58, %v3550_v57  ;;  %v219_v0 = vrot.slane %v205_v59, %v3550_v57 }
 0x28c   :  { %v3527_v43 = vpop.permute.xlu1 %198  ;;  %v3531_v44 = vpop.permute.xlu0 %194 }
 0x28d   :  { %478 = vrot.lane.b32.xlu0 %v3514_v40, %s3398_s4  ;;  %488 = vrot.lane.b32.xlu1 %v3527_v43, %s3398_s4  ;;  %v220_v55 = vcombine.low %v3523_v42, %v3527_v43  ;;  %v221_v56 = vcombine.high %v3523_v42, %v3527_v43  ;;  %v272_v12 = vcombine.low %v3514_v40, %v3531_v44 }
 0x28e   :  { %v273_v18 = vcombine.high %v3514_v40, %v3531_v44 }
 0x28f   :  { %v228_v61 = vrot.slane %v220_v55, %v3550_v57  ;;  %v235_v62 = vrot.slane %v221_v56, %v3550_v57  ;;  %v280_v21 = vrot.slane %v272_v12, %v3550_v57 }
 0x290   :  { %v3533_v45 = vpop.permute.xlu1 %188  ;;  %v477_v13 = vpop.permute.xlu0 %476  ;;  %v287_v28 = vrot.slane %v273_v18, %v3550_v57 }
 0x291   :  { %486 = vrot.lane.b32.xlu0 %v3531_v44, %s3398_s4  ;;  %482 = vrot.lane.b32.xlu1 %v3533_v45, %s3398_s4  ;;  %v236_v2 = vcombine.low %v212_v63, %v228_v61  ;;  %v237_v3 = vcombine.high %v212_v63, %v228_v61  ;;  %v252_v4 = vcombine.low %v219_v0, %v235_v62 }
 0x292   :  { %v253_v5 = vcombine.high %v219_v0, %v235_v62 }
 0x293   :  { %v244_v6 = vrot.slane %v236_v2, %v3560_v1  ;;  %v251_v7 = vrot.slane %v237_v3, %v3560_v1  ;;  %v260_v8 = vrot.slane %v252_v4, %v3560_v1 }
 0x294   :  { %v3538_v47 = vpop.permute.xlu1 %200  ;;  %v267_v9 = vrot.slane %v253_v5, %v3560_v1 }
 0x295   :  { %490 = vrot.lane.b32.xlu1 %v3538_v47, %s3398_s4  ;;  %v288_v10 = vcombine.low %v3533_v45, %v3538_v47  ;;  %v340_v11 = vcombine.low %v244_v6, %v251_v7  ;;  %v3010_v14 = vcombine.high %v244_v6, %v251_v7  ;;  %v289_v17 = vcombine.high %v3533_v45, %v3538_v47 }
 0x296   :  { %v356_v15 = vcombine.low %v260_v8, %v267_v9  ;;  %v3011_v16 = vcombine.high %v260_v8, %v267_v9 }
 0x297   :  { %v296_v19 = vrot.slane %v288_v10, %v3550_v57  ;;  %v347_v20 = vrot.slane %v340_v11, %v3550_v57  ;;  %v355_v24 = vrot.slane %v3010_v14, %v3550_v57  ;;  %v303_v27 = vrot.slane %v289_v17, %v3550_v57 }
 0x298   :  { %v363_v25 = vrot.slane %v356_v15, %v3550_v57  ;;  %v371_v26 = vrot.slane %v3011_v16, %v3550_v57 }
 0x299   :  { %v304_v29 = vcombine.low %v280_v21, %v296_v19  ;;  %v305_v30 = vcombine.high %v280_v21, %v296_v19  ;;  %v320_v34 = vcombine.low %v287_v28, %v303_v27  ;;  %v321_v35 = vcombine.high %v287_v28, %v303_v27 }
 0x29a   :  { %v372_v37 = vcombine.low %v347_v20, %v355_v24  ;;  %v388_v38 = vcombine.low %v363_v25, %v371_v26  ;;  %v373_v52 = vcombine.high %v347_v20, %v355_v24  ;;  %v389_v53 = vcombine.high %v363_v25, %v371_v26 }
 0x29b   :  { %v312_v50 = vrot.slane %v304_v29, %v3560_v1  ;;  %v319_v51 = vrot.slane %v305_v30, %v3560_v1  ;;  %v328_v59 = vrot.slane %v320_v34, %v3560_v1  ;;  %v335_v60 = vrot.slane %v321_v35, %v3560_v1 }
 0x29c   :  { %v3591_v62 = vrot.slane %v372_v37, %v3560_v1  ;;  %v3594_v63 = vrot.slane %v388_v38, %v3560_v1  ;;  %v3597_v8 = vrot.slane %v373_v52, %v3560_v1  ;;  %v3600_v9 = vrot.slane %v389_v53, %v3560_v1 }
 0x29d   :  { %v408_v6 = vcombine.low %v312_v50, %v319_v51  ;;  %v3012_v7 = vcombine.high %v312_v50, %v319_v51  ;;  %v424_v14 = vcombine.low %v328_v59, %v335_v60  ;;  %v3013_v15 = vcombine.high %v328_v59, %v335_v60 }
 0x29f   :  { %v3610_v24 = vrot.slane %v3012_v7, %v3550_v57 }
 0x2fb   :  { %v481_v22 = vpop.permute.xlu1 %480  ;;  %v485_v23 = vpop.permute.xlu0 %484 }
 0x2fc   :  { %v500_v31 = vcombine.low %v477_v13, %v485_v23  ;;  %v501_v32 = vcombine.high %v477_v13, %v485_v23  ;;  %v3607_v23 = vrot.slane %v408_v6, %v3550_v57 }
 0x2fe   :  { %v508_v54 = vrot.slane %v500_v31, %v3550_v57  ;;  %v515_v55 = vrot.slane %v501_v32, %v3550_v57 }
 0x2ff   :  { %v479_v33 = vpop.permute.xlu0 %478  ;;  %v489_v36 = vpop.permute.xlu1 %488 }
 0x300   :  { %v516_v48 = vcombine.low %v481_v22, %v489_v36  ;;  %v517_v49 = vcombine.high %v481_v22, %v489_v36 }
 0x302   :  { %v524_v56 = vrot.slane %v516_v48, %v3550_v57  ;;  %v531_v58 = vrot.slane %v517_v49, %v3550_v57 }
 0x303   :  { %v483_v61 = vpop.permute.xlu1 %482  ;;  %v487_v5 = vpop.permute.xlu0 %486 }
 0x304   :  { %v532_v0 = vcombine.low %v508_v54, %v524_v56  ;;  %v533_v2 = vcombine.high %v508_v54, %v524_v56  ;;  %v548_v3 = vcombine.low %v515_v55, %v531_v58  ;;  %v549_v4 = vcombine.high %v515_v55, %v531_v58 }
 0x305   :  { %v568_v16 = vcombine.low %v479_v33, %v487_v5  ;;  %v569_v17 = vcombine.high %v479_v33, %v487_v5 }
 0x306   :  { %v540_v10 = vrot.slane %v532_v0, %v3560_v1  ;;  %v547_v11 = vrot.slane %v533_v2, %v3560_v1  ;;  %v556_v12 = vrot.slane %v548_v3, %v3560_v1  ;;  %v563_v13 = vrot.slane %v549_v4, %v3560_v1 }
 0x307   :  { %v491_v18 = vpop.permute.xlu1 %490  ;;  %v576_v31 = vrot.slane %v568_v16, %v3550_v57  ;;  %v583_v32 = vrot.slane %v569_v17, %v3550_v57  ;;  %v439_v0 = vrot.slane %v3013_v15, %v3550_v57  ;;  %v406_v15 = vcombine.low %v3597_v8, %v3600_v9 }
 0x308   :  { %v636_v19 = vcombine.low %v540_v10, %v547_v11  ;;  %v3014_v20 = vcombine.high %v540_v10, %v547_v11  ;;  %v652_v21 = vcombine.low %v556_v12, %v563_v13  ;;  %v3015_v22 = vcombine.high %v556_v12, %v563_v13 }
 0x309   :  { %v584_v25 = vcombine.low %v483_v61, %v491_v18  ;;  %v585_v26 = vcombine.high %v483_v61, %v491_v18  ;;  %v431_v61 = vrot.slane %v424_v14, %v3550_v57  ;;  %v404_v10 = vcombine.low %v3591_v62, %v3594_v63 }
 0x30a   :  { %v643_v27 = vrot.slane %v636_v19, %v3550_v57  ;;  %v651_v28 = vrot.slane %v3014_v20, %v3550_v57  ;;  %v659_v29 = vrot.slane %v652_v21, %v3550_v57  ;;  %v667_v30 = vrot.slane %v3015_v22, %v3550_v57 }
 0x30b   :  { %v592_v33 = vrot.slane %v584_v25, %v3550_v57  ;;  %v599_v34 = vrot.slane %v585_v26, %v3550_v57  ;;  %v440_v17 = vcombine.low %v3607_v23, %v3610_v24  ;;  %v456_v18 = vcombine.low %v431_v61, %v439_v0 }
 0x30c   :  { %v668_v35 = vcombine.low %v643_v27, %v651_v28  ;;  %v684_v36 = vcombine.low %v659_v29, %v667_v30  ;;  %v669_v37 = vcombine.high %v643_v27, %v651_v28  ;;  %v685_v38 = vcombine.high %v659_v29, %v667_v30 }
 0x30d   :  { %v600_v48 = vcombine.low %v576_v31, %v592_v33  ;;  %v601_v49 = vcombine.high %v576_v31, %v592_v33  ;;  %v616_v50 = vcombine.low %v583_v32, %v599_v34  ;;  %v617_v51 = vcombine.high %v583_v32, %v599_v34 }
 0x30e   :  { %v676_v52 = vrot.slane %v668_v35, %v3560_v1  ;;  %v692_v53 = vrot.slane %v684_v36, %v3560_v1  ;;  %v683_v54 = vrot.slane %v669_v37, %v3560_v1  ;;  %v699_v55 = vrot.slane %v685_v38, %v3560_v1 }
 0x30f   :  { %v608_v56 = vrot.slane %v600_v48, %v3560_v1  ;;  %v615_v58 = vrot.slane %v601_v49, %v3560_v1  ;;  %v624_v59 = vrot.slane %v616_v50, %v3560_v1  ;;  %v631_v60 = vrot.slane %v617_v51, %v3560_v1 }
 0x310   :  { %v700_v2 = vcombine.low %v676_v52, %v692_v53  ;;  %v702_v3 = vcombine.low %v683_v54, %v699_v55  ;;  %v701_v16 = vcombine.high %v676_v52, %v692_v53  ;;  %v405_v25 = vcombine.high %v3591_v62, %v3594_v63 }
 0x311   :  { %v704_v4 = vcombine.low %v608_v56, %v615_v58  ;;  %v3016_v5 = vcombine.high %v608_v56, %v615_v58  ;;  %v720_v6 = vcombine.low %v624_v59, %v631_v60  ;;  %v3017_v7 = vcombine.high %v624_v59, %v631_v60 }
 0x312   :  { %3141 = vmatpush3.xpose.msk.msra.mxu1 %vm1068_vm2, %v700_v2  ;;  %3151 = vmatpush3.xpose.msk.msra.mxu0 %vm1068_vm2, %v702_v3  ;;  %v441_v28 = vcombine.high %v3607_v23, %v3610_v24  ;;  %v703_v29 = vcombine.high %v683_v54, %v699_v55  ;;  %v448_v30 = vrot.slane %v440_v17, %v3560_v1 }
 0x313   :  { %v711_v11 = vrot.slane %v704_v4, %v3550_v57  ;;  %v719_v12 = vrot.slane %v3016_v5, %v3550_v57  ;;  %v727_v13 = vrot.slane %v720_v6, %v3550_v57  ;;  %v735_v14 = vrot.slane %v3017_v7, %v3550_v57  ;;  %3145 = vmatprep.subr.mxu1 %v3399_v46 }
 0x314   :  { %3160 = vmatprep.subr.mxu0 %v3399_v46  ;;  %v464_v62 = vrot.slane %v456_v18, %v3560_v1  ;;  %v457_v63 = vcombine.high %v431_v61, %v439_v0  ;;  %v407_v23 = vcombine.high %v3597_v8, %v3600_v9  ;;  %v455_v35 = vrot.slane %v441_v28, %v3560_v1 }
 0x315   :  { %v736_v19 = vcombine.low %v711_v11, %v719_v12  ;;  %v737_v20 = vcombine.high %v711_v11, %v719_v12  ;;  %v752_v21 = vcombine.low %v727_v13, %v735_v14  ;;  %v753_v22 = vcombine.high %v727_v13, %v735_v14  ;;  %3143 = vmatmul.mubr.msk.f32.vlgmr.msra.gmra.mrb[2].mxu1 %vm1068_vm2, %v404_v10 }
 0x316   :  { %3153 = vmatmul.mubr.msk.f32.vlgmr.msra.gmra.mrb[0].mxu0 %vm1068_vm2, %v406_v15  ;;  %3146 = vmatpush3.xpose.msk.msra.mxu1 %vm1068_vm2, %v701_v16  ;;  %v472_v24 = vcombine.low %v448_v30, %v464_v62  ;;  %v471_v36 = vrot.slane %v457_v63, %v3560_v1  ;;  %v473_v8 = vcombine.high %v448_v30, %v464_v62 }
 0x317   :  { %3147 = vmatprep.mubr.msk.f32.mxu1 %vm3400_vm1, %v3399_v46  ;;  %3155 = vmatprep.subr.mxu1 %v3399_v46  ;;  %v744_v26 = vrot.slane %v736_v19, %v3560_v1  ;;  %v760_v27 = vrot.slane %v752_v21, %v3560_v1  ;;  %v751_v32 = vrot.slane %v737_v20, %v3560_v1 }
 0x318   :  { %3162 = vmatprep.mubr.msk.f32.mxu0 %vm3400_vm1, %v3399_v46  ;;  %v767_v33 = vrot.slane %v753_v22, %v3560_v1  ;;  %v474_v9 = vcombine.low %v455_v35, %v471_v36  ;;  %v475_v48 = vcombine.high %v455_v35, %v471_v36 }
 0x319   :  { %3148 = vmatmul.mubr.msk.f32.vlgmr.msra.gmra.mrb[4].mxu1 %vm1068_vm2, %v405_v25  ;;  %v768_v31 = vcombine.low %v744_v26, %v760_v27  ;;  %v769_v34 = vcombine.high %v744_v26, %v760_v27 }
 0x31a   :  { %3156 = vmatpush3.xpose.msk.msra.mxu1 %vm1068_vm2, %v703_v29  ;;  %3157 = vmatprep.mubr.msk.f32.mxu1 %vm3400_vm1, %v3399_v46  ;;  %v770_v37 = vcombine.low %v751_v32, %v767_v33  ;;  %v771_v38 = vcombine.high %v751_v32, %v767_v33 }
 0x31b   :  { %3161 = vmatpush3.xpose.msk.msra.mxu0 %vm1068_vm2, %v768_v31  ;;  %3165 = vmatprep.subr.mxu1 %v3399_v46 }
 0x31c   :  { %3170 = vmatprep.subr.mxu0 %v3399_v46 }
 0x31d   :  { %3158 = vmatmul.mubr.msk.f32.vlgmr.msra.gmra.mrb[6].mxu1 %vm1068_vm2, %v407_v23 }
 0x31e   :  { %3163 = vmatmul.mubr.msk.f32.vlgmr.msra.gmra.mrb[2].mxu0 %vm1068_vm2, %v472_v24  ;;  %3166 = vmatpush3.xpose.msk.msra.mxu1 %vm1068_vm2, %v769_v34 }
 0x31f   :  { %3171 = vmatpush3.xpose.msk.msra.mxu0 %vm1068_vm2, %v770_v37  ;;  %3167 = vmatprep.mubr.msk.f32.mxu1 %vm3400_vm1, %v3399_v46 }
 0x320   :  { %3172 = vmatprep.mubr.msk.f32.mxu0 %vm3400_vm1, %v3399_v46  ;;  %3175 = vmatprep.subr.mxu1 %v3399_v46 }
 0x321   :  { %3168 = vmatmul.mubr.msk.f32.vlgmr.msra.gmra.mrb[8].mxu1 %vm1068_vm2, %v473_v8  ;;  %3180 = vmatprep.subr.mxu0 %v3399_v46 }
 0x322   :  { %3173 = vmatmul.mubr.msk.f32.vlgmr.msra.gmra.mrb[4].mxu0 %vm1068_vm2, %v474_v9  ;;  %3176 = vmatpush3.xpose.msk.msra.mxu1 %vm1068_vm2, %v771_v38 }
 0x323   :  { %3177 = vmatprep.mubr.msk.f32.mxu1 %vm3400_vm1, %v3399_v46  ;;  %3185 = vmatprep.subr.mxu1 %v3399_v46 }
 0x324   :  { %3182 = vmatprep.mubr.msk.f32.mxu0 %vm3400_vm1, %v3399_v46 }
 0x325   :  { %3178 = vmatmul.mubr.msk.f32.vlgmr.msra.gmra.mrb[10].mxu1 %vm1068_vm2, %v475_v48 }
 0x326   :  { %3187 = vmatprep.mubr.msk.f32.mxu1 %vm3400_vm1, %v3399_v46 }
 0x3e8   :  { %v1141_v49 = vpop.f32.mrb[2].mxu1 }
 0x3e9   :  { %v1293_v50 = vpop.f32.mrb[0].mxu0  ;;  %v3144_v51 = vpop.f32.mrb[3].mxu1  ;;  %v1677_v52 = vsel %vm1068_vm2, %v1141_v49, -inf }
 0x3ea   :  { %v3154_v53 = vpop.f32.mrb[1].mxu0  ;;  %1678 = vmax.xlane.f32.xlu0 %v1677_v52  ;;  %v1683_v56 = vsel %vm1068_vm2, %v1293_v50, -inf }
 0x3ec   :  { %v1217_v54 = vpop.f32.mrb[4].mxu1 }
 0x3ed   :  { %v3149_v55 = vpop.f32.mrb[5].mxu1  ;;  %v1680_v58 = vsel %vm1068_vm2, %v1217_v54, -inf }
 0x3ee   :  { %1684 = vmax.xlane.f32.xlu0 %v1683_v56  ;;  %1681 = vmax.xlane.f32.xlu1 %v1680_v58 }
 0x3f0   :  { %v1369_v59 = vpop.f32.mrb[6].mxu1 }
 0x3f1   :  { %v1445_v60 = vpop.f32.mrb[2].mxu0  ;;  %v3159_v61 = vpop.f32.mrb[7].mxu1  ;;  %v1686_v7 = vsel %vm1068_vm2, %v1369_v59, -inf }
 0x3f2   :  { %v3164_v0 = vpop.f32.mrb[3].mxu0  ;;  %v1689_v2 = vsel %vm1068_vm2, %v1445_v60, -inf }
 0x3f3   :  { %1690 = vmax.xlane.f32.xlu0 %v1689_v2 }
 0x3f4   :  { %v3698_v3 = vpop.f32.mrb[8].mxu1 }
 0x3f5   :  { %v1597_v4 = vpop.f32.mrb[4].mxu0  ;;  %v3169_v5 = vpop.f32.mrb[9].mxu1  ;;  %v1692_v13 = vsel %vm1068_vm2, %v3698_v3, -inf }
 0x3f6   :  { %v3174_v6 = vpop.f32.mrb[5].mxu0  ;;  %v1695_v12 = vsel %vm1068_vm2, %v1597_v4, -inf }
 0x3f7   :  { %1687 = vmax.xlane.f32.xlu0 %v1686_v7 }
 0x3f8   :  { %v3701_v10 = vpop.f32.mrb[10].mxu1 }
 0x3f9   :  { %v3179_v11 = vpop.f32.mrb[11].mxu1  ;;  %v1698_v14 = vsel %vm1068_vm2, %v3701_v10, -inf }
 0x3fb   :  { %1696 = vmax.xlane.f32.xlu0 %v1695_v12 }
 0x3ff   :  { %776 = vrot.lane.b32.xlu1 %v3523_v42, %s3403_s26 }
 0x403   :  { %780 = vrot.lane.b32.xlu1 %v3521_v41, %s3403_s26 }
 0x411   :  { %772 = vrot.lane.b32.xlu0 %v3510_v39, %s3403_s26 }
 0x427   :  { %1693 = vmax.xlane.f32.xlu1 %v1692_v13 }
 0x42b   :  { %1699 = vmax.xlane.f32.xlu1 %v1698_v14 }
 0x43c   :  { %784 = vrot.lane.b32.xlu1 %v3527_v43, %s3403_s26 }
 0x477   :  { %v1679_v15 = vpop.xlane.xlu0 %1678 }
 0x478   :  { %v1701_v16 = vsub.f32 %v1141_v49, %v1679_v15 }
 0x47a   :  { %v1709_v42 = vmul.f32 1.442695, %v1701_v16 }
 0x47b   :  { %v1682_v17 = vpop.xlane.xlu1 %1681  ;;  %v1685_v18 = vpop.xlane.xlu0 %1684 }
 0x47c   :  { %3349 = vpow2.f32 %v1709_v42  ;;  %v1702_v41 = vsub.f32 %v1217_v54, %v1682_v17  ;;  %v1703_v19 = vsub.f32 %v1293_v50, %v1685_v18 }
 0x47e   :  { %v1711_v39 = vmul.f32 1.442695, %v1702_v41  ;;  %v1713_v20 = vmul.f32 1.442695, %v1703_v19 }
 0x47f   :  { %v777_v9 = vpop.permute.xlu1 %776 }
 0x480   :  { %3351 = vpow2.f32 %v1711_v39  ;;  %v1691_v21 = vpop.xlane.xlu0 %1690 }
 0x481   :  { %3353 = vpow2.f32 %v1713_v20  ;;  %v1705_v22 = vsub.f32 %v1445_v60, %v1691_v21 }
 0x483   :  { %v1717_v25 = vmul.f32 1.442695, %v1705_v22  ;;  %v781_v38 = vpop.permute.xlu1 %780 }
 0x484   :  { %v1688_v26 = vpop.xlane.xlu0 %1687 }
 0x485   :  { %3355 = vpow2.f32 %v1717_v25  ;;  %v1704_v27 = vsub.f32 %v1369_v59, %v1688_v26 }
 0x486   :  { %v3716_v28 = vpop.eup %3349 }
 0x487   :  { %v1715_v43 = vmul.f32 1.442695, %v1704_v27  ;;  %v1725_v29 = vsel %vm1068_vm2, %v3716_v28, 0.0 }
 0x488   :  { %v1697_v30 = vpop.xlane.xlu0 %1696  ;;  %1726 = vadd.xlane.f32.xlu0 %v1725_v29 }
 0x489   :  { %3357 = vpow2.f32 %v1715_v43  ;;  %v1707_v62 = vsub.f32 %v1597_v4, %v1697_v30 }
 0x48a   :  { %v3720_v63 = vpop.eup %3351 }
 0x48b   :  { %v3722_v31 = vpop.eup %3353  ;;  %v1721_v32 = vmul.f32 1.442695, %v1707_v62  ;;  %v1728_v33 = vsel %vm1068_vm2, %v3720_v63, 0.0 }
 0x48c   :  { %1729 = vadd.xlane.f32.xlu1 %v1728_v33  ;;  %v1731_v23 = vsel %vm1068_vm2, %v3722_v31, 0.0  ;;  %v773_v51 = vpop.permute.xlu0 %772 }
 0x48d   :  { %3359 = vpow2.f32 %v1721_v32  ;;  %1732 = vadd.xlane.f32.xlu0 %v1731_v23  ;;  %v796_v54 = vcombine.low %v773_v51, %v781_v38  ;;  %v797_v55 = vcombine.high %v773_v51, %v781_v38 }
 0x48f   :  { %v3728_v24 = vpop.eup %3355  ;;  %v804_v61 = vrot.slane %v796_v54, %v3550_v57  ;;  %v811_v0 = vrot.slane %v797_v55, %v3550_v57 }
 0x490   :  { %v1737_v34 = vsel %vm1068_vm2, %v3728_v24, 0.0 }
 0x491   :  { %1738 = vadd.xlane.f32.xlu0 %v1737_v34 }
 0x493   :  { %v3732_v35 = vpop.eup %3357 }
 0x494   :  { %v1734_v36 = vsel %vm1068_vm2, %v3732_v35, 0.0 }
 0x495   :  { %1735 = vadd.xlane.f32.xlu1 %v1734_v36 }
 0x497   :  { %v3736_v37 = vpop.eup %3359 }
 0x498   :  { %v1743_v8 = vsel %vm1068_vm2, %v3736_v37, 0.0 }
 0x499   :  { %1744 = vadd.xlane.f32.xlu0 %v1743_v8 }
 0x4b4   :  { %v1694_v48 = vpop.xlane.xlu1 %1693 }
 0x4b5   :  { %v1706_v49 = vsub.f32 %v3698_v3, %v1694_v48 }
 0x4b7   :  { %v1719_v50 = vmul.f32 1.442695, %v1706_v49 }
 0x4b8   :  { %v1700_v52 = vpop.xlane.xlu1 %1699 }
 0x4b9   :  { %3361 = vpow2.f32 %v1719_v50  ;;  %v1708_v53 = vsub.f32 %v3701_v10, %v1700_v52 }
 0x4bb   :  { %v1723_v56 = vmul.f32 1.442695, %v1708_v53 }
 0x4bc   :  { %v785_v58 = vpop.permute.xlu1 %784 }
 0x4bd   :  { %3363 = vpow2.f32 %v1723_v56  ;;  %v812_v59 = vcombine.low %v777_v9, %v785_v58  ;;  %v813_v60 = vcombine.high %v777_v9, %v785_v58 }
 0x4bf   :  { %v820_v2 = vrot.slane %v812_v59, %v3550_v57  ;;  %v827_v3 = vrot.slane %v813_v60, %v3550_v57 }
 0x4c1   :  { %v828_v4 = vcombine.low %v804_v61, %v820_v2  ;;  %v829_v5 = vcombine.high %v804_v61, %v820_v2  ;;  %v844_v6 = vcombine.low %v811_v0, %v827_v3  ;;  %v845_v7 = vcombine.high %v811_v0, %v827_v3 }
 0x4c3   :  { %v3746_v10 = vpop.eup %3361  ;;  %v836_v11 = vrot.slane %v828_v4, %v3560_v1  ;;  %v843_v12 = vrot.slane %v829_v5, %v3560_v1  ;;  %v852_v13 = vrot.slane %v844_v6, %v3560_v1  ;;  %v859_v14 = vrot.slane %v845_v7, %v3560_v1 }
 0x4c4   :  { %v1740_v15 = vsel %vm1068_vm2, %v3746_v10, 0.0 }
 0x4c5   :  { %v932_v16 = vcombine.low %v836_v11, %v843_v12  ;;  %v3018_v42 = vcombine.high %v836_v11, %v843_v12  ;;  %v948_v17 = vcombine.low %v852_v13, %v859_v14  ;;  %v3019_v18 = vcombine.high %v852_v13, %v859_v14  ;;  %1741 = vadd.xlane.f32.xlu1 %v1740_v15 }
 0x4c7   :  { %v3754_v41 = vpop.eup %3363  ;;  %v939_v19 = vrot.slane %v932_v16, %v3550_v57  ;;  %v947_v39 = vrot.slane %v3018_v42, %v3550_v57  ;;  %v955_v20 = vrot.slane %v948_v17, %v3550_v57  ;;  %v963_v21 = vrot.slane %v3019_v18, %v3550_v57 }
 0x4c8   :  { %v1746_v22 = vsel %vm1068_vm2, %v3754_v41, 0.0 }
 0x4c9   :  { %1747 = vadd.xlane.f32.xlu0 %v1746_v22  ;;  %v964_v25 = vcombine.low %v939_v19, %v947_v39  ;;  %v980_v26 = vcombine.low %v955_v20, %v963_v21  ;;  %v965_v27 = vcombine.high %v939_v19, %v947_v39  ;;  %v981_v43 = vcombine.high %v955_v20, %v963_v21 }
 0x4cb   :  { %v972_v29 = vrot.slane %v964_v25, %v3560_v1  ;;  %v988_v30 = vrot.slane %v980_v26, %v3560_v1  ;;  %v979_v62 = vrot.slane %v965_v27, %v3560_v1  ;;  %v995_v32 = vrot.slane %v981_v43, %v3560_v1 }
 0x4cd   :  { %v996_v33 = vcombine.low %v972_v29, %v988_v30  ;;  %v997_v23 = vcombine.high %v972_v29, %v988_v30  ;;  %v998_v34 = vcombine.low %v979_v62, %v995_v32  ;;  %v999_v36 = vcombine.high %v979_v62, %v995_v32 }
 0x4cf   :  { %3181 = vmatpush3.msra.mxu0 %v996_v33  ;;  %3186 = vmatpush3.msra.mxu1 %v997_v23 }
 0x4d0   :  { %3190 = vmatprep.subr.mxu0 %v3399_v46  ;;  %3195 = vmatprep.subr.mxu1 %v3399_v46 }
 0x4d6   :  { %778 = vrot.lane.b32.xlu1 %v3533_v45, %s3403_s26 }
 0x4da   :  { %782 = vrot.lane.b32.xlu1 %v3531_v44, %s3403_s26 }
 0x4de   :  { %786 = vrot.lane.b32.xlu1 %v3538_v47, %s3403_s26 }
 0x4df   :  { %774 = vrot.lane.b32.xlu0 %v3514_v40, %s3403_s26 }
 0x515   :  { %v1727_v8 = vpop.xlane.xlu0 %1726 }
 0x516   :  { %3365 = vrcp.f32 %v1727_v8 }
 0x519   :  { %v1730_v9 = vpop.xlane.xlu1 %1729 }
 0x51a   :  { %3367 = vrcp.f32 %v1730_v9  ;;  %v1733_v38 = vpop.xlane.xlu0 %1732 }
 0x51b   :  { %3369 = vrcp.f32 %v1733_v38 }
 0x520   :  { %v3366_v48 = vpop.eup %3365 }
 0x521   :  { %v1750_v49 = vmul.f32 %v3366_v48, %v3716_v28 }
 0x522   :  { %v1736_v50 = vpop.xlane.xlu1 %1735 }
 0x523   :  { %3371 = vrcp.f32 %v1736_v50  ;;  %3183 = vmatmul.mubr.msk.f32.vlgmr.msra.gmra.mrb[6].mxu0 %vm1068_vm2, %v1750_v49 }
 0x524   :  { %v3368_v44 = vpop.eup %3367  ;;  %3191 = vmatpush3.msra.mxu0 %v998_v34  ;;  %3192 = vmatprep.mubr.msk.f32.mxu0 %vm3400_vm1, %v3399_v46 }
 0x525   :  { %v3370_v45 = vpop.eup %3369  ;;  %v1752_v40 = vmul.f32 %v3368_v44, %v3720_v63  ;;  %3200 = vmatprep.subr.mxu0 %v3399_v46 }
 0x526   :  { %v1754_v47 = vmul.f32 %v3370_v45, %v3722_v31  ;;  %v1739_v31 = vpop.xlane.xlu0 %1738 }
 0x527   :  { %3188 = vmatmul.mubr.msk.f32.vlgmr.msra.gmra.mrb[12].mxu1 %vm1068_vm2, %v1752_v40  ;;  %3373 = vrcp.f32 %v1739_v31 }
 0x528   :  { %3193 = vmatmul.mubr.msk.f32.vlgmr.msra.gmra.mrb[8].mxu0 %vm1068_vm2, %v1754_v47  ;;  %3196 = vmatpush3.msra.mxu1 %v999_v36 }
 0x529   :  { %3197 = vmatprep.mubr.msk.f32.mxu1 %vm3400_vm1, %v3399_v46  ;;  %3205 = vmatprep.subr.mxu1 %v3399_v46 }
 0x52a   :  { %3202 = vmatprep.mubr.msk.f32.mxu0 %vm3400_vm1, %v3399_v46  ;;  %v1745_v51 = vpop.xlane.xlu0 %1744 }
 0x52d   :  { %v3372_v28 = vpop.eup %3371 }
 0x52e   :  { %v1756_v63 = vmul.f32 %v3372_v28, %v3732_v35 }
 0x530   :  { %3198 = vmatmul.mubr.msk.f32.vlgmr.msra.gmra.mrb[14].mxu1 %vm1068_vm2, %v1756_v63 }
 0x531   :  { %3207 = vmatprep.mubr.msk.f32.mxu1 %vm3400_vm1, %v3399_v46  ;;  %v3374_v22 = vpop.eup %3373 }
 0x532   :  { %v1758_v9 = vmul.f32 %v3374_v22, %v3728_v24 }
 0x552   :  { %v1742_v52 = vpop.xlane.xlu1 %1741 }
 0x553   :  { %3375 = vrcp.f32 %v1742_v52 }
 0x554   :  { %3377 = vrcp.f32 %v1745_v51 }
 0x556   :  { %v779_v53 = vpop.permute.xlu1 %778  ;;  %v1748_v54 = vpop.xlane.xlu0 %1747 }
 0x557   :  { %3379 = vrcp.f32 %v1748_v54 }
 0x55a   :  { %v783_v55 = vpop.permute.xlu1 %782  ;;  %v775_v56 = vpop.permute.xlu0 %774 }
 0x55b   :  { %v864_v58 = vcombine.low %v775_v56, %v783_v55  ;;  %v865_v59 = vcombine.high %v775_v56, %v783_v55 }
 0x55d   :  { %v872_v35 = vrot.slane %v864_v58, %v3550_v57  ;;  %v879_v2 = vrot.slane %v865_v59, %v3550_v57  ;;  %v3376_v29 = vpop.eup %3375 }
 0x55e   :  { %v787_v60 = vpop.permute.xlu1 %786  ;;  %v3378_v32 = vpop.eup %3377  ;;  %v1760_v38 = vmul.f32 %v3376_v29, %v3746_v10 }
 0x55f   :  { %v880_v61 = vcombine.low %v779_v53, %v787_v60  ;;  %v881_v0 = vcombine.high %v779_v53, %v787_v60  ;;  %v1762_v50 = vmul.f32 %v3378_v32, %v3736_v37 }
 0x561   :  { %v888_v3 = vrot.slane %v880_v61, %v3550_v57  ;;  %v895_v4 = vrot.slane %v881_v0, %v3550_v57  ;;  %v3380_v8 = vpop.eup %3379 }
 0x562   :  { %v1764_v44 = vmul.f32 %v3380_v8, %v3754_v41 }
 0x563   :  { %v896_v5 = vcombine.low %v872_v35, %v888_v3  ;;  %v897_v6 = vcombine.high %v872_v35, %v888_v3  ;;  %v912_v7 = vcombine.low %v879_v2, %v895_v4  ;;  %v913_v11 = vcombine.high %v879_v2, %v895_v4 }
 0x565   :  { %v904_v12 = vrot.slane %v896_v5, %v3560_v1  ;;  %v911_v13 = vrot.slane %v897_v6, %v3560_v1  ;;  %v920_v14 = vrot.slane %v912_v7, %v3560_v1  ;;  %v927_v15 = vrot.slane %v913_v11, %v3560_v1 }
 0x567   :  { %v1000_v16 = vcombine.low %v904_v12, %v911_v13  ;;  %v3020_v42 = vcombine.high %v904_v12, %v911_v13  ;;  %v1016_v17 = vcombine.low %v920_v14, %v927_v15  ;;  %v3021_v18 = vcombine.high %v920_v14, %v927_v15 }
 0x569   :  { %v1007_v19 = vrot.slane %v1000_v16, %v3550_v57  ;;  %v1015_v39 = vrot.slane %v3020_v42, %v3550_v57  ;;  %v1023_v20 = vrot.slane %v1016_v17, %v3550_v57  ;;  %v1031_v21 = vrot.slane %v3021_v18, %v3550_v57 }
 0x56b   :  { %v1032_v25 = vcombine.low %v1007_v19, %v1015_v39  ;;  %v1048_v26 = vcombine.low %v1023_v20, %v1031_v21  ;;  %v1033_v27 = vcombine.high %v1007_v19, %v1015_v39  ;;  %v1049_v43 = vcombine.high %v1023_v20, %v1031_v21 }
 0x56d   :  { %v1040_v30 = vrot.slane %v1032_v25, %v3560_v1  ;;  %v1056_v62 = vrot.slane %v1048_v26, %v3560_v1  ;;  %v1047_v33 = vrot.slane %v1033_v27, %v3560_v1  ;;  %v1063_v23 = vrot.slane %v1049_v43, %v3560_v1 }
 0x56f   :  { %v1064_v34 = vcombine.low %v1040_v30, %v1056_v62  ;;  %v1065_v36 = vcombine.high %v1040_v30, %v1056_v62  ;;  %v1066_v48 = vcombine.low %v1047_v33, %v1063_v23  ;;  %v1067_v49 = vcombine.high %v1047_v33, %v1063_v23 }
 0x571   :  { %3201 = vmatpush3.msra.mxu0 %v1064_v34  ;;  %3206 = vmatpush3.msra.mxu1 %v1065_v36 }
 0x572   :  { %3203 = vmatmul.mubr.msk.f32.vlgmr.msra.gmra.mrb[10].mxu0 %vm1068_vm2, %v1758_v9  ;;  %3208 = vmatmul.mubr.msk.f32.vlgmr.msra.gmra.mrb[16].mxu1 %vm1068_vm2, %v1760_v38 }
 0x573   :  { %3210 = vmatprep.subr.mxu0 %v3399_v46  ;;  %3215 = vmatprep.subr.mxu1 %v3399_v46 }
 0x574   :  { %3211 = vmatpush3.msra.mxu0 %v1066_v48  ;;  %3216 = vmatpush3.msra.mxu1 %v1067_v49 }
 0x575   :  { %3212 = vmatprep.mubr.msk.f32.mxu0 %vm3400_vm1, %v3399_v46  ;;  %3217 = vmatprep.mubr.msk.f32.mxu1 %vm3400_vm1, %v3399_v46 }
 0x576   :  { %3213 = vmatmul.mubr.msk.f32.vlgmr.msra.gmra.mrb[12].mxu0 %vm1068_vm2, %v1762_v50  ;;  %3218 = vmatmul.mubr.msk.f32.vlgmr.msra.gmra.mrb[18].mxu1 %vm1068_vm2, %v1764_v44 }
 0x5f6   :  { %v1834_v24 = vpop.f32.mrb[6].mxu0 }
 0x5f7   :  { %v3184_v10 = vpop.f32.mrb[7].mxu0 }
 0x5fa   :  { %v1907_v45 = vpop.f32.mrb[12].mxu1 }
 0x5fb   :  { %v1980_v40 = vpop.f32.mrb[8].mxu0  ;;  %v3189_v47 = vpop.f32.mrb[13].mxu1 }
 0x5fc   :  { %v2349_v37 = vcombine.low %v1834_v24, %v1980_v40  ;;  %v2350_v28 = vcombine.high %v1834_v24, %v1980_v40  ;;  %v3194_v41 = vpop.f32.mrb[9].mxu0  ;;  %v2654_v40 = vld [vmem:[%s3999_s5 + $0x8] sm:$0xff] }
 0x5fe   :  { %v2357_v53 = vrot.slane %v2349_v37, %v3550_v57  ;;  %v2364_v46 = vrot.slane %v2350_v28, %v3550_v57 }
 0x603   :  { %v2053_v63 = vpop.f32.mrb[14].mxu1 }
 0x604   :  { %v2365_v31 = vcombine.low %v1907_v45, %v2053_v63  ;;  %v2366_v51 = vcombine.high %v1907_v45, %v2053_v63  ;;  %v3199_v52 = vpop.f32.mrb[15].mxu1  ;;  %v2653_v45 = vld [vmem:[%s3999_s5] sm:$0xff] }
 0x605   :  { %v3285_v63 = vpack.c.bf16 %v2654_v40, %v2653_v45  ;;  %v2792_v45 = vld [vmem:[%s4001_s9 + $0x8] sm:$0xff] }
 0x606   :  { %v2373_v54 = vrot.slane %v2365_v31, %v3550_v57  ;;  %v2380_v55 = vrot.slane %v2366_v51, %v3550_v57 }
 0x607   :  { %3286 = vmatprep.subr.bf16.mxu1 %v3285_v63 }
 0x608   :  { %v2381_v56 = vcombine.low %v2357_v53, %v2373_v54  ;;  %v2382_v58 = vcombine.high %v2357_v53, %v2373_v54  ;;  %v2397_v59 = vcombine.low %v2364_v46, %v2380_v55  ;;  %v2398_v60 = vcombine.high %v2364_v46, %v2380_v55  ;;  %v2655_v46 = vld [vmem:[%s3999_s5 + $0x10] sm:$0xff]  ;;  %v2656_v54 = vld [vmem:[%s3999_s5 + $0x18] sm:$0xff]  ;;  %3288 = vmatpush3.bf16.msra.mxu1 %v3285_v63 }
 0x60a   :  { %v2389_v61 = vrot.slane %v2381_v56, %v3560_v1  ;;  %v2396_v0 = vrot.slane %v2382_v58, %v3560_v1  ;;  %v2405_v35 = vrot.slane %v2397_v59, %v3560_v1  ;;  %v2412_v2 = vrot.slane %v2398_v60, %v3560_v1 }
 0x60b   :  { %v3289_v60 = vpack.c.bf16 %v2656_v54, %v2655_v46  ;;  %v3053_v54 = vld [vmem:[%s4002_s7] ss:$0 sm:$0xff] }
 0x60c   :  { %v2485_v3 = vcombine.low %v2389_v61, %v2396_v0  ;;  %v3046_v4 = vcombine.high %v2389_v61, %v2396_v0  ;;  %v2501_v5 = vcombine.low %v2405_v35, %v2412_v2  ;;  %v3047_v6 = vcombine.high %v2405_v35, %v2412_v2 }
 0x60d   :  { %3290 = vmatprep.subr.bf16.mxu1 %v3289_v60 }
 0x60e   :  { %v2492_v7 = vrot.slane %v2485_v3, %v3550_v57  ;;  %v2500_v11 = vrot.slane %v3046_v4, %v3550_v57  ;;  %v2508_v12 = vrot.slane %v2501_v5, %v3550_v57  ;;  %v2516_v13 = vrot.slane %v3047_v6, %v3550_v57  ;;  %3292 = vmatpush3.bf16.msra.mxu1 %v3289_v60 }
 0x610   :  { %v2517_v14 = vcombine.low %v2492_v7, %v2500_v11  ;;  %v2533_v15 = vcombine.low %v2508_v12, %v2516_v13  ;;  %v2518_v16 = vcombine.high %v2492_v7, %v2500_v11  ;;  %v2534_v42 = vcombine.high %v2508_v12, %v2516_v13 }
 0x612   :  { %v3837_v17 = vrot.slane %v2517_v14, %v3560_v1  ;;  %v3840_v18 = vrot.slane %v2533_v15, %v3560_v1  ;;  %v2532_v19 = vrot.slane %v2518_v16, %v3560_v1  ;;  %v2548_v39 = vrot.slane %v2534_v42, %v3560_v1 }
 0x614   :  { %v2550_v20 = vcombine.high %v3837_v17, %v3840_v18  ;;  %v2551_v21 = vcombine.low %v2532_v19, %v2548_v39  ;;  %v2552_v22 = vcombine.high %v2532_v19, %v2548_v39  ;;  %v2549_v25 = vcombine.low %v3837_v17, %v3840_v18  ;;  %v3050_v17 = vld [vmem:[%s4000_s6] ss:$0 sm:$0xff] }
 0x616   :  { %2623 = vrot.lane.b32.xlu0 %v2550_v20, %s3404_s27 }
 0x61a   :  { %2631 = vrot.lane.b32.xlu0 %v2551_v21, %s3405_s28 }
 0x61e   :  { %2639 = vrot.lane.b32.xlu0 %v2552_v22, %s3406_s29 }
 0x645   :  { %v2126_v26 = vpop.f32.mrb[10].mxu0  ;;  %v2199_v27 = vpop.f32.mrb[16].mxu1 }
 0x646   :  { %v3204_v43 = vpop.f32.mrb[11].mxu0  ;;  %v3209_v29 = vpop.f32.mrb[17].mxu1 }
 0x647   :  { %v3393_v29 = vld [vmem:[%s3994_s0 + $0x8] sm:$0xff] }
 0x649   :  { %v2272_v30 = vpop.f32.mrb[12].mxu0  ;;  %v2345_v62 = vpop.f32.mrb[18].mxu1 }
 0x64a   :  { %v2417_v32 = vcombine.low %v2126_v26, %v2272_v30  ;;  %v2418_v33 = vcombine.high %v2126_v26, %v2272_v30  ;;  %v2433_v23 = vcombine.low %v2199_v27, %v2345_v62  ;;  %v2434_v34 = vcombine.high %v2199_v27, %v2345_v62  ;;  %v3214_v36 = vpop.f32.mrb[13].mxu0  ;;  %v3219_v8 = vpop.f32.mrb[19].mxu1  ;;  %v3394_v62 = vld [vmem:[%s3994_s0] sm:$0xff] }
 0x64c   :  { %v2425_v9 = vrot.slane %v2417_v32, %v3550_v57  ;;  %v2432_v38 = vrot.slane %v2418_v33, %v3550_v57  ;;  %v2441_v48 = vrot.slane %v2433_v23, %v3550_v57  ;;  %v2448_v49 = vrot.slane %v2434_v34, %v3550_v57 }
 0x64e   :  { %v2449_v50 = vcombine.low %v2425_v9, %v2441_v48  ;;  %v2450_v44 = vcombine.high %v2425_v9, %v2441_v48  ;;  %v2465_v24 = vcombine.low %v2432_v38, %v2448_v49  ;;  %v2466_v10 = vcombine.high %v2432_v38, %v2448_v49 }
 0x650   :  { %v2457_v47 = vrot.slane %v2449_v50, %v3560_v1  ;;  %v2464_v37 = vrot.slane %v2450_v44, %v3560_v1  ;;  %v2473_v28 = vrot.slane %v2465_v24, %v3560_v1  ;;  %v2480_v41 = vrot.slane %v2466_v10, %v3560_v1  ;;  %v2791_v10 = vld [vmem:[%s4001_s9] sm:$0xff] }
 0x651   :  { %v3293_v40 = vpack.c.bf16 %v2792_v45, %v2791_v10  ;;  %v3060_v45 = vld [vmem:[%s4006_s12] ss:$0 sm:$0xff] }
 0x652   :  { %v2553_v31 = vcombine.low %v2457_v47, %v2464_v37  ;;  %v3048_v51 = vcombine.high %v2457_v47, %v2464_v37  ;;  %v2569_v52 = vcombine.low %v2473_v28, %v2480_v41  ;;  %v3049_v53 = vcombine.high %v2473_v28, %v2480_v41  ;;  %v2793_v47 = vld [vmem:[%s4001_s9 + $0x10] sm:$0xff]  ;;  %v2794_v37 = vld [vmem:[%s4001_s9 + $0x18] sm:$0xff] }
 0x653   :  { %3294 = vmatprep.subr.bf16.mxu1 %v3293_v40  ;;  %v3297_v28 = vpack.c.bf16 %v2794_v37, %v2793_v47 }
 0x654   :  { %v2560_v55 = vrot.slane %v2553_v31, %v3550_v57  ;;  %v2568_v56 = vrot.slane %v3048_v51, %v3550_v57  ;;  %v2576_v58 = vrot.slane %v2569_v52, %v3550_v57  ;;  %v2584_v59 = vrot.slane %v3049_v53, %v3550_v57 }
 0x656   :  { %v2585_v61 = vcombine.low %v2560_v55, %v2568_v56  ;;  %v2601_v0 = vcombine.low %v2576_v58, %v2584_v59  ;;  %v2586_v35 = vcombine.high %v2560_v55, %v2568_v56  ;;  %v2602_v2 = vcombine.high %v2576_v58, %v2584_v59  ;;  %v3054_v56 = vld [vmem:[%s4003_s8] ss:$0 sm:$0xff] }
 0x658   :  { %v2593_v3 = vrot.slane %v2585_v61, %v3560_v1  ;;  %v2609_v4 = vrot.slane %v2601_v0, %v3560_v1  ;;  %v2600_v5 = vrot.slane %v2586_v35, %v3560_v1  ;;  %v2616_v6 = vrot.slane %v2602_v2, %v3560_v1  ;;  %v2899_v2 = vld [vmem:[%s4004_s11] sm:$0xff] }
 0x65a   :  { %v2618_v7 = vcombine.high %v2593_v3, %v2609_v4  ;;  %v2619_v11 = vcombine.low %v2600_v5, %v2616_v6  ;;  %v2620_v12 = vcombine.high %v2600_v5, %v2616_v6  ;;  %v2617_v57 = vcombine.low %v2593_v3, %v2609_v4  ;;  %v2900_v3 = vld [vmem:[%s4004_s11 + $0x8] sm:$0xff]  ;;  %v2901_v5 = vld [vmem:[%s4004_s11 + $0x10] sm:$0xff]  ;;  %v2902_v6 = vld [vmem:[%s4004_s11 + $0x18] sm:$0xff] }
 0x65b   :  { %v3301_v4 = vpack.c.bf16 %v2900_v3, %v2899_v2 }
 0x65c   :  { %2625 = vrot.lane.b32.xlu1 %v2618_v7, %s3404_s27  ;;  %v3305_v7 = vpack.c.bf16 %v2902_v6, %v2901_v5 }
 0x65d   :  { %3302 = vmatprep.subr.bf16.mxu0 %v3301_v4 }
 0x65e   :  { %3304 = vmatpush3.bf16.msra.mxu0 %v3301_v4 }
 0x65f   :  { %3306 = vmatprep.subr.bf16.mxu0 %v3305_v7 }
 0x660   :  { %2633 = vrot.lane.b32.xlu1 %v2619_v11, %s3405_s28  ;;  %v2903_v11 = vld [vmem:[%s4004_s11 + $0x20] sm:$0xff] }
 0x662   :  { %3308 = vmatpush3.bf16.msra.mxu0 %v3305_v7 }
 0x664   :  { %2641 = vrot.lane.b32.xlu1 %v2620_v12, %s3406_s29  ;;  %v2904_v12 = vld [vmem:[%s4004_s11 + $0x28] sm:$0xff] }
 0x688   :  { %v2624_v13 = vpop.permute.xlu0 %2623 }
 0x689   :  { %v2645_v1 = vsel %vm1068_vm2, %v2549_v25, %v2624_v13  ;;  %v2905_v13 = vld [vmem:[%s4004_s11 + $0x30] sm:$0xff] }
 0x68c   :  { %v2632_v14 = vpop.permute.xlu0 %2631 }
 0x68d   :  { %v2648_v15 = vsel %vm2647_vm3, %v2645_v1, %v2632_v14  ;;  %v2906_v14 = vld [vmem:[%s4004_s11 + $0x38] sm:$0xff] }
 0x68e   :  { %v3313_v1 = vpack.c.bf16 %v2906_v14, %v2905_v13 }
 0x690   :  { %v2640_v16 = vpop.permute.xlu0 %2639 }
 0x691   :  { %v2651_v42 = vsel %vm2650_vm4, %v2648_v15, %v2640_v16  ;;  %v2907_v15 = vld [vmem:[%s4004_s11 + $0x40] sm:$0xff]  ;;  %v2908_v16 = vld [vmem:[%s4004_s11 + $0x48] sm:$0xff] }
 0x692   :  { %3228 = vmatprep.mubr.msk.f32.mxu1 %vm48_vm0, %v2651_v42  ;;  %v3317_v42 = vpack.c.bf16 %v2908_v16, %v2907_v15 }
 0x6ce   :  { %v2626_v19 = vpop.permute.xlu1 %2625 }
 0x6cf   :  { %v2646_v20 = vsel %vm1068_vm2, %v2617_v57, %v2626_v19  ;;  %v3309_v57 = vpack.c.bf16 %v2904_v12, %v2903_v11  ;;  %v2909_v19 = vld [vmem:[%s4004_s11 + $0x50] sm:$0xff] }
 0x6d1   :  { %3310 = vmatprep.subr.bf16.mxu0 %v3309_v57 }
 0x6d2   :  { %v2634_v39 = vpop.permute.xlu1 %2633  ;;  %3312 = vmatpush3.bf16.msra.mxu0 %v3309_v57 }
 0x6d3   :  { %v2649_v21 = vsel %vm2647_vm3, %v2646_v20, %v2634_v39  ;;  %3314 = vmatprep.subr.bf16.mxu0 %v3313_v1  ;;  %v2910_v39 = vld [vmem:[%s4004_s11 + $0x58] sm:$0xff] }
 0x6d4   :  { %v3321_v20 = vpack.c.bf16 %v2910_v39, %v2909_v19 }
 0x6d6   :  { %v2642_v22 = vpop.permute.xlu1 %2641  ;;  %3316 = vmatpush3.bf16.msra.mxu0 %v3313_v1 }
 0x6d7   :  { %v2652_v26 = vsel %vm2650_vm4, %v2649_v21, %v2642_v22  ;;  %3318 = vmatprep.subr.bf16.mxu0 %v3317_v42  ;;  %v2911_v21 = vld [vmem:[%s4004_s11 + $0x60] sm:$0xff]  ;;  %v2912_v22 = vld [vmem:[%s4004_s11 + $0x68] sm:$0xff] }
 0x6d8   :  { %3229 = vmatmul.mubr.msk.f32.vlgmr.msra.gmra.mrb[20].mxu1 %vm48_vm0, %v2652_v26  ;;  %v3325_v26 = vpack.c.bf16 %v2912_v22, %v2911_v21 }
 0x6d9   :  { %3296 = vmatpush3.bf16.msra.mxu1 %v3293_v40 }
 0x6da   :  { %3298 = vmatprep.subr.bf16.mxu1 %v3297_v28  ;;  %3320 = vmatpush3.bf16.msra.mxu0 %v3317_v42 }
 0x6db   :  { %3322 = vmatprep.subr.bf16.mxu0 %v3321_v20 }
 0x6dd   :  { %3300 = vmatpush3.bf16.msra.mxu1 %v3297_v28 }
 0x6de   :  { %3324 = vmatpush3.bf16.msra.mxu0 %v3321_v20 }
 0x6df   :  { %3326 = vmatprep.subr.bf16.mxu0 %v3325_v26 }
 0x6e2   :  { %3328 = vmatpush3.bf16.msra.mxu0 %v3325_v26 }
 0x7ab   :  { %v3230_v18 = vpop.f32.mrb[20].mxu1 }
 0x7ac   :  { %v2742_v25 = vadd.f32 %v3230_v18, %v3050_v17  ;;  %v2736_v27 = vpop.f32.mrb[21].mxu1  ;;  %v2914_v18 = vld [vmem:[%s4004_s11 + $0x78] sm:$0xff] }
 0x7ad   :  { %v2737_v43 = vadd.f32 %v3050_v17, %v2736_v27  ;;  %v2913_v17 = vld [vmem:[%s4004_s11 + $0x70] sm:$0xff]  ;;  %v3055_v27 = vld [vmem:[%s4005_s10] ss:$0 sm:$0xff] }
 0x7ae   :  { %v3895_v30 = vadd.f32 %v3393_v29, %v2742_v25  ;;  %v3329_v25 = vpack.c.bf16 %v2914_v18, %v2913_v17 }
 0x7af   :  { %v3900_v32 = vadd.f32 %v3394_v62, %v2737_v43 }
 0x7b0   :  { %v2752_v33 = vsel %vm48_vm0, %v3895_v30, 0.0  ;;  %3330 = vmatprep.subr.bf16.mxu0 %v3329_v25 }
 0x7b1   :  { %2753 = vadd.xlane.f32.xlu1 %v2752_v33  ;;  %v2749_v23 = vsel %vm48_vm0, %v3900_v32, 0.0  ;;  %3332 = vmatpush3.bf16.msra.mxu0 %v3329_v25 }
 0x7b2   :  { %2750 = vadd.xlane.f32.xlu0 %v2749_v23 }
 0x83e   :  { %v2754_v34 = vpop.xlane.xlu1 %2753 }
 0x83f   :  { %v2756_v36 = vmul.f32 0.03125, %v2754_v34  ;;  %v2751_v8 = vpop.xlane.xlu0 %2750 }
 0x840   :  { %v2755_v9 = vmul.f32 0.03125, %v2751_v8 }
 0x841   :  { %v2758_v38 = vsub.f32 %v3895_v30, %v2756_v36 }
 0x842   :  { %v2757_v48 = vsub.f32 %v3900_v32, %v2755_v9 }
 0x843   :  { %v2760_v44 = vmul.f32 %v2758_v38, %v2758_v38 }
 0x844   :  { %v2759_v49 = vmul.f32 %v2757_v48, %v2757_v48 }
 0x845   :  { %v2764_v24 = vsel %vm48_vm0, %v2760_v44, 0.0 }
 0x846   :  { %v2761_v50 = vsel %vm48_vm0, %v2759_v49, 0.0 }
 0x847   :  { %2762 = vadd.xlane.f32.xlu0 %v2761_v50 }
 0x84b   :  { %2765 = vadd.xlane.f32.xlu0 %v2764_v24 }
 0x8d4   :  { %v2763_v41 = vpop.xlane.xlu0 %2762 }
 0x8d5   :  { %v2767_v63 = vmul.f32 0.03125, %v2763_v41 }
 0x8d7   :  { %v2769_v31 = vadd.f32 1e-05, %v2767_v63 }
 0x8d8   :  { %v2766_v51 = vpop.xlane.xlu0 %2765 }
 0x8d9   :  { %3381 = vrsqrt.f32 %v2769_v31  ;;  %v2768_v52 = vmul.f32 0.03125, %v2766_v51 }
 0x8db   :  { %v2770_v53 = vadd.f32 1e-05, %v2768_v52 }
 0x8dd   :  { %3383 = vrsqrt.f32 %v2770_v53 }
 0x8e3   :  { %v3382_v46 = vpop.eup %3381 }
 0x8e4   :  { %v2773_v55 = vmul.f32 %v3382_v46, %v2757_v48 }
 0x8e6   :  { %v2781_v58 = vmul.f32 %v3053_v54, %v2773_v55 }
 0x8e7   :  { %v3384_v59 = vpop.eup %3383 }
 0x8e8   :  { %v2774_v60 = vmul.f32 %v3384_v59, %v2758_v38  ;;  %v2789_v61 = vadd.f32 %v3054_v56, %v2781_v58 }
 0x8ea   :  { %v2782_v0 = vmul.f32 %v3053_v54, %v2774_v60  ;;  %3239 = vmatprep.mubr.msk.f32.mxu1 %vm48_vm0, %v2789_v61 }
 0x8ec   :  { %v2790_v35 = vadd.f32 %v3054_v56, %v2782_v0 }
 0x8ee   :  { %3240 = vmatmul.mubr.msk.f32.vlgmr.msra.gmra.mrb[22].mxu1 %vm48_vm0, %v2790_v35 }
 0x9c1   :  { %v3241_v43 = vpop.f32.mrb[22].mxu1 }
 0x9c2   :  { %v2880_v29 = vadd.f32 %v3241_v43, %v3055_v27  ;;  %v2874_v62 = vpop.f32.mrb[23].mxu1 }
 0x9c3   :  { %v2875_v33 = vadd.f32 %v3055_v27, %v2874_v62 }
 0x9c4   :  { %v3059_v23 = vmul.f32 -1.702, %v2880_v29 }
 0x9c5   :  { %v3058_v34 = vmul.f32 -1.702, %v2875_v33 }
 0x9c6   :  { %v2889_v36 = vmul.f32 1.442695, %v3059_v23 }
 0x9c7   :  { %v2887_v8 = vmul.f32 1.442695, %v3058_v34 }
 0x9c8   :  { %3385 = vpow2.f32 %v2889_v36 }
 0x9c9   :  { %3387 = vpow2.f32 %v2887_v8 }
 0x9d2   :  { %v3386_v9 = vpop.eup %3385 }
 0x9d3   :  { %v3388_v38 = vpop.eup %3387  ;;  %v2892_v48 = vadd.f32 1.0, %v3386_v9 }
 0x9d4   :  { %v2891_v49 = vadd.f32 1.0, %v3388_v38 }
 0x9d5   :  { %3389 = vrcp.f32 %v2892_v48 }
 0x9d6   :  { %3391 = vrcp.f32 %v2891_v49 }
 0x9df   :  { %v3390_v50 = vpop.eup %3389 }
 0x9e0   :  { %v3392_v44 = vpop.eup %3391  ;;  %v2898_v10 = vmul.f32 %v3390_v50, %v2880_v29 }
 0x9e1   :  { %v2897_v24 = vmul.f32 %v3392_v44, %v2875_v33 }
 0x9e3   :  { %3274 = vmatprep.mubr.f32.mxu0 %v2897_v24 }
 0x9e4   :  { %3275 = vmatmul.mubr.f32.vlgmr.msra.gmra.mrb[14].mxu0 %v2898_v10 }
 0xab7   :  { %v3276_v40 = vpop.f32.mrb[14].mxu0 }
 0xab8   :  { %v2994_v47 = vadd.f32 %v3276_v40, %v3060_v45  ;;  %v2988_v37 = vpop.f32.mrb[15].mxu0 }
 0xab9   :  { %v2989_v28 = vadd.f32 %v3060_v45, %v2988_v37 }
 0xaba   :  { %v2998_v41 = vadd.f32 %v2994_v47, %v3895_v30 }
 0xabb   :  { %v2997_v63 = vadd.f32 %v2989_v28, %v3900_v32 }
 0xabc   :  { %3000 = vst.msk [vmem:[%s4007_s13 + $0x8] sm:$0xff] %vm48_vm0, %v2998_v41 }
 0xabd   :  { %2999 = vst.msk [vmem:[%s4007_s13] sm:$0xff] %vm48_vm0, %v2997_v63 }

// kernel: forward.2
= control target key start
LH: loop header
LB: loop body
LE: loop exit
PB: predicated region body
PF: predicated region fallthrough
CT: control target
= control target key end

     0   :  { %18 = vsyncpa [#allocation3], 0  ;;  %s4044_s0 = inlined_call_operand.vmem [shape: f32[2,8,32], index: 0, kind: input, shape index: {}]   ;;  %s4045_s1 = inlined_call_operand.vmem [shape: f32[1,32], index: 1, kind: input, shape index: {}, may-alias: {1,7}]   ;;  %s4046_s2 = inlined_call_operand.vmem [shape: f32[1,32], index: 2, kind: input, shape index: {}, may-alias: {2,8}]   ;;  %s4047_s3 = inlined_call_operand.hbm [shape: f32[32,96], index: 3, kind: input, shape index: {}]   ;;  %s4048_s4 = inlined_call_operand.vmem [shape: f32[1,96], index: 4, kind: input, shape index: {}]   ;;  %s4049_s5 = inlined_call_operand.vmem [shape: f32[32,32], index: 5, kind: input, shape index: {}]   ;;  %s4050_s6 = inlined_call_operand.vmem [shape: f32[1,32], index: 6, kind: input, shape index: {}]   ;;  %s4051_s7 = inlined_call_operand.vmem [shape: f32[1,32], index: 7, kind: input, shape index: {}, may-alias: {1,7}]   ;;  %s4052_s8 = inlined_call_operand.vmem [shape: f32[1,32], index: 8, kind: input, shape index: {}, may-alias: {2,8}]   ;;  %s4053_s9 = inlined_call_operand.vmem [shape: f32[32,128], index: 9, kind: input, shape index: {}]   ;;  %s4054_s10 = inlined_call_operand.vmem [shape: f32[1,128], index: 10, kind: input, shape index: {}]   ;;  %s4055_s11 = inlined_call_operand.hbm [shape: f32[128,32], index: 11, kind: input, shape index: {}]   ;;  %s4056_s12 = inlined_call_operand.vmem [shape: f32[1,32], index: 12, kind: input, shape index: {}]   ;;  %s4057_s13 = inlined_call_operand.vmem [shape: f32[2,8,32], index: 13, kind: output, shape index: {}]  }
   0x1   :  { %19 = vsyncpa [#allocation5], 0  ;;  %s3476_s25 = smov [#allocation2]   ;;  %s3428_s29 = scalar_lea.hbm %s4047_s3, 512 }
   0x2   :  { %s31_s26 = sshll.u32 %s3476_s25, 4  ;;  %p3429_p0 = scmp.ne.s32.totalorder %s4047_s3, %s3428_s29  ;;  %s32_s26 = int_to_ptr.vmem [resolvable:$true] %s31_s26 }
   0x3   :  { %p3432_p1 = scmp.lt.u32.totalorder %s3428_s29, %s4047_s3 }
   0x5   :  { %p3434_p2 = pnand %p3432_p1, %p3429_p0 }
   0x7   :  { %3437 = shalt.err (!%p3434_p2)
}
   0x8   :  { %s3438_s17 = scalar_lea.vmem %s32_s26, 512  ;;  %p3443_p4 = scmp.lt.s32.totalorder %s32_s26, %s32_s26 }
   0x9   :  { %p3439_p3 = scmp.ne.s32.totalorder %s32_s26, %s3438_s17  ;;  %p3444_p5 = scmp.lt.s32.totalorder %s3438_s17, %s3438_s17 }
   0xb   :  { %p3445_p6 = por %p3444_p5, %p3443_p4 }
   0xd   :  { %p3446_p7 = pnand %p3445_p6, %p3439_p3 }
   0xf   :  { %3449 = shalt.err (!%p3446_p7)
}
  0x10   :  { %s3477_s18 = smov 128   ;;  %s3478_s19 = smov 8  }
  0x11   :  { %37 = dma.hbm_to_vmem [thread:$0]  %s4047_s3, 512, %s32_s26, [#allocation3], %s3477_s18, %s3477_s18, %s3478_s19  }
  0x12   :  { %s3479_s22 = smov [#allocation4]   ;;  %s3450_s27 = scalar_lea.hbm %s4055_s11, 2048 }
  0x13   :  { %s57_s23 = sshll.u32 %s3479_s22, 4  ;;  %p3451_p8 = scmp.ne.s32.totalorder %s4055_s11, %s3450_s27  ;;  %s58_s23 = int_to_ptr.vmem [resolvable:$true] %s57_s23 }
  0x14   :  { %p3454_p9 = scmp.lt.u32.totalorder %s3450_s27, %s4055_s11 }
  0x16   :  { %p3456_p10 = pnand %p3454_p9, %p3451_p8 }
  0x18   :  { %3459 = shalt.err (!%p3456_p10)
}
  0x19   :  { %s3460_s15 = scalar_lea.vmem %s58_s23, 2048  ;;  %p3465_p12 = scmp.lt.s32.totalorder %s58_s23, %s58_s23 }
  0x1a   :  { %p3461_p11 = scmp.ne.s32.totalorder %s58_s23, %s3460_s15  ;;  %p3466_p13 = scmp.lt.s32.totalorder %s3460_s15, %s3460_s15 }
  0x1c   :  { %p3467_p0 = por %p3466_p13, %p3465_p12 }
  0x1e   :  { %p3468_p1 = pnand %p3467_p0, %p3461_p11 }
  0x20   :  { %3471 = shalt.err (!%p3468_p1)
}
  0x21   :  { %63 = dma.hbm_to_vmem [thread:$0]  %s4055_s11, 2048, %s58_s23, [#allocation5], %s3477_s18, %s3477_s18, %s3478_s19  }
  0x22   :  { %3472 = dma.done.wait [#allocation3], 512  }
  0x23   :  { %3473 = vsyncadd [#allocation3], 4294966784 }
  0x24   :  { %3474 = dma.done.wait [#allocation5], 2048  }
  0x25   :  { %3475 = vsyncadd [#allocation5], 4294965248  ;;  %vm76_vm0 = vcmask 261120   ;;  %v72_v0 = vld [vmem:[%s4044_s0] sm:$0xff]  ;;  %v73_v1 = vld [vmem:[%s4044_s0 + $0x8] sm:$0xff]  ;;  %s3482_s27 = smov 104   ;;  %v237_v50 = vlaneseq }
  0x26   :  { %v77_v2 = vsel %vm76_vm0, %v72_v0, 0.0  ;;  %v80_v3 = vsel %vm76_vm0, %v73_v1, 0.0  ;;  %v120_v14 = vld [vmem:[#allocation2] sm:$0xff]  ;;  %v121_v15 = vld [vmem:[#allocation2 + $0x8] sm:$0xff]  ;;  %v122_v16 = vld [vmem:[#allocation2 + $0x10] sm:$0xff]  ;;  %v3484_v46 = vmov 0.0  }
  0x27   :  { %78 = vadd.xlane.f32.xlu0 %v77_v2  ;;  %v3307_v17 = vpack.c.bf16 %v121_v15, %v120_v14  ;;  %v123_v18 = vld [vmem:[#allocation2 + $0x18] sm:$0xff]  ;;  %v3035_v27 = vld [vmem:[%s4045_s1] ss:$0 sm:$0xff]  ;;  %s3480_s1 = smov 112   ;;  %3180 = vmatprep.subr.mxu0 %v3484_v46  ;;  %vm3485_vm1 = vmmov 0   ;;  %v238_v52 = vshrl.u32 %v237_v50, 7 }
  0x28   :  { %v3311_v19 = vpack.c.bf16 %v123_v18, %v122_v16  ;;  %v3036_v29 = vld [vmem:[%s4046_s2] ss:$0 sm:$0xff]  ;;  %s3481_s2 = smov 120   ;;  %3182 = vmatprep.mubr.msk.f32.mxu0 %vm3485_vm1, %v3484_v46  ;;  %v3486_v48 = vmov 1983009808   ;;  %vm1096_vm2 = vcmask 64512  }
  0x29   :  { %3308 = vmatprep.subr.bf16.mxu1 %v3307_v17  ;;  %v3037_v36 = vld [vmem:[%s4048_s4] ss:$0 sm:$0xff]  ;;  %s3483_s4 = smov 96   ;;  %v235_v49 = vunpack.c.l.s4 %v3486_v48  ;;  %v3487_v53 = vmov 1934713408   ;;  %s3488_s28 = smov 64  }
  0x2a   :  { %3310 = vmatpush3.bf16.msra.mxu1 %v3307_v17  ;;  %v267_v54 = vunpack.c.l.s4 %v3487_v53  ;;  %s3489_s29 = smov 16   ;;  %s3490_s30 = smov 24   ;;  %vm2675_vm3 = vcmask 130048   ;;  %vm2678_vm4 = vcmask 195584  }
  0x2b   :  { %81 = vadd.xlane.f32.xlu0 %v80_v3  ;;  %3312 = vmatprep.subr.bf16.mxu1 %v3311_v19  ;;  %v236_v51 = vunpack.c.0.s8 %v235_v49 }
  0x2c   :  { %v268_v60 = vunpack.c.0.s8 %v267_v54 }
  0x2d   :  { %v3648_v57 = vsub.s32 %v236_v51, %v238_v52 }
  0x2e   :  { %3314 = vmatpush3.bf16.msra.mxu1 %v3311_v19 }
  0x2f   :  { %3170 = vmatprep.subr.mxu1 %v3484_v46 }
  0xb4   :  { %v79_v4 = vpop.xlane.xlu0 %78 }
  0xb5   :  { %v84_v5 = vmul.f32 0.03125, %v79_v4 }
  0xb7   :  { %v86_v6 = vsub.f32 %v72_v0, %v84_v5 }
  0xb8   :  { %v82_v7 = vpop.xlane.xlu0 %81 }
  0xb9   :  { %v85_v8 = vmul.f32 0.03125, %v82_v7  ;;  %v88_v9 = vmul.f32 %v86_v6, %v86_v6 }
  0xbb   :  { %v87_v10 = vsub.f32 %v73_v1, %v85_v8  ;;  %v90_v11 = vsel %vm76_vm0, %v88_v9, 0.0  ;;  %v3658_v1 = vsub.s32 %v268_v60, %v238_v52 }
  0xbc   :  { %91 = vadd.xlane.f32.xlu1 %v90_v11 }
  0xbd   :  { %v89_v12 = vmul.f32 %v87_v10, %v87_v10 }
  0xbf   :  { %v93_v13 = vsel %vm76_vm0, %v89_v12, 0.0 }
  0xc0   :  { %94 = vadd.xlane.f32.xlu1 %v93_v13 }
 0x149   :  { %v92_v20 = vpop.xlane.xlu1 %91 }
 0x14a   :  { %v96_v21 = vmul.f32 0.03125, %v92_v20 }
 0x14c   :  { %v98_v22 = vadd.f32 1e-05, %v96_v21 }
 0x14d   :  { %v95_v23 = vpop.xlane.xlu1 %94 }
 0x14e   :  { %3378 = vrsqrt.f32 %v98_v22  ;;  %v97_v24 = vmul.f32 0.03125, %v95_v23 }
 0x150   :  { %v99_v25 = vadd.f32 1e-05, %v97_v24 }
 0x152   :  { %3380 = vrsqrt.f32 %v99_v25 }
 0x158   :  { %v3379_v26 = vpop.eup %3378 }
 0x159   :  { %v102_v28 = vmul.f32 %v3379_v26, %v86_v6 }
 0x15b   :  { %v110_v30 = vmul.f32 %v3035_v27, %v102_v28 }
 0x15c   :  { %v3381_v31 = vpop.eup %3380 }
 0x15d   :  { %v103_v32 = vmul.f32 %v3381_v31, %v87_v10  ;;  %v118_v33 = vadd.f32 %v3036_v29, %v110_v30 }
 0x15f   :  { %v111_v34 = vmul.f32 %v3035_v27, %v103_v32  ;;  %3167 = vmatprep.mubr.msk.f32.mxu1 %vm76_vm0, %v118_v33 }
 0x161   :  { %v119_v35 = vadd.f32 %v3036_v29, %v111_v34 }
 0x163   :  { %3168 = vmatmul.mubr.msk.f32.vlgmr.msra.gmra.mrb[0].mxu1 %vm76_vm0, %v119_v35 }
 0x164   :  { %3172 = vmatprep.mubr.msk.f32.mxu1 %vm3485_vm1, %v3484_v46 }
 0x236   :  { %v3169_v37 = vpop.f32.mrb[0].mxu1 }
 0x237   :  { %v203_v38 = vpop.f32.mrb[1].mxu1  ;;  %v3612_v40 = vadd.f32 %v3169_v37, %v3037_v36 }
 0x238   :  { %v3608_v39 = vadd.f32 %v3037_v36, %v203_v38 }
 0x23a   :  { %220 = vrot.lane.b32.xlu1 %v3608_v39, %s3480_s1  ;;  %214 = vrot.lane.b32.xlu0 %v3608_v39, %s3481_s2 }
 0x23e   :  { %226 = vrot.lane.b32.xlu1 %v3608_v39, %s3482_s27  ;;  %222 = vrot.lane.b32.xlu0 %v3612_v40, %s3480_s1 }
 0x242   :  { %216 = vrot.lane.b32.xlu1 %v3612_v40, %s3481_s2  ;;  %504 = vrot.lane.b32.xlu0 %v3608_v39, %s3483_s4 }
 0x246   :  { %228 = vrot.lane.b32.xlu1 %v3612_v40, %s3482_s27 }
 0x2ac   :  { %v3619_v41 = vpop.permute.xlu1 %220  ;;  %v3621_v42 = vpop.permute.xlu0 %214 }
 0x2ad   :  { %512 = vrot.lane.b32.xlu0 %v3619_v41, %s3483_s4  ;;  %508 = vrot.lane.b32.xlu1 %v3621_v42, %s3483_s4  ;;  %v232_v58 = vcombine.low %v3608_v39, %v3619_v41  ;;  %v233_v59 = vcombine.high %v3608_v39, %v3619_v41 }
 0x2af   :  { %v240_v63 = vrot.slane %v232_v58, %v3648_v57  ;;  %v247_v0 = vrot.slane %v233_v59, %v3648_v57 }
 0x2b0   :  { %v3625_v43 = vpop.permute.xlu1 %226  ;;  %v3629_v44 = vpop.permute.xlu0 %222 }
 0x2b1   :  { %506 = vrot.lane.b32.xlu0 %v3612_v40, %s3483_s4  ;;  %516 = vrot.lane.b32.xlu1 %v3625_v43, %s3483_s4  ;;  %v248_v55 = vcombine.low %v3621_v42, %v3625_v43  ;;  %v249_v56 = vcombine.high %v3621_v42, %v3625_v43  ;;  %v300_v12 = vcombine.low %v3612_v40, %v3629_v44 }
 0x2b2   :  { %v301_v18 = vcombine.high %v3612_v40, %v3629_v44 }
 0x2b3   :  { %v256_v61 = vrot.slane %v248_v55, %v3648_v57  ;;  %v263_v62 = vrot.slane %v249_v56, %v3648_v57  ;;  %v308_v21 = vrot.slane %v300_v12, %v3648_v57 }
 0x2b4   :  { %v3631_v45 = vpop.permute.xlu1 %216  ;;  %v505_v13 = vpop.permute.xlu0 %504  ;;  %v315_v28 = vrot.slane %v301_v18, %v3648_v57 }
 0x2b5   :  { %514 = vrot.lane.b32.xlu0 %v3629_v44, %s3483_s4  ;;  %510 = vrot.lane.b32.xlu1 %v3631_v45, %s3483_s4  ;;  %v264_v2 = vcombine.low %v240_v63, %v256_v61  ;;  %v265_v3 = vcombine.high %v240_v63, %v256_v61  ;;  %v280_v4 = vcombine.low %v247_v0, %v263_v62 }
 0x2b6   :  { %v281_v5 = vcombine.high %v247_v0, %v263_v62 }
 0x2b7   :  { %v272_v6 = vrot.slane %v264_v2, %v3658_v1  ;;  %v279_v7 = vrot.slane %v265_v3, %v3658_v1  ;;  %v288_v8 = vrot.slane %v280_v4, %v3658_v1 }
 0x2b8   :  { %v3636_v47 = vpop.permute.xlu1 %228  ;;  %v295_v9 = vrot.slane %v281_v5, %v3658_v1 }
 0x2b9   :  { %518 = vrot.lane.b32.xlu1 %v3636_v47, %s3483_s4  ;;  %v316_v10 = vcombine.low %v3631_v45, %v3636_v47  ;;  %v368_v11 = vcombine.low %v272_v6, %v279_v7  ;;  %v3040_v14 = vcombine.high %v272_v6, %v279_v7  ;;  %v317_v17 = vcombine.high %v3631_v45, %v3636_v47 }
 0x2ba   :  { %v384_v15 = vcombine.low %v288_v8, %v295_v9  ;;  %v3041_v16 = vcombine.high %v288_v8, %v295_v9 }
 0x2bb   :  { %v324_v19 = vrot.slane %v316_v10, %v3648_v57  ;;  %v375_v20 = vrot.slane %v368_v11, %v3648_v57  ;;  %v383_v24 = vrot.slane %v3040_v14, %v3648_v57  ;;  %v331_v27 = vrot.slane %v317_v17, %v3648_v57 }
 0x2bc   :  { %v391_v25 = vrot.slane %v384_v15, %v3648_v57  ;;  %v399_v26 = vrot.slane %v3041_v16, %v3648_v57 }
 0x2bd   :  { %v332_v29 = vcombine.low %v308_v21, %v324_v19  ;;  %v333_v30 = vcombine.high %v308_v21, %v324_v19  ;;  %v348_v34 = vcombine.low %v315_v28, %v331_v27  ;;  %v349_v35 = vcombine.high %v315_v28, %v331_v27 }
 0x2be   :  { %v400_v37 = vcombine.low %v375_v20, %v383_v24  ;;  %v416_v38 = vcombine.low %v391_v25, %v399_v26  ;;  %v401_v52 = vcombine.high %v375_v20, %v383_v24  ;;  %v417_v53 = vcombine.high %v391_v25, %v399_v26 }
 0x2bf   :  { %v340_v50 = vrot.slane %v332_v29, %v3658_v1  ;;  %v347_v51 = vrot.slane %v333_v30, %v3658_v1  ;;  %v356_v59 = vrot.slane %v348_v34, %v3658_v1  ;;  %v363_v60 = vrot.slane %v349_v35, %v3658_v1 }
 0x2c0   :  { %v3689_v62 = vrot.slane %v400_v37, %v3658_v1  ;;  %v3692_v63 = vrot.slane %v416_v38, %v3658_v1  ;;  %v3695_v8 = vrot.slane %v401_v52, %v3658_v1  ;;  %v3698_v9 = vrot.slane %v417_v53, %v3658_v1 }
 0x2c1   :  { %v436_v6 = vcombine.low %v340_v50, %v347_v51  ;;  %v3042_v7 = vcombine.high %v340_v50, %v347_v51  ;;  %v452_v14 = vcombine.low %v356_v59, %v363_v60  ;;  %v3043_v15 = vcombine.high %v356_v59, %v363_v60 }
 0x2c3   :  { %v3708_v24 = vrot.slane %v3042_v7, %v3648_v57 }
 0x31f   :  { %v509_v22 = vpop.permute.xlu1 %508  ;;  %v513_v23 = vpop.permute.xlu0 %512 }
 0x320   :  { %v528_v31 = vcombine.low %v505_v13, %v513_v23  ;;  %v529_v32 = vcombine.high %v505_v13, %v513_v23  ;;  %v3705_v23 = vrot.slane %v436_v6, %v3648_v57 }
 0x322   :  { %v536_v54 = vrot.slane %v528_v31, %v3648_v57  ;;  %v543_v55 = vrot.slane %v529_v32, %v3648_v57 }
 0x323   :  { %v507_v33 = vpop.permute.xlu0 %506  ;;  %v517_v36 = vpop.permute.xlu1 %516 }
 0x324   :  { %v544_v48 = vcombine.low %v509_v22, %v517_v36  ;;  %v545_v49 = vcombine.high %v509_v22, %v517_v36 }
 0x326   :  { %v552_v56 = vrot.slane %v544_v48, %v3648_v57  ;;  %v559_v58 = vrot.slane %v545_v49, %v3648_v57 }
 0x327   :  { %v511_v61 = vpop.permute.xlu1 %510  ;;  %v515_v5 = vpop.permute.xlu0 %514 }
 0x328   :  { %v560_v0 = vcombine.low %v536_v54, %v552_v56  ;;  %v561_v2 = vcombine.high %v536_v54, %v552_v56  ;;  %v576_v3 = vcombine.low %v543_v55, %v559_v58  ;;  %v577_v4 = vcombine.high %v543_v55, %v559_v58 }
 0x329   :  { %v596_v16 = vcombine.low %v507_v33, %v515_v5  ;;  %v597_v17 = vcombine.high %v507_v33, %v515_v5 }
 0x32a   :  { %v568_v10 = vrot.slane %v560_v0, %v3658_v1  ;;  %v575_v11 = vrot.slane %v561_v2, %v3658_v1  ;;  %v584_v12 = vrot.slane %v576_v3, %v3658_v1  ;;  %v591_v13 = vrot.slane %v577_v4, %v3658_v1 }
 0x32b   :  { %v519_v18 = vpop.permute.xlu1 %518  ;;  %v604_v31 = vrot.slane %v596_v16, %v3648_v57  ;;  %v611_v32 = vrot.slane %v597_v17, %v3648_v57  ;;  %v467_v0 = vrot.slane %v3043_v15, %v3648_v57  ;;  %v434_v15 = vcombine.low %v3695_v8, %v3698_v9 }
 0x32c   :  { %v664_v19 = vcombine.low %v568_v10, %v575_v11  ;;  %v3044_v20 = vcombine.high %v568_v10, %v575_v11  ;;  %v680_v21 = vcombine.low %v584_v12, %v591_v13  ;;  %v3045_v22 = vcombine.high %v584_v12, %v591_v13 }
 0x32d   :  { %v612_v25 = vcombine.low %v511_v61, %v519_v18  ;;  %v613_v26 = vcombine.high %v511_v61, %v519_v18  ;;  %v459_v61 = vrot.slane %v452_v14, %v3648_v57  ;;  %v432_v10 = vcombine.low %v3689_v62, %v3692_v63 }
 0x32e   :  { %v671_v27 = vrot.slane %v664_v19, %v3648_v57  ;;  %v679_v28 = vrot.slane %v3044_v20, %v3648_v57  ;;  %v687_v29 = vrot.slane %v680_v21, %v3648_v57  ;;  %v695_v30 = vrot.slane %v3045_v22, %v3648_v57 }
 0x32f   :  { %v620_v33 = vrot.slane %v612_v25, %v3648_v57  ;;  %v627_v34 = vrot.slane %v613_v26, %v3648_v57  ;;  %v468_v17 = vcombine.low %v3705_v23, %v3708_v24  ;;  %v484_v18 = vcombine.low %v459_v61, %v467_v0 }
 0x330   :  { %v696_v35 = vcombine.low %v671_v27, %v679_v28  ;;  %v712_v36 = vcombine.low %v687_v29, %v695_v30  ;;  %v697_v37 = vcombine.high %v671_v27, %v679_v28  ;;  %v713_v38 = vcombine.high %v687_v29, %v695_v30 }
 0x331   :  { %v628_v48 = vcombine.low %v604_v31, %v620_v33  ;;  %v629_v49 = vcombine.high %v604_v31, %v620_v33  ;;  %v644_v50 = vcombine.low %v611_v32, %v627_v34  ;;  %v645_v51 = vcombine.high %v611_v32, %v627_v34 }
 0x332   :  { %v704_v52 = vrot.slane %v696_v35, %v3658_v1  ;;  %v720_v53 = vrot.slane %v712_v36, %v3658_v1  ;;  %v711_v54 = vrot.slane %v697_v37, %v3658_v1  ;;  %v727_v55 = vrot.slane %v713_v38, %v3658_v1 }
 0x333   :  { %v636_v56 = vrot.slane %v628_v48, %v3658_v1  ;;  %v643_v58 = vrot.slane %v629_v49, %v3658_v1  ;;  %v652_v59 = vrot.slane %v644_v50, %v3658_v1  ;;  %v659_v60 = vrot.slane %v645_v51, %v3658_v1 }
 0x334   :  { %v728_v2 = vcombine.low %v704_v52, %v720_v53  ;;  %v730_v3 = vcombine.low %v711_v54, %v727_v55  ;;  %v729_v16 = vcombine.high %v704_v52, %v720_v53  ;;  %v433_v25 = vcombine.high %v3689_v62, %v3692_v63 }
 0x335   :  { %v732_v4 = vcombine.low %v636_v56, %v643_v58  ;;  %v3046_v5 = vcombine.high %v636_v56, %v643_v58  ;;  %v748_v6 = vcombine.low %v652_v59, %v659_v60  ;;  %v3047_v7 = vcombine.high %v652_v59, %v659_v60 }
 0x336   :  { %3171 = vmatpush3.xpose.msk.msra.mxu1 %vm1096_vm2, %v728_v2  ;;  %3181 = vmatpush3.xpose.msk.msra.mxu0 %vm1096_vm2, %v730_v3  ;;  %v469_v28 = vcombine.high %v3705_v23, %v3708_v24  ;;  %v731_v29 = vcombine.high %v711_v54, %v727_v55  ;;  %v476_v30 = vrot.slane %v468_v17, %v3658_v1 }
 0x337   :  { %v739_v11 = vrot.slane %v732_v4, %v3648_v57  ;;  %v747_v12 = vrot.slane %v3046_v5, %v3648_v57  ;;  %v755_v13 = vrot.slane %v748_v6, %v3648_v57  ;;  %v763_v14 = vrot.slane %v3047_v7, %v3648_v57  ;;  %3175 = vmatprep.subr.mxu1 %v3484_v46 }
 0x338   :  { %3190 = vmatprep.subr.mxu0 %v3484_v46  ;;  %v492_v62 = vrot.slane %v484_v18, %v3658_v1  ;;  %v485_v63 = vcombine.high %v459_v61, %v467_v0  ;;  %v435_v23 = vcombine.high %v3695_v8, %v3698_v9  ;;  %v483_v35 = vrot.slane %v469_v28, %v3658_v1 }
 0x339   :  { %v764_v19 = vcombine.low %v739_v11, %v747_v12  ;;  %v765_v20 = vcombine.high %v739_v11, %v747_v12  ;;  %v780_v21 = vcombine.low %v755_v13, %v763_v14  ;;  %v781_v22 = vcombine.high %v755_v13, %v763_v14  ;;  %3173 = vmatmul.mubr.msk.f32.vlgmr.msra.gmra.mrb[2].mxu1 %vm1096_vm2, %v432_v10 }
 0x33a   :  { %3183 = vmatmul.mubr.msk.f32.vlgmr.msra.gmra.mrb[0].mxu0 %vm1096_vm2, %v434_v15  ;;  %3176 = vmatpush3.xpose.msk.msra.mxu1 %vm1096_vm2, %v729_v16  ;;  %v500_v24 = vcombine.low %v476_v30, %v492_v62  ;;  %v499_v36 = vrot.slane %v485_v63, %v3658_v1  ;;  %v501_v8 = vcombine.high %v476_v30, %v492_v62 }
 0x33b   :  { %3177 = vmatprep.mubr.msk.f32.mxu1 %vm3485_vm1, %v3484_v46  ;;  %3185 = vmatprep.subr.mxu1 %v3484_v46  ;;  %v772_v26 = vrot.slane %v764_v19, %v3658_v1  ;;  %v788_v27 = vrot.slane %v780_v21, %v3658_v1  ;;  %v779_v32 = vrot.slane %v765_v20, %v3658_v1 }
 0x33c   :  { %3192 = vmatprep.mubr.msk.f32.mxu0 %vm3485_vm1, %v3484_v46  ;;  %v795_v33 = vrot.slane %v781_v22, %v3658_v1  ;;  %v502_v9 = vcombine.low %v483_v35, %v499_v36  ;;  %v503_v48 = vcombine.high %v483_v35, %v499_v36 }
 0x33d   :  { %3178 = vmatmul.mubr.msk.f32.vlgmr.msra.gmra.mrb[4].mxu1 %vm1096_vm2, %v433_v25  ;;  %v796_v31 = vcombine.low %v772_v26, %v788_v27  ;;  %v797_v34 = vcombine.high %v772_v26, %v788_v27 }
 0x33e   :  { %3186 = vmatpush3.xpose.msk.msra.mxu1 %vm1096_vm2, %v731_v29  ;;  %3187 = vmatprep.mubr.msk.f32.mxu1 %vm3485_vm1, %v3484_v46  ;;  %v798_v37 = vcombine.low %v779_v32, %v795_v33  ;;  %v799_v38 = vcombine.high %v779_v32, %v795_v33 }
 0x33f   :  { %3191 = vmatpush3.xpose.msk.msra.mxu0 %vm1096_vm2, %v796_v31  ;;  %3195 = vmatprep.subr.mxu1 %v3484_v46 }
 0x340   :  { %3200 = vmatprep.subr.mxu0 %v3484_v46 }
 0x341   :  { %3188 = vmatmul.mubr.msk.f32.vlgmr.msra.gmra.mrb[6].mxu1 %vm1096_vm2, %v435_v23 }
 0x342   :  { %3193 = vmatmul.mubr.msk.f32.vlgmr.msra.gmra.mrb[2].mxu0 %vm1096_vm2, %v500_v24  ;;  %3196 = vmatpush3.xpose.msk.msra.mxu1 %vm1096_vm2, %v797_v34 }
 0x343   :  { %3201 = vmatpush3.xpose.msk.msra.mxu0 %vm1096_vm2, %v798_v37  ;;  %3197 = vmatprep.mubr.msk.f32.mxu1 %vm3485_vm1, %v3484_v46 }
 0x344   :  { %3202 = vmatprep.mubr.msk.f32.mxu0 %vm3485_vm1, %v3484_v46  ;;  %3205 = vmatprep.subr.mxu1 %v3484_v46 }
 0x345   :  { %3198 = vmatmul.mubr.msk.f32.vlgmr.msra.gmra.mrb[8].mxu1 %vm1096_vm2, %v501_v8  ;;  %3210 = vmatprep.subr.mxu0 %v3484_v46 }
 0x346   :  { %3203 = vmatmul.mubr.msk.f32.vlgmr.msra.gmra.mrb[4].mxu0 %vm1096_vm2, %v502_v9  ;;  %3206 = vmatpush3.xpose.msk.msra.mxu1 %vm1096_vm2, %v799_v38 }
 0x347   :  { %3207 = vmatprep.mubr.msk.f32.mxu1 %vm3485_vm1, %v3484_v46  ;;  %3215 = vmatprep.subr.mxu1 %v3484_v46 }
 0x348   :  { %3212 = vmatprep.mubr.msk.f32.mxu0 %vm3485_vm1, %v3484_v46 }
 0x349   :  { %3208 = vmatmul.mubr.msk.f32.vlgmr.msra.gmra.mrb[10].mxu1 %vm1096_vm2, %v503_v48 }
 0x34a   :  { %3217 = vmatprep.mubr.msk.f32.mxu1 %vm3485_vm1, %v3484_v46 }
 0x40c   :  { %v1169_v49 = vpop.f32.mrb[2].mxu1 }
 0x40d   :  { %v1321_v50 = vpop.f32.mrb[0].mxu0  ;;  %v3174_v51 = vpop.f32.mrb[3].mxu1  ;;  %v1705_v52 = vsel %vm1096_vm2, %v1169_v49, -inf }
 0x40e   :  { %v3184_v53 = vpop.f32.mrb[1].mxu0  ;;  %1706 = vmax.xlane.f32.xlu0 %v1705_v52  ;;  %v1711_v56 = vsel %vm1096_vm2, %v1321_v50, -inf }
 0x410   :  { %v1245_v54 = vpop.f32.mrb[4].mxu1 }
 0x411   :  { %v3179_v55 = vpop.f32.mrb[5].mxu1  ;;  %v1708_v58 = vsel %vm1096_vm2, %v1245_v54, -inf }
 0x412   :  { %1712 = vmax.xlane.f32.xlu0 %v1711_v56  ;;  %1709 = vmax.xlane.f32.xlu1 %v1708_v58 }
 0x414   :  { %v1397_v59 = vpop.f32.mrb[6].mxu1 }
 0x415   :  { %v1473_v60 = vpop.f32.mrb[2].mxu0  ;;  %v3189_v61 = vpop.f32.mrb[7].mxu1  ;;  %v1714_v7 = vsel %vm1096_vm2, %v1397_v59, -inf }
 0x416   :  { %v3194_v0 = vpop.f32.mrb[3].mxu0  ;;  %v1717_v2 = vsel %vm1096_vm2, %v1473_v60, -inf }
 0x417   :  { %1718 = vmax.xlane.f32.xlu0 %v1717_v2 }
 0x418   :  { %v3796_v3 = vpop.f32.mrb[8].mxu1 }
 0x419   :  { %v1625_v4 = vpop.f32.mrb[4].mxu0  ;;  %v3199_v5 = vpop.f32.mrb[9].mxu1  ;;  %v1720_v13 = vsel %vm1096_vm2, %v3796_v3, -inf }
 0x41a   :  { %v3204_v6 = vpop.f32.mrb[5].mxu0  ;;  %v1723_v12 = vsel %vm1096_vm2, %v1625_v4, -inf }
 0x41b   :  { %1715 = vmax.xlane.f32.xlu0 %v1714_v7 }
 0x41c   :  { %v3799_v10 = vpop.f32.mrb[10].mxu1 }
 0x41d   :  { %v3209_v11 = vpop.f32.mrb[11].mxu1  ;;  %v1726_v14 = vsel %vm1096_vm2, %v3799_v10, -inf }
 0x41f   :  { %1724 = vmax.xlane.f32.xlu0 %v1723_v12 }
 0x423   :  { %804 = vrot.lane.b32.xlu1 %v3621_v42, %s3488_s28 }
 0x427   :  { %808 = vrot.lane.b32.xlu1 %v3619_v41, %s3488_s28 }
 0x435   :  { %800 = vrot.lane.b32.xlu0 %v3608_v39, %s3488_s28 }
 0x44b   :  { %1721 = vmax.xlane.f32.xlu1 %v1720_v13 }
 0x44f   :  { %1727 = vmax.xlane.f32.xlu1 %v1726_v14 }
 0x460   :  { %812 = vrot.lane.b32.xlu1 %v3625_v43, %s3488_s28 }
 0x49b   :  { %v1707_v15 = vpop.xlane.xlu0 %1706 }
 0x49c   :  { %v1729_v16 = vsub.f32 %v1169_v49, %v1707_v15 }
 0x49e   :  { %v1737_v42 = vmul.f32 1.442695, %v1729_v16 }
 0x49f   :  { %v1710_v17 = vpop.xlane.xlu1 %1709  ;;  %v1713_v18 = vpop.xlane.xlu0 %1712 }
 0x4a0   :  { %3382 = vpow2.f32 %v1737_v42  ;;  %v1730_v41 = vsub.f32 %v1245_v54, %v1710_v17  ;;  %v1731_v19 = vsub.f32 %v1321_v50, %v1713_v18 }
 0x4a2   :  { %v1739_v39 = vmul.f32 1.442695, %v1730_v41  ;;  %v1741_v20 = vmul.f32 1.442695, %v1731_v19 }
 0x4a3   :  { %v805_v9 = vpop.permute.xlu1 %804 }
 0x4a4   :  { %3384 = vpow2.f32 %v1739_v39  ;;  %v1719_v21 = vpop.xlane.xlu0 %1718 }
 0x4a5   :  { %3386 = vpow2.f32 %v1741_v20  ;;  %v1733_v22 = vsub.f32 %v1473_v60, %v1719_v21 }
 0x4a7   :  { %v1745_v25 = vmul.f32 1.442695, %v1733_v22  ;;  %v809_v38 = vpop.permute.xlu1 %808 }
 0x4a8   :  { %v1716_v26 = vpop.xlane.xlu0 %1715 }
 0x4a9   :  { %3388 = vpow2.f32 %v1745_v25  ;;  %v1732_v27 = vsub.f32 %v1397_v59, %v1716_v26 }
 0x4aa   :  { %v3814_v28 = vpop.eup %3382 }
 0x4ab   :  { %v1743_v43 = vmul.f32 1.442695, %v1732_v27  ;;  %v1753_v29 = vsel %vm1096_vm2, %v3814_v28, 0.0 }
 0x4ac   :  { %v1725_v30 = vpop.xlane.xlu0 %1724  ;;  %1754 = vadd.xlane.f32.xlu0 %v1753_v29 }
 0x4ad   :  { %3390 = vpow2.f32 %v1743_v43  ;;  %v1735_v62 = vsub.f32 %v1625_v4, %v1725_v30 }
 0x4ae   :  { %v3818_v63 = vpop.eup %3384 }
 0x4af   :  { %v3820_v31 = vpop.eup %3386  ;;  %v1749_v32 = vmul.f32 1.442695, %v1735_v62  ;;  %v1756_v33 = vsel %vm1096_vm2, %v3818_v63, 0.0 }
 0x4b0   :  { %1757 = vadd.xlane.f32.xlu1 %v1756_v33  ;;  %v1759_v23 = vsel %vm1096_vm2, %v3820_v31, 0.0  ;;  %v801_v51 = vpop.permute.xlu0 %800 }
 0x4b1   :  { %3392 = vpow2.f32 %v1749_v32  ;;  %1760 = vadd.xlane.f32.xlu0 %v1759_v23  ;;  %v824_v54 = vcombine.low %v801_v51, %v809_v38  ;;  %v825_v55 = vcombine.high %v801_v51, %v809_v38 }
 0x4b3   :  { %v3826_v24 = vpop.eup %3388  ;;  %v832_v61 = vrot.slane %v824_v54, %v3648_v57  ;;  %v839_v0 = vrot.slane %v825_v55, %v3648_v57 }
 0x4b4   :  { %v1765_v34 = vsel %vm1096_vm2, %v3826_v24, 0.0 }
 0x4b5   :  { %1766 = vadd.xlane.f32.xlu0 %v1765_v34 }
 0x4b7   :  { %v3830_v35 = vpop.eup %3390 }
 0x4b8   :  { %v1762_v36 = vsel %vm1096_vm2, %v3830_v35, 0.0 }
 0x4b9   :  { %1763 = vadd.xlane.f32.xlu1 %v1762_v36 }
 0x4bb   :  { %v3834_v37 = vpop.eup %3392 }
 0x4bc   :  { %v1771_v8 = vsel %vm1096_vm2, %v3834_v37, 0.0 }
 0x4bd   :  { %1772 = vadd.xlane.f32.xlu0 %v1771_v8 }
 0x4d8   :  { %v1722_v48 = vpop.xlane.xlu1 %1721 }
 0x4d9   :  { %v1734_v49 = vsub.f32 %v3796_v3, %v1722_v48 }
 0x4db   :  { %v1747_v50 = vmul.f32 1.442695, %v1734_v49 }
 0x4dc   :  { %v1728_v52 = vpop.xlane.xlu1 %1727 }
 0x4dd   :  { %3394 = vpow2.f32 %v1747_v50  ;;  %v1736_v53 = vsub.f32 %v3799_v10, %v1728_v52 }
 0x4df   :  { %v1751_v56 = vmul.f32 1.442695, %v1736_v53 }
 0x4e0   :  { %v813_v58 = vpop.permute.xlu1 %812 }
 0x4e1   :  { %3396 = vpow2.f32 %v1751_v56  ;;  %v840_v59 = vcombine.low %v805_v9, %v813_v58  ;;  %v841_v60 = vcombine.high %v805_v9, %v813_v58 }
 0x4e3   :  { %v848_v2 = vrot.slane %v840_v59, %v3648_v57  ;;  %v855_v3 = vrot.slane %v841_v60, %v3648_v57 }
 0x4e5   :  { %v856_v4 = vcombine.low %v832_v61, %v848_v2  ;;  %v857_v5 = vcombine.high %v832_v61, %v848_v2  ;;  %v872_v6 = vcombine.low %v839_v0, %v855_v3  ;;  %v873_v7 = vcombine.high %v839_v0, %v855_v3 }
 0x4e7   :  { %v3844_v10 = vpop.eup %3394  ;;  %v864_v11 = vrot.slane %v856_v4, %v3658_v1  ;;  %v871_v12 = vrot.slane %v857_v5, %v3658_v1  ;;  %v880_v13 = vrot.slane %v872_v6, %v3658_v1  ;;  %v887_v14 = vrot.slane %v873_v7, %v3658_v1 }
 0x4e8   :  { %v1768_v15 = vsel %vm1096_vm2, %v3844_v10, 0.0 }
 0x4e9   :  { %v960_v16 = vcombine.low %v864_v11, %v871_v12  ;;  %v3048_v42 = vcombine.high %v864_v11, %v871_v12  ;;  %v976_v17 = vcombine.low %v880_v13, %v887_v14  ;;  %v3049_v18 = vcombine.high %v880_v13, %v887_v14  ;;  %1769 = vadd.xlane.f32.xlu1 %v1768_v15 }
 0x4eb   :  { %v3852_v41 = vpop.eup %3396  ;;  %v967_v19 = vrot.slane %v960_v16, %v3648_v57  ;;  %v975_v39 = vrot.slane %v3048_v42, %v3648_v57  ;;  %v983_v20 = vrot.slane %v976_v17, %v3648_v57  ;;  %v991_v21 = vrot.slane %v3049_v18, %v3648_v57 }
 0x4ec   :  { %v1774_v22 = vsel %vm1096_vm2, %v3852_v41, 0.0 }
 0x4ed   :  { %1775 = vadd.xlane.f32.xlu0 %v1774_v22  ;;  %v992_v25 = vcombine.low %v967_v19, %v975_v39  ;;  %v1008_v26 = vcombine.low %v983_v20, %v991_v21  ;;  %v993_v27 = vcombine.high %v967_v19, %v975_v39  ;;  %v1009_v43 = vcombine.high %v983_v20, %v991_v21 }
 0x4ef   :  { %v1000_v29 = vrot.slane %v992_v25, %v3658_v1  ;;  %v1016_v30 = vrot.slane %v1008_v26, %v3658_v1  ;;  %v1007_v62 = vrot.slane %v993_v27, %v3658_v1  ;;  %v1023_v32 = vrot.slane %v1009_v43, %v3658_v1 }
 0x4f1   :  { %v1024_v33 = vcombine.low %v1000_v29, %v1016_v30  ;;  %v1025_v23 = vcombine.high %v1000_v29, %v1016_v30  ;;  %v1026_v34 = vcombine.low %v1007_v62, %v1023_v32  ;;  %v1027_v36 = vcombine.high %v1007_v62, %v1023_v32 }
 0x4f3   :  { %3211 = vmatpush3.msra.mxu0 %v1024_v33  ;;  %3216 = vmatpush3.msra.mxu1 %v1025_v23 }
 0x4f4   :  { %3220 = vmatprep.subr.mxu0 %v3484_v46  ;;  %3225 = vmatprep.subr.mxu1 %v3484_v46 }
 0x4fa   :  { %806 = vrot.lane.b32.xlu1 %v3631_v45, %s3488_s28 }
 0x4fe   :  { %810 = vrot.lane.b32.xlu1 %v3629_v44, %s3488_s28 }
 0x502   :  { %814 = vrot.lane.b32.xlu1 %v3636_v47, %s3488_s28 }
 0x503   :  { %802 = vrot.lane.b32.xlu0 %v3612_v40, %s3488_s28 }
 0x539   :  { %v1755_v8 = vpop.xlane.xlu0 %1754 }
 0x53a   :  { %3398 = vrcp.f32 %v1755_v8 }
 0x53d   :  { %v1758_v9 = vpop.xlane.xlu1 %1757 }
 0x53e   :  { %3400 = vrcp.f32 %v1758_v9  ;;  %v1761_v38 = vpop.xlane.xlu0 %1760 }
 0x53f   :  { %3402 = vrcp.f32 %v1761_v38 }
 0x544   :  { %v3399_v48 = vpop.eup %3398 }
 0x545   :  { %v1778_v49 = vmul.f32 %v3399_v48, %v3814_v28 }
 0x546   :  { %v1764_v50 = vpop.xlane.xlu1 %1763 }
 0x547   :  { %3404 = vrcp.f32 %v1764_v50  ;;  %3213 = vmatmul.mubr.msk.f32.vlgmr.msra.gmra.mrb[6].mxu0 %vm1096_vm2, %v1778_v49 }
 0x548   :  { %v3401_v44 = vpop.eup %3400  ;;  %3221 = vmatpush3.msra.mxu0 %v1026_v34  ;;  %3222 = vmatprep.mubr.msk.f32.mxu0 %vm3485_vm1, %v3484_v46 }
 0x549   :  { %v3403_v45 = vpop.eup %3402  ;;  %v1780_v40 = vmul.f32 %v3401_v44, %v3818_v63  ;;  %3230 = vmatprep.subr.mxu0 %v3484_v46 }
 0x54a   :  { %v1782_v47 = vmul.f32 %v3403_v45, %v3820_v31  ;;  %v1767_v31 = vpop.xlane.xlu0 %1766 }
 0x54b   :  { %3218 = vmatmul.mubr.msk.f32.vlgmr.msra.gmra.mrb[12].mxu1 %vm1096_vm2, %v1780_v40  ;;  %3406 = vrcp.f32 %v1767_v31 }
 0x54c   :  { %3223 = vmatmul.mubr.msk.f32.vlgmr.msra.gmra.mrb[8].mxu0 %vm1096_vm2, %v1782_v47  ;;  %3226 = vmatpush3.msra.mxu1 %v1027_v36 }
 0x54d   :  { %3227 = vmatprep.mubr.msk.f32.mxu1 %vm3485_vm1, %v3484_v46  ;;  %3235 = vmatprep.subr.mxu1 %v3484_v46 }
 0x54e   :  { %3232 = vmatprep.mubr.msk.f32.mxu0 %vm3485_vm1, %v3484_v46  ;;  %v1773_v51 = vpop.xlane.xlu0 %1772 }
 0x551   :  { %v3405_v28 = vpop.eup %3404 }
 0x552   :  { %v1784_v63 = vmul.f32 %v3405_v28, %v3830_v35 }
 0x554   :  { %3228 = vmatmul.mubr.msk.f32.vlgmr.msra.gmra.mrb[14].mxu1 %vm1096_vm2, %v1784_v63 }
 0x555   :  { %3237 = vmatprep.mubr.msk.f32.mxu1 %vm3485_vm1, %v3484_v46  ;;  %v3407_v22 = vpop.eup %3406 }
 0x556   :  { %v1786_v9 = vmul.f32 %v3407_v22, %v3826_v24 }
 0x576   :  { %v1770_v52 = vpop.xlane.xlu1 %1769 }
 0x577   :  { %3408 = vrcp.f32 %v1770_v52 }
 0x578   :  { %3410 = vrcp.f32 %v1773_v51 }
 0x57a   :  { %v807_v53 = vpop.permute.xlu1 %806  ;;  %v1776_v54 = vpop.xlane.xlu0 %1775 }
 0x57b   :  { %3412 = vrcp.f32 %v1776_v54 }
 0x57e   :  { %v811_v55 = vpop.permute.xlu1 %810  ;;  %v803_v56 = vpop.permute.xlu0 %802 }
 0x57f   :  { %v892_v58 = vcombine.low %v803_v56, %v811_v55  ;;  %v893_v59 = vcombine.high %v803_v56, %v811_v55 }
 0x581   :  { %v900_v35 = vrot.slane %v892_v58, %v3648_v57  ;;  %v907_v2 = vrot.slane %v893_v59, %v3648_v57  ;;  %v3409_v29 = vpop.eup %3408 }
 0x582   :  { %v815_v60 = vpop.permute.xlu1 %814  ;;  %v3411_v32 = vpop.eup %3410  ;;  %v1788_v38 = vmul.f32 %v3409_v29, %v3844_v10 }
 0x583   :  { %v908_v61 = vcombine.low %v807_v53, %v815_v60  ;;  %v909_v0 = vcombine.high %v807_v53, %v815_v60  ;;  %v1790_v50 = vmul.f32 %v3411_v32, %v3834_v37 }
 0x585   :  { %v916_v3 = vrot.slane %v908_v61, %v3648_v57  ;;  %v923_v4 = vrot.slane %v909_v0, %v3648_v57  ;;  %v3413_v8 = vpop.eup %3412 }
 0x586   :  { %v1792_v44 = vmul.f32 %v3413_v8, %v3852_v41 }
 0x587   :  { %v924_v5 = vcombine.low %v900_v35, %v916_v3  ;;  %v925_v6 = vcombine.high %v900_v35, %v916_v3  ;;  %v940_v7 = vcombine.low %v907_v2, %v923_v4  ;;  %v941_v11 = vcombine.high %v907_v2, %v923_v4 }
 0x589   :  { %v932_v12 = vrot.slane %v924_v5, %v3658_v1  ;;  %v939_v13 = vrot.slane %v925_v6, %v3658_v1  ;;  %v948_v14 = vrot.slane %v940_v7, %v3658_v1  ;;  %v955_v15 = vrot.slane %v941_v11, %v3658_v1 }
 0x58b   :  { %v1028_v16 = vcombine.low %v932_v12, %v939_v13  ;;  %v3050_v42 = vcombine.high %v932_v12, %v939_v13  ;;  %v1044_v17 = vcombine.low %v948_v14, %v955_v15  ;;  %v3051_v18 = vcombine.high %v948_v14, %v955_v15 }
 0x58d   :  { %v1035_v19 = vrot.slane %v1028_v16, %v3648_v57  ;;  %v1043_v39 = vrot.slane %v3050_v42, %v3648_v57  ;;  %v1051_v20 = vrot.slane %v1044_v17, %v3648_v57  ;;  %v1059_v21 = vrot.slane %v3051_v18, %v3648_v57 }
 0x58f   :  { %v1060_v25 = vcombine.low %v1035_v19, %v1043_v39  ;;  %v1076_v26 = vcombine.low %v1051_v20, %v1059_v21  ;;  %v1061_v27 = vcombine.high %v1035_v19, %v1043_v39  ;;  %v1077_v43 = vcombine.high %v1051_v20, %v1059_v21 }
 0x591   :  { %v1068_v30 = vrot.slane %v1060_v25, %v3658_v1  ;;  %v1084_v62 = vrot.slane %v1076_v26, %v3658_v1  ;;  %v1075_v33 = vrot.slane %v1061_v27, %v3658_v1  ;;  %v1091_v23 = vrot.slane %v1077_v43, %v3658_v1 }
 0x593   :  { %v1092_v34 = vcombine.low %v1068_v30, %v1084_v62  ;;  %v1093_v36 = vcombine.high %v1068_v30, %v1084_v62  ;;  %v1094_v48 = vcombine.low %v1075_v33, %v1091_v23  ;;  %v1095_v49 = vcombine.high %v1075_v33, %v1091_v23 }
 0x595   :  { %3231 = vmatpush3.msra.mxu0 %v1092_v34  ;;  %3236 = vmatpush3.msra.mxu1 %v1093_v36 }
 0x596   :  { %3233 = vmatmul.mubr.msk.f32.vlgmr.msra.gmra.mrb[10].mxu0 %vm1096_vm2, %v1786_v9  ;;  %3238 = vmatmul.mubr.msk.f32.vlgmr.msra.gmra.mrb[16].mxu1 %vm1096_vm2, %v1788_v38 }
 0x597   :  { %3240 = vmatprep.subr.mxu0 %v3484_v46  ;;  %3245 = vmatprep.subr.mxu1 %v3484_v46 }
 0x598   :  { %3241 = vmatpush3.msra.mxu0 %v1094_v48  ;;  %3246 = vmatpush3.msra.mxu1 %v1095_v49 }
 0x599   :  { %3242 = vmatprep.mubr.msk.f32.mxu0 %vm3485_vm1, %v3484_v46  ;;  %3247 = vmatprep.mubr.msk.f32.mxu1 %vm3485_vm1, %v3484_v46 }
 0x59a   :  { %3243 = vmatmul.mubr.msk.f32.vlgmr.msra.gmra.mrb[12].mxu0 %vm1096_vm2, %v1790_v50  ;;  %3248 = vmatmul.mubr.msk.f32.vlgmr.msra.gmra.mrb[18].mxu1 %vm1096_vm2, %v1792_v44 }
 0x61a   :  { %v1862_v24 = vpop.f32.mrb[6].mxu0 }
 0x61b   :  { %v3214_v10 = vpop.f32.mrb[7].mxu0 }
 0x61e   :  { %v1935_v45 = vpop.f32.mrb[12].mxu1 }
 0x61f   :  { %v2008_v40 = vpop.f32.mrb[8].mxu0  ;;  %v3219_v47 = vpop.f32.mrb[13].mxu1 }
 0x620   :  { %v2377_v37 = vcombine.low %v1862_v24, %v2008_v40  ;;  %v2378_v28 = vcombine.high %v1862_v24, %v2008_v40  ;;  %v3224_v41 = vpop.f32.mrb[9].mxu0  ;;  %v2682_v40 = vld [vmem:[%s4049_s5 + $0x8] sm:$0xff] }
 0x622   :  { %v2385_v53 = vrot.slane %v2377_v37, %v3648_v57  ;;  %v2392_v46 = vrot.slane %v2378_v28, %v3648_v57 }
 0x627   :  { %v2081_v63 = vpop.f32.mrb[14].mxu1 }
 0x628   :  { %v2393_v31 = vcombine.low %v1935_v45, %v2081_v63  ;;  %v2394_v51 = vcombine.high %v1935_v45, %v2081_v63  ;;  %v3229_v52 = vpop.f32.mrb[15].mxu1  ;;  %v2681_v45 = vld [vmem:[%s4049_s5] sm:$0xff] }
 0x629   :  { %v3315_v63 = vpack.c.bf16 %v2682_v40, %v2681_v45  ;;  %v2820_v45 = vld [vmem:[%s4053_s9 + $0x8] sm:$0xff] }
 0x62a   :  { %v2401_v54 = vrot.slane %v2393_v31, %v3648_v57  ;;  %v2408_v55 = vrot.slane %v2394_v51, %v3648_v57 }
 0x62b   :  { %3316 = vmatprep.subr.bf16.mxu1 %v3315_v63 }
 0x62c   :  { %v2409_v56 = vcombine.low %v2385_v53, %v2401_v54  ;;  %v2410_v58 = vcombine.high %v2385_v53, %v2401_v54  ;;  %v2425_v59 = vcombine.low %v2392_v46, %v2408_v55  ;;  %v2426_v60 = vcombine.high %v2392_v46, %v2408_v55  ;;  %v2683_v46 = vld [vmem:[%s4049_s5 + $0x10] sm:$0xff]  ;;  %v2684_v54 = vld [vmem:[%s4049_s5 + $0x18] sm:$0xff]  ;;  %3318 = vmatpush3.bf16.msra.mxu1 %v3315_v63 }
 0x62e   :  { %v2417_v61 = vrot.slane %v2409_v56, %v3658_v1  ;;  %v2424_v0 = vrot.slane %v2410_v58, %v3658_v1  ;;  %v2433_v35 = vrot.slane %v2425_v59, %v3658_v1  ;;  %v2440_v2 = vrot.slane %v2426_v60, %v3658_v1 }
 0x62f   :  { %v3319_v60 = vpack.c.bf16 %v2684_v54, %v2683_v46  ;;  %v3083_v54 = vld [vmem:[%s4051_s7] ss:$0 sm:$0xff] }
 0x630   :  { %v2513_v3 = vcombine.low %v2417_v61, %v2424_v0  ;;  %v3076_v4 = vcombine.high %v2417_v61, %v2424_v0  ;;  %v2529_v5 = vcombine.low %v2433_v35, %v2440_v2  ;;  %v3077_v6 = vcombine.high %v2433_v35, %v2440_v2 }
 0x631   :  { %3320 = vmatprep.subr.bf16.mxu1 %v3319_v60 }
 0x632   :  { %v2520_v7 = vrot.slane %v2513_v3, %v3648_v57  ;;  %v2528_v11 = vrot.slane %v3076_v4, %v3648_v57  ;;  %v2536_v12 = vrot.slane %v2529_v5, %v3648_v57  ;;  %v2544_v13 = vrot.slane %v3077_v6, %v3648_v57  ;;  %3322 = vmatpush3.bf16.msra.mxu1 %v3319_v60 }
 0x634   :  { %v2545_v14 = vcombine.low %v2520_v7, %v2528_v11  ;;  %v2561_v15 = vcombine.low %v2536_v12, %v2544_v13  ;;  %v2546_v16 = vcombine.high %v2520_v7, %v2528_v11  ;;  %v2562_v42 = vcombine.high %v2536_v12, %v2544_v13 }
 0x636   :  { %v3935_v17 = vrot.slane %v2545_v14, %v3658_v1  ;;  %v3938_v18 = vrot.slane %v2561_v15, %v3658_v1  ;;  %v2560_v19 = vrot.slane %v2546_v16, %v3658_v1  ;;  %v2576_v39 = vrot.slane %v2562_v42, %v3658_v1 }
 0x638   :  { %v2578_v20 = vcombine.high %v3935_v17, %v3938_v18  ;;  %v2577_v21 = vcombine.low %v3935_v17, %v3938_v18  ;;  %v2579_v22 = vcombine.low %v2560_v19, %v2576_v39  ;;  %v2580_v25 = vcombine.high %v2560_v19, %v2576_v39  ;;  %v3080_v17 = vld [vmem:[%s4050_s6] ss:$0 sm:$0xff] }
 0x63a   :  { %2651 = vrot.lane.b32.xlu0 %v2578_v20, %s3478_s19 }
 0x63e   :  { %2659 = vrot.lane.b32.xlu0 %v2579_v22, %s3489_s29 }
 0x642   :  { %2667 = vrot.lane.b32.xlu0 %v2580_v25, %s3490_s30 }
 0x669   :  { %v2154_v26 = vpop.f32.mrb[10].mxu0  ;;  %v2227_v27 = vpop.f32.mrb[16].mxu1 }
 0x66a   :  { %v3234_v43 = vpop.f32.mrb[11].mxu0  ;;  %v3239_v29 = vpop.f32.mrb[17].mxu1 }
 0x66b   :  { %v3426_v29 = vld [vmem:[%s4044_s0 + $0x8] sm:$0xff] }
 0x66d   :  { %v2300_v30 = vpop.f32.mrb[12].mxu0  ;;  %v2373_v62 = vpop.f32.mrb[18].mxu1 }
 0x66e   :  { %v2445_v32 = vcombine.low %v2154_v26, %v2300_v30  ;;  %v2446_v33 = vcombine.high %v2154_v26, %v2300_v30  ;;  %v2461_v23 = vcombine.low %v2227_v27, %v2373_v62  ;;  %v2462_v34 = vcombine.high %v2227_v27, %v2373_v62  ;;  %v3244_v36 = vpop.f32.mrb[13].mxu0  ;;  %v3249_v8 = vpop.f32.mrb[19].mxu1  ;;  %v3427_v62 = vld [vmem:[%s4044_s0] sm:$0xff] }
 0x670   :  { %v2453_v9 = vrot.slane %v2445_v32, %v3648_v57  ;;  %v2460_v38 = vrot.slane %v2446_v33, %v3648_v57  ;;  %v2469_v48 = vrot.slane %v2461_v23, %v3648_v57  ;;  %v2476_v49 = vrot.slane %v2462_v34, %v3648_v57 }
 0x672   :  { %v2477_v50 = vcombine.low %v2453_v9, %v2469_v48  ;;  %v2478_v44 = vcombine.high %v2453_v9, %v2469_v48  ;;  %v2493_v24 = vcombine.low %v2460_v38, %v2476_v49  ;;  %v2494_v10 = vcombine.high %v2460_v38, %v2476_v49 }
 0x674   :  { %v2485_v47 = vrot.slane %v2477_v50, %v3658_v1  ;;  %v2492_v37 = vrot.slane %v2478_v44, %v3658_v1  ;;  %v2501_v28 = vrot.slane %v2493_v24, %v3658_v1  ;;  %v2508_v41 = vrot.slane %v2494_v10, %v3658_v1  ;;  %v2819_v10 = vld [vmem:[%s4053_s9] sm:$0xff] }
 0x675   :  { %v3323_v40 = vpack.c.bf16 %v2820_v45, %v2819_v10  ;;  %v3090_v45 = vld [vmem:[%s4056_s12] ss:$0 sm:$0xff] }
 0x676   :  { %v2581_v31 = vcombine.low %v2485_v47, %v2492_v37  ;;  %v3078_v51 = vcombine.high %v2485_v47, %v2492_v37  ;;  %v2597_v52 = vcombine.low %v2501_v28, %v2508_v41  ;;  %v3079_v53 = vcombine.high %v2501_v28, %v2508_v41  ;;  %v2821_v47 = vld [vmem:[%s4053_s9 + $0x10] sm:$0xff]  ;;  %v2822_v37 = vld [vmem:[%s4053_s9 + $0x18] sm:$0xff] }
 0x677   :  { %3324 = vmatprep.subr.bf16.mxu1 %v3323_v40  ;;  %v3327_v28 = vpack.c.bf16 %v2822_v37, %v2821_v47 }
 0x678   :  { %v2588_v55 = vrot.slane %v2581_v31, %v3648_v57  ;;  %v2596_v56 = vrot.slane %v3078_v51, %v3648_v57  ;;  %v2604_v58 = vrot.slane %v2597_v52, %v3648_v57  ;;  %v2612_v59 = vrot.slane %v3079_v53, %v3648_v57 }
 0x67a   :  { %v2613_v61 = vcombine.low %v2588_v55, %v2596_v56  ;;  %v2629_v0 = vcombine.low %v2604_v58, %v2612_v59  ;;  %v2614_v35 = vcombine.high %v2588_v55, %v2596_v56  ;;  %v2630_v2 = vcombine.high %v2604_v58, %v2612_v59  ;;  %v3084_v56 = vld [vmem:[%s4052_s8] ss:$0 sm:$0xff] }
 0x67c   :  { %v2621_v3 = vrot.slane %v2613_v61, %v3658_v1  ;;  %v2637_v4 = vrot.slane %v2629_v0, %v3658_v1  ;;  %v2628_v5 = vrot.slane %v2614_v35, %v3658_v1  ;;  %v2644_v6 = vrot.slane %v2630_v2, %v3658_v1  ;;  %v2927_v2 = vld [vmem:[#allocation4] sm:$0xff] }
 0x67e   :  { %v2646_v7 = vcombine.high %v2621_v3, %v2637_v4  ;;  %v2645_v11 = vcombine.low %v2621_v3, %v2637_v4  ;;  %v2647_v12 = vcombine.low %v2628_v5, %v2644_v6  ;;  %v2648_v57 = vcombine.high %v2628_v5, %v2644_v6  ;;  %v2928_v3 = vld [vmem:[#allocation4 + $0x8] sm:$0xff]  ;;  %v2929_v5 = vld [vmem:[#allocation4 + $0x10] sm:$0xff]  ;;  %v2930_v6 = vld [vmem:[#allocation4 + $0x18] sm:$0xff] }
 0x67f   :  { %v3331_v4 = vpack.c.bf16 %v2928_v3, %v2927_v2 }
 0x680   :  { %2653 = vrot.lane.b32.xlu1 %v2646_v7, %s3478_s19  ;;  %v3335_v7 = vpack.c.bf16 %v2930_v6, %v2929_v5 }
 0x681   :  { %3332 = vmatprep.subr.bf16.mxu0 %v3331_v4 }
 0x682   :  { %3334 = vmatpush3.bf16.msra.mxu0 %v3331_v4 }
 0x683   :  { %3336 = vmatprep.subr.bf16.mxu0 %v3335_v7 }
 0x684   :  { %2661 = vrot.lane.b32.xlu1 %v2647_v12, %s3489_s29  ;;  %v2932_v12 = vld [vmem:[#allocation4 + $0x28] sm:$0xff] }
 0x686   :  { %3338 = vmatpush3.bf16.msra.mxu0 %v3335_v7 }
 0x688   :  { %2669 = vrot.lane.b32.xlu1 %v2648_v57, %s3490_s30 }
 0x6ac   :  { %v2652_v13 = vpop.permute.xlu0 %2651 }
 0x6ad   :  { %v2673_v1 = vsel %vm1096_vm2, %v2577_v21, %v2652_v13  ;;  %v2933_v13 = vld [vmem:[#allocation4 + $0x30] sm:$0xff] }
 0x6b0   :  { %v2660_v14 = vpop.permute.xlu0 %2659 }
 0x6b1   :  { %v2676_v15 = vsel %vm2675_vm3, %v2673_v1, %v2660_v14  ;;  %v2934_v14 = vld [vmem:[#allocation4 + $0x38] sm:$0xff] }
 0x6b2   :  { %v3343_v1 = vpack.c.bf16 %v2934_v14, %v2933_v13 }
 0x6b4   :  { %v2668_v16 = vpop.permute.xlu0 %2667 }
 0x6b5   :  { %v2679_v42 = vsel %vm2678_vm4, %v2676_v15, %v2668_v16  ;;  %v2935_v15 = vld [vmem:[#allocation4 + $0x40] sm:$0xff]  ;;  %v2936_v16 = vld [vmem:[#allocation4 + $0x48] sm:$0xff] }
 0x6b6   :  { %3258 = vmatprep.mubr.msk.f32.mxu1 %vm76_vm0, %v2679_v42  ;;  %v3347_v42 = vpack.c.bf16 %v2936_v16, %v2935_v15 }
 0x6f2   :  { %v2654_v19 = vpop.permute.xlu1 %2653 }
 0x6f3   :  { %v2674_v20 = vsel %vm1096_vm2, %v2645_v11, %v2654_v19  ;;  %v2931_v11 = vld [vmem:[#allocation4 + $0x20] sm:$0xff]  ;;  %v2937_v19 = vld [vmem:[#allocation4 + $0x50] sm:$0xff] }
 0x6f4   :  { %v3339_v57 = vpack.c.bf16 %v2932_v12, %v2931_v11 }
 0x6f6   :  { %v2662_v39 = vpop.permute.xlu1 %2661  ;;  %3340 = vmatprep.subr.bf16.mxu0 %v3339_v57 }
 0x6f7   :  { %v2677_v22 = vsel %vm2675_vm3, %v2674_v20, %v2662_v39  ;;  %3342 = vmatpush3.bf16.msra.mxu0 %v3339_v57  ;;  %v2938_v39 = vld [vmem:[#allocation4 + $0x58] sm:$0xff] }
 0x6f8   :  { %3344 = vmatprep.subr.bf16.mxu0 %v3343_v1  ;;  %v3351_v20 = vpack.c.bf16 %v2938_v39, %v2937_v19 }
 0x6fa   :  { %v2670_v25 = vpop.permute.xlu1 %2669 }
 0x6fb   :  { %v2680_v26 = vsel %vm2678_vm4, %v2677_v22, %v2670_v25  ;;  %3346 = vmatpush3.bf16.msra.mxu0 %v3343_v1  ;;  %v2939_v22 = vld [vmem:[#allocation4 + $0x60] sm:$0xff]  ;;  %v2940_v25 = vld [vmem:[#allocation4 + $0x68] sm:$0xff] }
 0x6fc   :  { %3259 = vmatmul.mubr.msk.f32.vlgmr.msra.gmra.mrb[20].mxu1 %vm76_vm0, %v2680_v26  ;;  %3348 = vmatprep.subr.bf16.mxu0 %v3347_v42  ;;  %v3355_v26 = vpack.c.bf16 %v2940_v25, %v2939_v22 }
 0x6fd   :  { %3326 = vmatpush3.bf16.msra.mxu1 %v3323_v40 }
 0x6fe   :  { %3328 = vmatprep.subr.bf16.mxu1 %v3327_v28 }
 0x6ff   :  { %3350 = vmatpush3.bf16.msra.mxu0 %v3347_v42 }
 0x700   :  { %3352 = vmatprep.subr.bf16.mxu0 %v3351_v20 }
 0x701   :  { %3330 = vmatpush3.bf16.msra.mxu1 %v3327_v28 }
 0x703   :  { %3354 = vmatpush3.bf16.msra.mxu0 %v3351_v20 }
 0x704   :  { %3356 = vmatprep.subr.bf16.mxu0 %v3355_v26 }
 0x707   :  { %3358 = vmatpush3.bf16.msra.mxu0 %v3355_v26 }
 0x7cf   :  { %v3260_v18 = vpop.f32.mrb[20].mxu1 }
 0x7d0   :  { %v2770_v21 = vadd.f32 %v3260_v18, %v3080_v17  ;;  %v2764_v27 = vpop.f32.mrb[21].mxu1  ;;  %v2942_v18 = vld [vmem:[#allocation4 + $0x78] sm:$0xff] }
 0x7d1   :  { %v2765_v43 = vadd.f32 %v3080_v17, %v2764_v27  ;;  %v2941_v17 = vld [vmem:[#allocation4 + $0x70] sm:$0xff]  ;;  %v3085_v27 = vld [vmem:[%s4054_s10] ss:$0 sm:$0xff] }
 0x7d2   :  { %v3993_v30 = vadd.f32 %v3426_v29, %v2770_v21  ;;  %v3359_v21 = vpack.c.bf16 %v2942_v18, %v2941_v17 }
 0x7d3   :  { %v3998_v32 = vadd.f32 %v3427_v62, %v2765_v43 }
 0x7d4   :  { %v2780_v33 = vsel %vm76_vm0, %v3993_v30, 0.0  ;;  %3360 = vmatprep.subr.bf16.mxu0 %v3359_v21 }
 0x7d5   :  { %2781 = vadd.xlane.f32.xlu1 %v2780_v33  ;;  %v2777_v23 = vsel %vm76_vm0, %v3998_v32, 0.0  ;;  %3362 = vmatpush3.bf16.msra.mxu0 %v3359_v21 }
 0x7d6   :  { %2778 = vadd.xlane.f32.xlu0 %v2777_v23 }
 0x862   :  { %v2782_v34 = vpop.xlane.xlu1 %2781 }
 0x863   :  { %v2784_v36 = vmul.f32 0.03125, %v2782_v34  ;;  %v2779_v8 = vpop.xlane.xlu0 %2778 }
 0x864   :  { %v2783_v9 = vmul.f32 0.03125, %v2779_v8 }
 0x865   :  { %v2786_v38 = vsub.f32 %v3993_v30, %v2784_v36 }
 0x866   :  { %v2785_v48 = vsub.f32 %v3998_v32, %v2783_v9 }
 0x867   :  { %v2788_v44 = vmul.f32 %v2786_v38, %v2786_v38 }
 0x868   :  { %v2787_v49 = vmul.f32 %v2785_v48, %v2785_v48 }
 0x869   :  { %v2792_v24 = vsel %vm76_vm0, %v2788_v44, 0.0 }
 0x86a   :  { %v2789_v50 = vsel %vm76_vm0, %v2787_v49, 0.0 }
 0x86b   :  { %2790 = vadd.xlane.f32.xlu0 %v2789_v50 }
 0x86f   :  { %2793 = vadd.xlane.f32.xlu0 %v2792_v24 }
 0x8f8   :  { %v2791_v41 = vpop.xlane.xlu0 %2790 }
 0x8f9   :  { %v2795_v63 = vmul.f32 0.03125, %v2791_v41 }
 0x8fb   :  { %v2797_v31 = vadd.f32 1e-05, %v2795_v63 }
 0x8fc   :  { %v2794_v51 = vpop.xlane.xlu0 %2793 }
 0x8fd   :  { %3414 = vrsqrt.f32 %v2797_v31  ;;  %v2796_v52 = vmul.f32 0.03125, %v2794_v51 }
 0x8ff   :  { %v2798_v53 = vadd.f32 1e-05, %v2796_v52 }
 0x901   :  { %3416 = vrsqrt.f32 %v2798_v53 }
 0x907   :  { %v3415_v46 = vpop.eup %3414 }
 0x908   :  { %v2801_v55 = vmul.f32 %v3415_v46, %v2785_v48 }
 0x90a   :  { %v2809_v58 = vmul.f32 %v3083_v54, %v2801_v55 }
 0x90b   :  { %v3417_v59 = vpop.eup %3416 }
 0x90c   :  { %v2802_v60 = vmul.f32 %v3417_v59, %v2786_v38  ;;  %v2817_v61 = vadd.f32 %v3084_v56, %v2809_v58 }
 0x90e   :  { %v2810_v0 = vmul.f32 %v3083_v54, %v2802_v60  ;;  %3269 = vmatprep.mubr.msk.f32.mxu1 %vm76_vm0, %v2817_v61 }
 0x910   :  { %v2818_v35 = vadd.f32 %v3084_v56, %v2810_v0 }
 0x912   :  { %3270 = vmatmul.mubr.msk.f32.vlgmr.msra.gmra.mrb[22].mxu1 %vm76_vm0, %v2818_v35 }
 0x9e5   :  { %v3271_v43 = vpop.f32.mrb[22].mxu1 }
 0x9e6   :  { %v2908_v29 = vadd.f32 %v3271_v43, %v3085_v27  ;;  %v2902_v62 = vpop.f32.mrb[23].mxu1 }
 0x9e7   :  { %v2903_v33 = vadd.f32 %v3085_v27, %v2902_v62 }
 0x9e8   :  { %v3089_v23 = vmul.f32 -1.702, %v2908_v29 }
 0x9e9   :  { %v3088_v34 = vmul.f32 -1.702, %v2903_v33 }
 0x9ea   :  { %v2917_v36 = vmul.f32 1.442695, %v3089_v23 }
 0x9eb   :  { %v2915_v8 = vmul.f32 1.442695, %v3088_v34 }
 0x9ec   :  { %3418 = vpow2.f32 %v2917_v36 }
 0x9ed   :  { %3420 = vpow2.f32 %v2915_v8 }
 0x9f6   :  { %v3419_v9 = vpop.eup %3418 }
 0x9f7   :  { %v3421_v38 = vpop.eup %3420  ;;  %v2920_v48 = vadd.f32 1.0, %v3419_v9 }
 0x9f8   :  { %v2919_v49 = vadd.f32 1.0, %v3421_v38 }
 0x9f9   :  { %3422 = vrcp.f32 %v2920_v48 }
 0x9fa   :  { %3424 = vrcp.f32 %v2919_v49 }
 0xa03   :  { %v3423_v50 = vpop.eup %3422 }
 0xa04   :  { %v3425_v44 = vpop.eup %3424  ;;  %v2926_v10 = vmul.f32 %v3423_v50, %v2908_v29 }
 0xa05   :  { %v2925_v24 = vmul.f32 %v3425_v44, %v2903_v33 }
 0xa07   :  { %3304 = vmatprep.mubr.f32.mxu0 %v2925_v24 }
 0xa08   :  { %3305 = vmatmul.mubr.f32.vlgmr.msra.gmra.mrb[14].mxu0 %v2926_v10 }
 0xadb   :  { %v3306_v40 = vpop.f32.mrb[14].mxu0 }
 0xadc   :  { %v3022_v47 = vadd.f32 %v3306_v40, %v3090_v45  ;;  %v3016_v37 = vpop.f32.mrb[15].mxu0 }
 0xadd   :  { %v3017_v28 = vadd.f32 %v3090_v45, %v3016_v37 }
 0xade   :  { %v3026_v41 = vadd.f32 %v3022_v47, %v3993_v30 }
 0xadf   :  { %v3025_v63 = vadd.f32 %v3017_v28, %v3998_v32 }
 0xae0   :  { %3028 = vst.msk [vmem:[%s4057_s13 + $0x8] sm:$0xff] %vm76_vm0, %v3026_v41 }
 0xae1   :  { %3027 = vst.msk [vmem:[%s4057_s13] sm:$0xff] %vm76_vm0, %v3025_v63 }
 0xae2   :  { %3033 = vsyncpa [#allocation3], 1 }
 0xae3   :  { %3034 = vsyncpa [#allocation5], 1 }

</bundles_post_ra>
